<compile_context>
chip_gen: v7x
topology: tpu7x:2x2x1
jax: 0.10.0
libtpu: 0.0.40
codegen_flags: <defaults>
</compile_context>

<pallas_src>
import jax
import jax.numpy as jnp
from jax.experimental import pallas as pl
from jax.experimental.pallas import tpu as pltpu

IN_DIM = 4
OUT_DIM = 4
H0, H1, H2 = 32, 64, 128


# ---------------------------------------------------------------------------
# Recurrent kernel: 3 stacked LSTM layers over a chunk of timesteps.
# ---------------------------------------------------------------------------
def lstm_gen_kernel(
    x_ref,
    w0_ref, b0_ref,
    w1_ref, b1_ref,
    w2_ref, b2_ref,
    rec_ref,
    h0_s, c0_s, h1_s, c1_s, h2_s, c2_s,
):
    tc = pl.program_id(1)  # time-chunk index (sequential, "arbitrary")

    @pl.when(tc == 0)
    def _():
        h0_s[...] = jnp.zeros_like(h0_s)
        c0_s[...] = jnp.zeros_like(c0_s)
        h1_s[...] = jnp.zeros_like(h1_s)
        c1_s[...] = jnp.zeros_like(c1_s)
        h2_s[...] = jnp.zeros_like(h2_s)
        c2_s[...] = jnp.zeros_like(c2_s)

    chunk, bsh, _ = x_ref.shape

    # Hoist weight loads and bias broadcasts out of the time loop
    # (JAX does not CSE broadcast_in_dim inside the loop).
    w0 = w0_ref[...]
    w1 = w1_ref[...]
    w2 = w2_ref[...]
    b0 = jnp.broadcast_to(b0_ref[...], (bsh, 4 * H0))
    b1 = jnp.broadcast_to(b1_ref[...], (bsh, 4 * H1))
    b2 = jnp.broadcast_to(b2_ref[...], (bsh, 4 * H2))

    def cell(xh, c, w, b, hid):
        # Fused gates: one matmul per layer, [x, h] @ concat(Wih^T, Whh^T) + bias.
        gates = jnp.dot(xh, w, preferred_element_type=jnp.float32) + b
        # TODO(synk): gate slices for H0=32 / H1=64 are sub-128-lane extracts; a
        # pltpu.roll / lane-mask scheme could push that shuffle onto the XLU.
        i = jax.nn.sigmoid(gates[:, 0 * hid:1 * hid])
        f = jax.nn.sigmoid(gates[:, 1 * hid:2 * hid])
        g = jnp.tanh(gates[:, 2 * hid:3 * hid])
        o = jax.nn.sigmoid(gates[:, 3 * hid:4 * hid])
        c_new = f * c + i * g
        h_new = o * jnp.tanh(c_new)
        return h_new, c_new

    def body(t, carry):
        h0, c0, h1, c1, h2, c2 = carry
        x_t = x_ref[t]  # (B_shard, in_dim)
        h0, c0 = cell(jnp.concatenate([x_t, h0], axis=1), c0, w0, b0, H0)
        h1, c1 = cell(jnp.concatenate([h0, h1], axis=1), c1, w1, b1, H1)
        h2, c2 = cell(jnp.concatenate([h1, h2], axis=1), c2, w2, b2, H2)
        rec_ref[t] = h2
        return (h0, c0, h1, c1, h2, c2)

    init = (h0_s[...], c0_s[...], h1_s[...], c1_s[...], h2_s[...], c2_s[...])
    unroll = True if chunk <= 16 else 8
    h0, c0, h1, c1, h2, c2 = jax.lax.fori_loop(0, chunk, body, init, unroll=unroll)

    h0_s[...] = h0
    c0_s[...] = c0
    h1_s[...] = h1
    c1_s[...] = c1
    h2_s[...] = h2
    c2_s[...] = c2


# ---------------------------------------------------------------------------
# Non-recurrent output projection: tanh(rec @ Wlin + blin) over all B*T rows.
# ---------------------------------------------------------------------------
def proj_kernel(rec_ref, w_ref, b_ref, out_ref):
    out_ref[...] = jnp.tanh(
        jnp.dot(rec_ref[...], w_ref[...], preferred_element_type=jnp.float32)
        + b_ref[...]
    )


@jax.jit
def lstm_generator_forward(x, params):
    """x: (B, T, in_dim) float32 -> (outputs (B,T,out_dim), recurrent_features (B,T,128))."""
    B, T, Din = x.shape
    (wih0, whh0, b0, wih1, whh1, b1, wih2, whh2, b2, wlin, blin) = params

    # Fuse per-layer input/hidden weights: gates = [x, h] @ concat(Wih^T, Whh^T).
    w0_cat = jnp.concatenate([wih0, whh0], axis=0)   # (Din+H0, 4*H0)
    w1_cat = jnp.concatenate([wih1, whh1], axis=0)   # (H0+H1, 4*H1)
    w2_cat = jnp.concatenate([wih2, whh2], axis=0)   # (H1+H2, 4*H2)

    # Pad batch to a multiple of 8 (f32 sublane fill) and chunk time.
    B_pad = ((B + 7) // 8) * 8
    CHUNK = T if T <= 256 else 256
    NTC = pl.cdiv(T, CHUNK)
    T_pad = NTC * CHUNK
    # Shard the batch across a leading "parallel" grid axis (both v7x TCs) when
    # it is large enough for each shard to stay sublane-aligned.
    NB = 2 if (B_pad % 16 == 0) else 1
    B_shard = B_pad // NB

    x_tm = jnp.transpose(x, (1, 0, 2))  # time-major (T, B, Din)
    x_tm = jnp.pad(x_tm, ((0, T_pad - T), (0, B_pad - B), (0, 0)))

    def full_spec(arr):
        return pl.BlockSpec(arr.shape, lambda b, t: (0, 0))

    grid_spec = pltpu.PrefetchScalarGridSpec(
        num_scalar_prefetch=0,
        grid=(NB, NTC),
        in_specs=[
            pl.BlockSpec((CHUNK, B_shard, Din), lambda b, t: (t, b, 0)),
            full_spec(w0_cat), full_spec(b0),
            full_spec(w1_cat), full_spec(b1),
            full_spec(w2_cat), full_spec(b2),
        ],
        out_specs=pl.BlockSpec((CHUNK, B_shard, H2), lambda b, t: (t, b, 0)),
        scratch_shapes=[
            pltpu.VMEM((B_shard, H0), jnp.float32), pltpu.VMEM((B_shard, H0), jnp.float32),
            pltpu.VMEM((B_shard, H1), jnp.float32), pltpu.VMEM((B_shard, H1), jnp.float32),
            pltpu.VMEM((B_shard, H2), jnp.float32), pltpu.VMEM((B_shard, H2), jnp.float32),
        ],
    )

    rec_tm = pl.pallas_call(
        lstm_gen_kernel,
        out_shape=jax.ShapeDtypeStruct((T_pad, B_pad, H2), jnp.float32),
        grid_spec=grid_spec,
        compiler_params=pltpu.CompilerParams(
            dimension_semantics=("parallel", "arbitrary"),
        ),
    )(x_tm, w0_cat, b0, w1_cat, b1, w2_cat, b2)

    # Output projection hoisted out of the sequential loop: one
    # (T_pad*B_pad, 128) x (128, out_dim) matmul + tanh, fully parallel.
    rows = T_pad * B_pad
    rec_flat = rec_tm.reshape(rows, H2)
    out_flat = pl.pallas_call(
        proj_kernel,
        out_shape=jax.ShapeDtypeStruct((rows, OUT_DIM), jnp.float32),
        grid_spec=pltpu.PrefetchScalarGridSpec(
            num_scalar_prefetch=0,
            grid=(1,),
            in_specs=[
                pl.BlockSpec((rows, H2), lambda i: (0, 0)),
                pl.BlockSpec((H2, OUT_DIM), lambda i: (0, 0)),
                pl.BlockSpec((1, OUT_DIM), lambda i: (0, 0)),
            ],
            out_specs=pl.BlockSpec((rows, OUT_DIM), lambda i: (0, 0)),
        ),
    )(rec_flat, wlin, blin)
    out_tm = out_flat.reshape(T_pad, B_pad, OUT_DIM)

    outputs = jnp.transpose(out_tm[:T, :B], (1, 0, 2))            # (B, T, out_dim)
    recurrent_features = jnp.transpose(rec_tm[:T, :B], (1, 0, 2))  # (B, T, 128)
    return outputs, recurrent_features


# ---------------------------------------------------------------------------
# Parameter init (PyTorch-compatible shapes, stored pre-transposed) + reference.
# ---------------------------------------------------------------------------
def init_params(key):
    """Weights stored pre-transposed ((Din,4H)/(H,4H)); biases as b_ih+b_hh (1,4H)."""
    def uni(k, shape, bound):
        return jax.random.uniform(k, shape, jnp.float32, -bound, bound)

    keys = jax.random.split(key, 16)
    params = []
    layer_dims = [(IN_DIM, H0), (H0, H1), (H1, H2)]
    ki = 0
    for din, h in layer_dims:
        bound = 1.0 / jnp.sqrt(jnp.float32(h))
        w_ih_t = uni(keys[ki], (din, 4 * h), bound); ki += 1
        w_hh_t = uni(keys[ki], (h, 4 * h), bound); ki += 1
        b_ih = uni(keys[ki], (1, 4 * h), bound); ki += 1
        b_hh = uni(keys[ki], (1, 4 * h), bound); ki += 1
        params.extend([w_ih_t, w_hh_t, b_ih + b_hh])
    bound = 1.0 / jnp.sqrt(jnp.float32(H2))
    wlin = uni(keys[ki], (H2, OUT_DIM), bound); ki += 1
    blin = uni(keys[ki], (1, OUT_DIM), bound); ki += 1
    params.extend([wlin, blin])
    return tuple(params)


def _lstm_cell_ref(x, h, c, w_ih_t, w_hh_t, bias, hidden):
    gates = (
        jnp.dot(x, w_ih_t, preferred_element_type=jnp.float32)
        + jnp.dot(h, w_hh_t, preferred_element_type=jnp.float32)
        + bias
    )
    i = jax.nn.sigmoid(gates[:, 0 * hidden:1 * hidden])
    f = jax.nn.sigmoid(gates[:, 1 * hidden:2 * hidden])
    g = jnp.tanh(gates[:, 2 * hidden:3 * hidden])
    o = jax.nn.sigmoid(gates[:, 3 * hidden:4 * hidden])
    c_new = f * c + i * g
    h_new = o * jnp.tanh(c_new)
    return h_new, c_new


def reference_forward(x, params):
    """Pure-JAX reference (lax.scan) for correctness checking."""
    (wih0, whh0, b0, wih1, whh1, b1, wih2, whh2, b2, wlin, blin) = params
    B, T, _ = x.shape

    def run_layer(inp, w_ih_t, w_hh_t, b, h):
        def step(carry, x_t):
            h_prev, c_prev = carry
            h_new, c_new = _lstm_cell_ref(x_t, h_prev, c_prev, w_ih_t, w_hh_t, b, h)
            return (h_new, c_new), h_new
        init = (jnp.zeros((B, h), jnp.float32), jnp.zeros((B, h), jnp.float32))
        _, ys = jax.lax.scan(step, init, jnp.transpose(inp, (1, 0, 2)))
        return jnp.transpose(ys, (1, 0, 2))

    y0 = run_layer(x, wih0, whh0, b0, H0)
    y1 = run_layer(y0, wih1, whh1, b1, H1)
    y2 = run_layer(y1, wih2, whh2, b2, H2)
    outputs = jnp.tanh(y2 @ wlin + blin)
    return outputs, y2


if __name__ == "__main__":
    key = jax.random.PRNGKey(0)
    pkey, xkey = jax.random.split(key)

    B, T = 2, 8
    params = init_params(pkey)
    x = jax.random.normal(xkey, (B, T, IN_DIM), jnp.float32)

    outputs, rec = lstm_generator_forward(x, params)
    outputs = jax.block_until_ready(outputs)
    rec = jax.block_until_ready(rec)

    ref_out, ref_rec = reference_forward(x, params)

    assert outputs.shape == (B, T, OUT_DIM)
    assert rec.shape == (B, T, H2)
    assert jnp.allclose(outputs, ref_out, atol=1e-4, rtol=1e-4)
    assert jnp.allclose(rec, ref_rec, atol=1e-4, rtol=1e-4)

    print("KERNEL_OK")
</pallas_src>

<mosaic_0001>
module attributes {stable_mosaic.version = 11 : i64} {
  func.func @proj_kernel(%arg0: i32, %arg1: memref<64x128xf32, #tpu.memory_space<vmem>>, %arg2: memref<128x4xf32, #tpu.memory_space<vmem>>, %arg3: memref<1x4xf32, #tpu.memory_space<vmem>>, %arg4: memref<64x4xf32, #tpu.memory_space<vmem>>) attributes {dimension_semantics = [#tpu.dimension_semantics<arbitrary>], iteration_bounds = array<i64: 1>, scalar_prefetch = 0 : i64, scratch_operands = 0 : i64, tpu.core_type = #tpu.core_type<tc>, window_params = [{pipeline_mode = #tpu.pipeline_mode<synchronous>, transform_indices = @transform_0, window_bounds = array<i64: 64, 128>}, {pipeline_mode = #tpu.pipeline_mode<synchronous>, transform_indices = @transform_1, window_bounds = array<i64: 128, 4>}, {pipeline_mode = #tpu.pipeline_mode<synchronous>, transform_indices = @transform_2, window_bounds = array<i64: 1, 4>}, {pipeline_mode = #tpu.pipeline_mode<synchronous>, transform_indices = @transform_3, window_bounds = array<i64: 64, 4>}]} {
    %c0 = arith.constant 0 : index
    %c0_0 = arith.constant 0 : index
    %0 = vector.load %arg1[%c0, %c0_0] : memref<64x128xf32, #tpu.memory_space<vmem>>, vector<64x128xf32>
    %c0_1 = arith.constant 0 : index
    %c0_2 = arith.constant 0 : index
    %1 = vector.load %arg2[%c0_1, %c0_2] : memref<128x4xf32, #tpu.memory_space<vmem>>, vector<128x4xf32>
    %cst = arith.constant dense<0.000000e+00> : vector<64x4xf32>
    %2 = tpu.matmul %0, %1, %cst {dimension_numbers = #tpu.dot_dimension_numbers<[1], [0], [0], [1], [0, 0, 1, 1], [], []>} : vector<64x128xf32>, vector<128x4xf32>, vector<64x4xf32> -> vector<64x4xf32>
    %c0_3 = arith.constant 0 : index
    %c0_4 = arith.constant 0 : index
    %3 = vector.load %arg3[%c0_3, %c0_4] : memref<1x4xf32, #tpu.memory_space<vmem>>, vector<1x4xf32>
    %4 = vector.broadcast %3 : vector<1x4xf32> to vector<64x4xf32>
    %5 = arith.addf %2, %4 : vector<64x4xf32>
    %6 = math.tanh %5 : vector<64x4xf32>
    %c0_5 = arith.constant 0 : index
    %c0_6 = arith.constant 0 : index
    %7 = vector.load %arg4[%c0_5, %c0_6] : memref<64x4xf32, #tpu.memory_space<vmem>>, vector<64x4xf32>
    tpu.vector_store %arg4[%c0_5, %c0_6], %6 {strides = array<i32>} : memref<64x4xf32, #tpu.memory_space<vmem>>, vector<64x4xf32>,
    return
  }
  func.func @transform_0(%arg0: i32) -> (i32, i32) {
    %c0_i32 = arith.constant 0 : i32
    %c0_i32_0 = arith.constant 0 : i32
    %c0_i32_1 = arith.constant 0 : i32
    return %c0_i32, %c0_i32_0 : i32, i32
  }
  func.func @transform_1(%arg0: i32) -> (i32, i32) {
    %c0_i32 = arith.constant 0 : i32
    %c0_i32_0 = arith.constant 0 : i32
    %c0_i32_1 = arith.constant 0 : i32
    return %c0_i32, %c0_i32_0 : i32, i32
  }
  func.func @transform_2(%arg0: i32) -> (i32, i32) {
    %c0_i32 = arith.constant 0 : i32
    %c0_i32_0 = arith.constant 0 : i32
    %c0_i32_1 = arith.constant 0 : i32
    return %c0_i32, %c0_i32_0 : i32, i32
  }
  func.func @transform_3(%arg0: i32) -> (i32, i32) {
    %c0_i32 = arith.constant 0 : i32
    %c0_i32_0 = arith.constant 0 : i32
    %c0_i32_1 = arith.constant 0 : i32
    return %c0_i32, %c0_i32_0 : i32, i32
  }
}

module attributes {stable_mosaic.version = 11 : i64} {
  func.func @lstm_gen_kernel(%arg0: i32, %arg1: i32, %arg2: memref<8x8x4xf32, #tpu.memory_space<vmem>>, %arg3: memref<36x128xf32, #tpu.memory_space<vmem>>, %arg4: memref<1x128xf32, #tpu.memory_space<vmem>>, %arg5: memref<96x256xf32, #tpu.memory_space<vmem>>, %arg6: memref<1x256xf32, #tpu.memory_space<vmem>>, %arg7: memref<192x512xf32, #tpu.memory_space<vmem>>, %arg8: memref<1x512xf32, #tpu.memory_space<vmem>>, %arg9: memref<8x8x128xf32, #tpu.memory_space<vmem>>, %arg10: memref<8x32xf32, #tpu.memory_space<vmem>>, %arg11: memref<8x32xf32, #tpu.memory_space<vmem>>, %arg12: memref<8x64xf32, #tpu.memory_space<vmem>>, %arg13: memref<8x64xf32, #tpu.memory_space<vmem>>, %arg14: memref<8x128xf32, #tpu.memory_space<vmem>>, %arg15: memref<8x128xf32, #tpu.memory_space<vmem>>) attributes {dimension_semantics = [#tpu.dimension_semantics<parallel>, #tpu.dimension_semantics<arbitrary>], iteration_bounds = array<i64: 1, 1>, scalar_prefetch = 0 : i64, scratch_operands = 6 : i64, tpu.core_type = #tpu.core_type<tc>, window_params = [{transform_indices = @transform_0, window_bounds = array<i64: 8, 8, 4>}, {pipeline_mode = #tpu.pipeline_mode<synchronous>, transform_indices = @transform_1, window_bounds = array<i64: 36, 128>}, {pipeline_mode = #tpu.pipeline_mode<synchronous>, transform_indices = @transform_2, window_bounds = array<i64: 1, 128>}, {pipeline_mode = #tpu.pipeline_mode<synchronous>, transform_indices = @transform_3, window_bounds = array<i64: 96, 256>}, {pipeline_mode = #tpu.pipeline_mode<synchronous>, transform_indices = @transform_4, window_bounds = array<i64: 1, 256>}, {pipeline_mode = #tpu.pipeline_mode<synchronous>, transform_indices = @transform_5, window_bounds = array<i64: 192, 512>}, {pipeline_mode = #tpu.pipeline_mode<synchronous>, transform_indices = @transform_6, window_bounds = array<i64: 1, 512>}, {transform_indices = @transform_7, window_bounds = array<i64: 8, 8, 128>}]} {
    %c0_i32 = arith.constant 0 : i32
    %0 = arith.cmpi eq, %arg1, %c0_i32 : i32
    %1 = arith.extui %0 : i1 to i32
    %c0_i32_0 = arith.constant 0 : i32
    %2 = arith.cmpi ne, %1, %c0_i32_0 : i32
    scf.if %2 {
      %cst_164 = arith.constant 0.000000e+00 : f32
      %755 = vector.broadcast %cst_164 : f32 to vector<8x32xf32>
      %c0_165 = arith.constant 0 : index
      %c0_166 = arith.constant 0 : index
      %756 = vector.load %arg10[%c0_165, %c0_166] : memref<8x32xf32, #tpu.memory_space<vmem>>, vector<8x32xf32>
      tpu.vector_store %arg10[%c0_165, %c0_166], %755 {strides = array<i32>} : memref<8x32xf32, #tpu.memory_space<vmem>>, vector<8x32xf32>,
      %cst_167 = arith.constant 0.000000e+00 : f32
      %757 = vector.broadcast %cst_167 : f32 to vector<8x32xf32>
      %c0_168 = arith.constant 0 : index
      %c0_169 = arith.constant 0 : index
      %758 = vector.load %arg11[%c0_168, %c0_169] : memref<8x32xf32, #tpu.memory_space<vmem>>, vector<8x32xf32>
      tpu.vector_store %arg11[%c0_168, %c0_169], %757 {strides = array<i32>} : memref<8x32xf32, #tpu.memory_space<vmem>>, vector<8x32xf32>,
      %cst_170 = arith.constant 0.000000e+00 : f32
      %759 = vector.broadcast %cst_170 : f32 to vector<8x64xf32>
      %c0_171 = arith.constant 0 : index
      %c0_172 = arith.constant 0 : index
      %760 = vector.load %arg12[%c0_171, %c0_172] : memref<8x64xf32, #tpu.memory_space<vmem>>, vector<8x64xf32>
      tpu.vector_store %arg12[%c0_171, %c0_172], %759 {strides = array<i32>} : memref<8x64xf32, #tpu.memory_space<vmem>>, vector<8x64xf32>,
      %cst_173 = arith.constant 0.000000e+00 : f32
      %761 = vector.broadcast %cst_173 : f32 to vector<8x64xf32>
      %c0_174 = arith.constant 0 : index
      %c0_175 = arith.constant 0 : index
      %762 = vector.load %arg13[%c0_174, %c0_175] : memref<8x64xf32, #tpu.memory_space<vmem>>, vector<8x64xf32>
      tpu.vector_store %arg13[%c0_174, %c0_175], %761 {strides = array<i32>} : memref<8x64xf32, #tpu.memory_space<vmem>>, vector<8x64xf32>,
      %cst_176 = arith.constant 0.000000e+00 : f32
      %763 = vector.broadcast %cst_176 : f32 to vector<8x128xf32>
      %c0_177 = arith.constant 0 : index
      %c0_178 = arith.constant 0 : index
      %764 = vector.load %arg14[%c0_177, %c0_178] : memref<8x128xf32, #tpu.memory_space<vmem>>, vector<8x128xf32>
      tpu.vector_store %arg14[%c0_177, %c0_178], %763 {strides = array<i32>} : memref<8x128xf32, #tpu.memory_space<vmem>>, vector<8x128xf32>,
      %cst_179 = arith.constant 0.000000e+00 : f32
      %765 = vector.broadcast %cst_179 : f32 to vector<8x128xf32>
      %c0_180 = arith.constant 0 : index
      %c0_181 = arith.constant 0 : index
      %766 = vector.load %arg15[%c0_180, %c0_181] : memref<8x128xf32, #tpu.memory_space<vmem>>, vector<8x128xf32>
      tpu.vector_store %arg15[%c0_180, %c0_181], %765 {strides = array<i32>} : memref<8x128xf32, #tpu.memory_space<vmem>>, vector<8x128xf32>,
    } else {
    }
    %c0 = arith.constant 0 : index
    %c0_1 = arith.constant 0 : index
    %3 = vector.load %arg3[%c0, %c0_1] : memref<36x128xf32, #tpu.memory_space<vmem>>, vector<36x128xf32>
    %c0_2 = arith.constant 0 : index
    %c0_3 = arith.constant 0 : index
    %4 = vector.load %arg5[%c0_2, %c0_3] : memref<96x256xf32, #tpu.memory_space<vmem>>, vector<96x256xf32>
    %c0_4 = arith.constant 0 : index
    %c0_5 = arith.constant 0 : index
    %5 = vector.load %arg7[%c0_4, %c0_5] : memref<192x512xf32, #tpu.memory_space<vmem>>, vector<192x512xf32>
    %c0_6 = arith.constant 0 : index
    %c0_7 = arith.constant 0 : index
    %6 = vector.load %arg4[%c0_6, %c0_7] : memref<1x128xf32, #tpu.memory_space<vmem>>, vector<1x128xf32>
    %7 = vector.shape_cast %6 : vector<1x128xf32> to vector<1x128xf32>
    %8 = vector.broadcast %7 : vector<1x128xf32> to vector<8x128xf32>
    %c0_8 = arith.constant 0 : index
    %c0_9 = arith.constant 0 : index
    %9 = vector.load %arg6[%c0_8, %c0_9] : memref<1x256xf32, #tpu.memory_space<vmem>>, vector<1x256xf32>
    %10 = vector.shape_cast %9 : vector<1x256xf32> to vector<1x256xf32>
    %11 = vector.broadcast %10 : vector<1x256xf32> to vector<8x256xf32>
    %c0_10 = arith.constant 0 : index
    %c0_11 = arith.constant 0 : index
    %12 = vector.load %arg8[%c0_10, %c0_11] : memref<1x512xf32, #tpu.memory_space<vmem>>, vector<1x512xf32>
    %13 = vector.shape_cast %12 : vector<1x512xf32> to vector<1x512xf32>
    %14 = vector.broadcast %13 : vector<1x512xf32> to vector<8x512xf32>
    %c0_12 = arith.constant 0 : index
    %c0_13 = arith.constant 0 : index
    %15 = vector.load %arg10[%c0_12, %c0_13] : memref<8x32xf32, #tpu.memory_space<vmem>>, vector<8x32xf32>
    %c0_14 = arith.constant 0 : index
    %c0_15 = arith.constant 0 : index
    %16 = vector.load %arg11[%c0_14, %c0_15] : memref<8x32xf32, #tpu.memory_space<vmem>>, vector<8x32xf32>
    %c0_16 = arith.constant 0 : index
    %c0_17 = arith.constant 0 : index
    %17 = vector.load %arg12[%c0_16, %c0_17] : memref<8x64xf32, #tpu.memory_space<vmem>>, vector<8x64xf32>
    %c0_18 = arith.constant 0 : index
    %c0_19 = arith.constant 0 : index
    %18 = vector.load %arg13[%c0_18, %c0_19] : memref<8x64xf32, #tpu.memory_space<vmem>>, vector<8x64xf32>
    %c0_20 = arith.constant 0 : index
    %c0_21 = arith.constant 0 : index
    %19 = vector.load %arg14[%c0_20, %c0_21] : memref<8x128xf32, #tpu.memory_space<vmem>>, vector<8x128xf32>
    %c0_22 = arith.constant 0 : index
    %c0_23 = arith.constant 0 : index
    %20 = vector.load %arg15[%c0_22, %c0_23] : memref<8x128xf32, #tpu.memory_space<vmem>>, vector<8x128xf32>
    %c0_i32_24 = arith.constant 0 : i32
    %21 = arith.index_cast %c0_i32_24 : i32 to index
    %c0_25 = arith.constant 0 : index
    %c0_26 = arith.constant 0 : index
    %22 = vector.load %arg2[%21, %c0_25, %c0_26] : memref<8x8x4xf32, #tpu.memory_space<vmem>>, vector<1x8x4xf32>
    %23 = vector.shape_cast %22 : vector<1x8x4xf32> to vector<8x4xf32>
    %24 = tpu.concatenate %23, %15 in 1 : vector<8x4xf32>, vector<8x32xf32> -> vector<8x36xf32>
    %cst = arith.constant dense<0.000000e+00> : vector<8x128xf32>
    %25 = tpu.matmul %24, %3, %cst {dimension_numbers = #tpu.dot_dimension_numbers<[1], [0], [0], [1], [0, 0, 1, 1], [], []>} : vector<8x36xf32>, vector<36x128xf32>, vector<8x128xf32> -> vector<8x128xf32>
    %26 = arith.addf %25, %8 : vector<8x128xf32>
    %27 = vector.extract_strided_slice %26 {offsets = [0, 0], sizes = [8, 32], strides = [1, 1]} : vector<8x128xf32> to vector<8x32xf32>
    %28 = arith.negf %27 : vector<8x32xf32>
    %29 = math.exp %28 : vector<8x32xf32>
    %cst_27 = arith.constant 1.000000e+00 : f32
    %30 = vector.broadcast %cst_27 : f32 to vector<8x32xf32>
    %31 = arith.addf %30, %29 : vector<8x32xf32>
    %32 = arith.divf %30, %31 : vector<8x32xf32>
    %33 = vector.extract_strided_slice %26 {offsets = [0, 32], sizes = [8, 32], strides = [1, 1]} : vector<8x128xf32> to vector<8x32xf32>
    %34 = arith.negf %33 : vector<8x32xf32>
    %35 = math.exp %34 : vector<8x32xf32>
    %cst_28 = arith.constant 1.000000e+00 : f32
    %36 = vector.broadcast %cst_28 : f32 to vector<8x32xf32>
    %37 = arith.addf %36, %35 : vector<8x32xf32>
    %38 = arith.divf %36, %37 : vector<8x32xf32>
    %39 = vector.extract_strided_slice %26 {offsets = [0, 64], sizes = [8, 32], strides = [1, 1]} : vector<8x128xf32> to vector<8x32xf32>
    %40 = math.tanh %39 : vector<8x32xf32>
    %41 = vector.extract_strided_slice %26 {offsets = [0, 96], sizes = [8, 32], strides = [1, 1]} : vector<8x128xf32> to vector<8x32xf32>
    %42 = arith.negf %41 : vector<8x32xf32>
    %43 = math.exp %42 : vector<8x32xf32>
    %cst_29 = arith.constant 1.000000e+00 : f32
    %44 = vector.broadcast %cst_29 : f32 to vector<8x32xf32>
    %45 = arith.addf %44, %43 : vector<8x32xf32>
    %46 = arith.divf %44, %45 : vector<8x32xf32>
    %47 = arith.mulf %38, %16 : vector<8x32xf32>
    %48 = arith.mulf %32, %40 : vector<8x32xf32>
    %49 = arith.addf %47, %48 : vector<8x32xf32>
    %50 = math.tanh %49 : vector<8x32xf32>
    %51 = arith.mulf %46, %50 : vector<8x32xf32>
    %52 = tpu.concatenate %51, %17 in 1 : vector<8x32xf32>, vector<8x64xf32> -> vector<8x96xf32>
    %cst_30 = arith.constant dense<0.000000e+00> : vector<8x256xf32>
    %53 = tpu.matmul %52, %4, %cst_30 {dimension_numbers = #tpu.dot_dimension_numbers<[1], [0], [0], [1], [0, 0, 1, 1], [], []>} : vector<8x96xf32>, vector<96x256xf32>, vector<8x256xf32> -> vector<8x256xf32>
    %54 = arith.addf %53, %11 : vector<8x256xf32>
    %55 = vector.extract_strided_slice %54 {offsets = [0, 0], sizes = [8, 64], strides = [1, 1]} : vector<8x256xf32> to vector<8x64xf32>
    %56 = arith.negf %55 : vector<8x64xf32>
    %57 = math.exp %56 : vector<8x64xf32>
    %cst_31 = arith.constant 1.000000e+00 : f32
    %58 = vector.broadcast %cst_31 : f32 to vector<8x64xf32>
    %59 = arith.addf %58, %57 : vector<8x64xf32>
    %60 = arith.divf %58, %59 : vector<8x64xf32>
    %61 = vector.extract_strided_slice %54 {offsets = [0, 64], sizes = [8, 64], strides = [1, 1]} : vector<8x256xf32> to vector<8x64xf32>
    %62 = arith.negf %61 : vector<8x64xf32>
    %63 = math.exp %62 : vector<8x64xf32>
    %cst_32 = arith.constant 1.000000e+00 : f32
    %64 = vector.broadcast %cst_32 : f32 to vector<8x64xf32>
    %65 = arith.addf %64, %63 : vector<8x64xf32>
    %66 = arith.divf %64, %65 : vector<8x64xf32>
    %67 = vector.extract_strided_slice %54 {offsets = [0, 128], sizes = [8, 64], strides = [1, 1]} : vector<8x256xf32> to vector<8x64xf32>
    %68 = math.tanh %67 : vector<8x64xf32>
    %69 = vector.extract_strided_slice %54 {offsets = [0, 192], sizes = [8, 64], strides = [1, 1]} : vector<8x256xf32> to vector<8x64xf32>
    %70 = arith.negf %69 : vector<8x64xf32>
    %71 = math.exp %70 : vector<8x64xf32>
    %cst_33 = arith.constant 1.000000e+00 : f32
    %72 = vector.broadcast %cst_33 : f32 to vector<8x64xf32>
    %73 = arith.addf %72, %71 : vector<8x64xf32>
    %74 = arith.divf %72, %73 : vector<8x64xf32>
    %75 = arith.mulf %66, %18 : vector<8x64xf32>
    %76 = arith.mulf %60, %68 : vector<8x64xf32>
    %77 = arith.addf %75, %76 : vector<8x64xf32>
    %78 = math.tanh %77 : vector<8x64xf32>
    %79 = arith.mulf %74, %78 : vector<8x64xf32>
    %80 = tpu.concatenate %79, %19 in 1 : vector<8x64xf32>, vector<8x128xf32> -> vector<8x192xf32>
    %cst_34 = arith.constant dense<0.000000e+00> : vector<8x512xf32>
    %81 = tpu.matmul %80, %5, %cst_34 {dimension_numbers = #tpu.dot_dimension_numbers<[1], [0], [0], [1], [0, 0, 1, 1], [], []>} : vector<8x192xf32>, vector<192x512xf32>, vector<8x512xf32> -> vector<8x512xf32>
    %82 = arith.addf %81, %14 : vector<8x512xf32>
    %83 = vector.extract_strided_slice %82 {offsets = [0, 0], sizes = [8, 128], strides = [1, 1]} : vector<8x512xf32> to vector<8x128xf32>
    %84 = arith.negf %83 : vector<8x128xf32>
    %85 = math.exp %84 : vector<8x128xf32>
    %cst_35 = arith.constant 1.000000e+00 : f32
    %86 = vector.broadcast %cst_35 : f32 to vector<8x128xf32>
    %87 = arith.addf %86, %85 : vector<8x128xf32>
    %88 = arith.divf %86, %87 : vector<8x128xf32>
    %89 = vector.extract_strided_slice %82 {offsets = [0, 128], sizes = [8, 128], strides = [1, 1]} : vector<8x512xf32> to vector<8x128xf32>
    %90 = arith.negf %89 : vector<8x128xf32>
    %91 = math.exp %90 : vector<8x128xf32>
    %cst_36 = arith.constant 1.000000e+00 : f32
    %92 = vector.broadcast %cst_36 : f32 to vector<8x128xf32>
    %93 = arith.addf %92, %91 : vector<8x128xf32>
    %94 = arith.divf %92, %93 : vector<8x128xf32>
    %95 = vector.extract_strided_slice %82 {offsets = [0, 256], sizes = [8, 128], strides = [1, 1]} : vector<8x512xf32> to vector<8x128xf32>
    %96 = math.tanh %95 : vector<8x128xf32>
    %97 = vector.extract_strided_slice %82 {offsets = [0, 384], sizes = [8, 128], strides = [1, 1]} : vector<8x512xf32> to vector<8x128xf32>
    %98 = arith.negf %97 : vector<8x128xf32>
    %99 = math.exp %98 : vector<8x128xf32>
    %cst_37 = arith.constant 1.000000e+00 : f32
    %100 = vector.broadcast %cst_37 : f32 to vector<8x128xf32>
    %101 = arith.addf %100, %99 : vector<8x128xf32>
    %102 = arith.divf %100, %101 : vector<8x128xf32>
    %103 = arith.mulf %94, %20 : vector<8x128xf32>
    %104 = arith.mulf %88, %96 : vector<8x128xf32>
    %105 = arith.addf %103, %104 : vector<8x128xf32>
    %106 = math.tanh %105 : vector<8x128xf32>
    %107 = arith.mulf %102, %106 : vector<8x128xf32>
    %108 = arith.index_cast %c0_i32_24 : i32 to index
    %c0_38 = arith.constant 0 : index
    %c0_39 = arith.constant 0 : index
    %109 = vector.load %arg9[%108, %c0_38, %c0_39] : memref<8x8x128xf32, #tpu.memory_space<vmem>>, vector<1x8x128xf32>
    %110 = vector.shape_cast %109 : vector<1x8x128xf32> to vector<8x128xf32>
    %111 = vector.shape_cast %107 : vector<8x128xf32> to vector<1x8x128xf32>
    tpu.vector_store %arg9[%108, %c0_38, %c0_39], %111 {strides = array<i32>} : memref<8x8x128xf32, #tpu.memory_space<vmem>>, vector<1x8x128xf32>,
    %c1_i32 = arith.constant 1 : i32
    %112 = arith.index_cast %c1_i32 : i32 to index
    %c0_40 = arith.constant 0 : index
    %c0_41 = arith.constant 0 : index
    %113 = vector.load %arg2[%112, %c0_40, %c0_41] : memref<8x8x4xf32, #tpu.memory_space<vmem>>, vector<1x8x4xf32>
    %114 = vector.shape_cast %113 : vector<1x8x4xf32> to vector<8x4xf32>
    %115 = tpu.concatenate %114, %51 in 1 : vector<8x4xf32>, vector<8x32xf32> -> vector<8x36xf32>
    %cst_42 = arith.constant dense<0.000000e+00> : vector<8x128xf32>
    %116 = tpu.matmul %115, %3, %cst_42 {dimension_numbers = #tpu.dot_dimension_numbers<[1], [0], [0], [1], [0, 0, 1, 1], [], []>} : vector<8x36xf32>, vector<36x128xf32>, vector<8x128xf32> -> vector<8x128xf32>
    %117 = arith.addf %116, %8 : vector<8x128xf32>
    %118 = vector.extract_strided_slice %117 {offsets = [0, 0], sizes = [8, 32], strides = [1, 1]} : vector<8x128xf32> to vector<8x32xf32>
    %119 = arith.negf %118 : vector<8x32xf32>
    %120 = math.exp %119 : vector<8x32xf32>
    %cst_43 = arith.constant 1.000000e+00 : f32
    %121 = vector.broadcast %cst_43 : f32 to vector<8x32xf32>
    %122 = arith.addf %121, %120 : vector<8x32xf32>
    %123 = arith.divf %121, %122 : vector<8x32xf32>
    %124 = vector.extract_strided_slice %117 {offsets = [0, 32], sizes = [8, 32], strides = [1, 1]} : vector<8x128xf32> to vector<8x32xf32>
    %125 = arith.negf %124 : vector<8x32xf32>
    %126 = math.exp %125 : vector<8x32xf32>
    %cst_44 = arith.constant 1.000000e+00 : f32
    %127 = vector.broadcast %cst_44 : f32 to vector<8x32xf32>
    %128 = arith.addf %127, %126 : vector<8x32xf32>
    %129 = arith.divf %127, %128 : vector<8x32xf32>
    %130 = vector.extract_strided_slice %117 {offsets = [0, 64], sizes = [8, 32], strides = [1, 1]} : vector<8x128xf32> to vector<8x32xf32>
    %131 = math.tanh %130 : vector<8x32xf32>
    %132 = vector.extract_strided_slice %117 {offsets = [0, 96], sizes = [8, 32], strides = [1, 1]} : vector<8x128xf32> to vector<8x32xf32>
    %133 = arith.negf %132 : vector<8x32xf32>
    %134 = math.exp %133 : vector<8x32xf32>
    %cst_45 = arith.constant 1.000000e+00 : f32
    %135 = vector.broadcast %cst_45 : f32 to vector<8x32xf32>
    %136 = arith.addf %135, %134 : vector<8x32xf32>
    %137 = arith.divf %135, %136 : vector<8x32xf32>
    %138 = arith.mulf %129, %49 : vector<8x32xf32>
    %139 = arith.mulf %123, %131 : vector<8x32xf32>
    %140 = arith.addf %138, %139 : vector<8x32xf32>
    %141 = math.tanh %140 : vector<8x32xf32>
    %142 = arith.mulf %137, %141 : vector<8x32xf32>
    %143 = tpu.concatenate %142, %79 in 1 : vector<8x32xf32>, vector<8x64xf32> -> vector<8x96xf32>
    %cst_46 = arith.constant dense<0.000000e+00> : vector<8x256xf32>
    %144 = tpu.matmul %143, %4, %cst_46 {dimension_numbers = #tpu.dot_dimension_numbers<[1], [0], [0], [1], [0, 0, 1, 1], [], []>} : vector<8x96xf32>, vector<96x256xf32>, vector<8x256xf32> -> vector<8x256xf32>
    %145 = arith.addf %144, %11 : vector<8x256xf32>
    %146 = vector.extract_strided_slice %145 {offsets = [0, 0], sizes = [8, 64], strides = [1, 1]} : vector<8x256xf32> to vector<8x64xf32>
    %147 = arith.negf %146 : vector<8x64xf32>
    %148 = math.exp %147 : vector<8x64xf32>
    %cst_47 = arith.constant 1.000000e+00 : f32
    %149 = vector.broadcast %cst_47 : f32 to vector<8x64xf32>
    %150 = arith.addf %149, %148 : vector<8x64xf32>
    %151 = arith.divf %149, %150 : vector<8x64xf32>
    %152 = vector.extract_strided_slice %145 {offsets = [0, 64], sizes = [8, 64], strides = [1, 1]} : vector<8x256xf32> to vector<8x64xf32>
    %153 = arith.negf %152 : vector<8x64xf32>
    %154 = math.exp %153 : vector<8x64xf32>
    %cst_48 = arith.constant 1.000000e+00 : f32
    %155 = vector.broadcast %cst_48 : f32 to vector<8x64xf32>
    %156 = arith.addf %155, %154 : vector<8x64xf32>
    %157 = arith.divf %155, %156 : vector<8x64xf32>
    %158 = vector.extract_strided_slice %145 {offsets = [0, 128], sizes = [8, 64], strides = [1, 1]} : vector<8x256xf32> to vector<8x64xf32>
    %159 = math.tanh %158 : vector<8x64xf32>
    %160 = vector.extract_strided_slice %145 {offsets = [0, 192], sizes = [8, 64], strides = [1, 1]} : vector<8x256xf32> to vector<8x64xf32>
    %161 = arith.negf %160 : vector<8x64xf32>
    %162 = math.exp %161 : vector<8x64xf32>
    %cst_49 = arith.constant 1.000000e+00 : f32
    %163 = vector.broadcast %cst_49 : f32 to vector<8x64xf32>
    %164 = arith.addf %163, %162 : vector<8x64xf32>
    %165 = arith.divf %163, %164 : vector<8x64xf32>
    %166 = arith.mulf %157, %77 : vector<8x64xf32>
    %167 = arith.mulf %151, %159 : vector<8x64xf32>
    %168 = arith.addf %166, %167 : vector<8x64xf32>
    %169 = math.tanh %168 : vector<8x64xf32>
    %170 = arith.mulf %165, %169 : vector<8x64xf32>
    %171 = tpu.concatenate %170, %107 in 1 : vector<8x64xf32>, vector<8x128xf32> -> vector<8x192xf32>
    %cst_50 = arith.constant dense<0.000000e+00> : vector<8x512xf32>
    %172 = tpu.matmul %171, %5, %cst_50 {dimension_numbers = #tpu.dot_dimension_numbers<[1], [0], [0], [1], [0, 0, 1, 1], [], []>} : vector<8x192xf32>, vector<192x512xf32>, vector<8x512xf32> -> vector<8x512xf32>
    %173 = arith.addf %172, %14 : vector<8x512xf32>
    %174 = vector.extract_strided_slice %173 {offsets = [0, 0], sizes = [8, 128], strides = [1, 1]} : vector<8x512xf32> to vector<8x128xf32>
    %175 = arith.negf %174 : vector<8x128xf32>
    %176 = math.exp %175 : vector<8x128xf32>
    %cst_51 = arith.constant 1.000000e+00 : f32
    %177 = vector.broadcast %cst_51 : f32 to vector<8x128xf32>
    %178 = arith.addf %177, %176 : vector<8x128xf32>
    %179 = arith.divf %177, %178 : vector<8x128xf32>
    %180 = vector.extract_strided_slice %173 {offsets = [0, 128], sizes = [8, 128], strides = [1, 1]} : vector<8x512xf32> to vector<8x128xf32>
    %181 = arith.negf %180 : vector<8x128xf32>
    %182 = math.exp %181 : vector<8x128xf32>
    %cst_52 = arith.constant 1.000000e+00 : f32
    %183 = vector.broadcast %cst_52 : f32 to vector<8x128xf32>
    %184 = arith.addf %183, %182 : vector<8x128xf32>
    %185 = arith.divf %183, %184 : vector<8x128xf32>
    %186 = vector.extract_strided_slice %173 {offsets = [0, 256], sizes = [8, 128], strides = [1, 1]} : vector<8x512xf32> to vector<8x128xf32>
    %187 = math.tanh %186 : vector<8x128xf32>
    %188 = vector.extract_strided_slice %173 {offsets = [0, 384], sizes = [8, 128], strides = [1, 1]} : vector<8x512xf32> to vector<8x128xf32>
    %189 = arith.negf %188 : vector<8x128xf32>
    %190 = math.exp %189 : vector<8x128xf32>
    %cst_53 = arith.constant 1.000000e+00 : f32
    %191 = vector.broadcast %cst_53 : f32 to vector<8x128xf32>
    %192 = arith.addf %191, %190 : vector<8x128xf32>
    %193 = arith.divf %191, %192 : vector<8x128xf32>
    %194 = arith.mulf %185, %105 : vector<8x128xf32>
    %195 = arith.mulf %179, %187 : vector<8x128xf32>
    %196 = arith.addf %194, %195 : vector<8x128xf32>
    %197 = math.tanh %196 : vector<8x128xf32>
    %198 = arith.mulf %193, %197 : vector<8x128xf32>
    %199 = arith.index_cast %c1_i32 : i32 to index
    %c0_54 = arith.constant 0 : index
    %c0_55 = arith.constant 0 : index
    %200 = vector.load %arg9[%199, %c0_54, %c0_55] : memref<8x8x128xf32, #tpu.memory_space<vmem>>, vector<1x8x128xf32>
    %201 = vector.shape_cast %200 : vector<1x8x128xf32> to vector<8x128xf32>
    %202 = vector.shape_cast %198 : vector<8x128xf32> to vector<1x8x128xf32>
    tpu.vector_store %arg9[%199, %c0_54, %c0_55], %202 {strides = array<i32>} : memref<8x8x128xf32, #tpu.memory_space<vmem>>, vector<1x8x128xf32>,
    %c2_i32 = arith.constant 2 : i32
    %203 = arith.index_cast %c2_i32 : i32 to index
    %c0_56 = arith.constant 0 : index
    %c0_57 = arith.constant 0 : index
    %204 = vector.load %arg2[%203, %c0_56, %c0_57] : memref<8x8x4xf32, #tpu.memory_space<vmem>>, vector<1x8x4xf32>
    %205 = vector.shape_cast %204 : vector<1x8x4xf32> to vector<8x4xf32>
    %206 = tpu.concatenate %205, %142 in 1 : vector<8x4xf32>, vector<8x32xf32> -> vector<8x36xf32>
    %cst_58 = arith.constant dense<0.000000e+00> : vector<8x128xf32>
    %207 = tpu.matmul %206, %3, %cst_58 {dimension_numbers = #tpu.dot_dimension_numbers<[1], [0], [0], [1], [0, 0, 1, 1], [], []>} : vector<8x36xf32>, vector<36x128xf32>, vector<8x128xf32> -> vector<8x128xf32>
    %208 = arith.addf %207, %8 : vector<8x128xf32>
    %209 = vector.extract_strided_slice %208 {offsets = [0, 0], sizes = [8, 32], strides = [1, 1]} : vector<8x128xf32> to vector<8x32xf32>
    %210 = arith.negf %209 : vector<8x32xf32>
    %211 = math.exp %210 : vector<8x32xf32>
    %cst_59 = arith.constant 1.000000e+00 : f32
    %212 = vector.broadcast %cst_59 : f32 to vector<8x32xf32>
    %213 = arith.addf %212, %211 : vector<8x32xf32>
    %214 = arith.divf %212, %213 : vector<8x32xf32>
    %215 = vector.extract_strided_slice %208 {offsets = [0, 32], sizes = [8, 32], strides = [1, 1]} : vector<8x128xf32> to vector<8x32xf32>
    %216 = arith.negf %215 : vector<8x32xf32>
    %217 = math.exp %216 : vector<8x32xf32>
    %cst_60 = arith.constant 1.000000e+00 : f32
    %218 = vector.broadcast %cst_60 : f32 to vector<8x32xf32>
    %219 = arith.addf %218, %217 : vector<8x32xf32>
    %220 = arith.divf %218, %219 : vector<8x32xf32>
    %221 = vector.extract_strided_slice %208 {offsets = [0, 64], sizes = [8, 32], strides = [1, 1]} : vector<8x128xf32> to vector<8x32xf32>
    %222 = math.tanh %221 : vector<8x32xf32>
    %223 = vector.extract_strided_slice %208 {offsets = [0, 96], sizes = [8, 32], strides = [1, 1]} : vector<8x128xf32> to vector<8x32xf32>
    %224 = arith.negf %223 : vector<8x32xf32>
    %225 = math.exp %224 : vector<8x32xf32>
    %cst_61 = arith.constant 1.000000e+00 : f32
    %226 = vector.broadcast %cst_61 : f32 to vector<8x32xf32>
    %227 = arith.addf %226, %225 : vector<8x32xf32>
    %228 = arith.divf %226, %227 : vector<8x32xf32>
    %229 = arith.mulf %220, %140 : vector<8x32xf32>
    %230 = arith.mulf %214, %222 : vector<8x32xf32>
    %231 = arith.addf %229, %230 : vector<8x32xf32>
    %232 = math.tanh %231 : vector<8x32xf32>
    %233 = arith.mulf %228, %232 : vector<8x32xf32>
    %234 = tpu.concatenate %233, %170 in 1 : vector<8x32xf32>, vector<8x64xf32> -> vector<8x96xf32>
    %cst_62 = arith.constant dense<0.000000e+00> : vector<8x256xf32>
    %235 = tpu.matmul %234, %4, %cst_62 {dimension_numbers = #tpu.dot_dimension_numbers<[1], [0], [0], [1], [0, 0, 1, 1], [], []>} : vector<8x96xf32>, vector<96x256xf32>, vector<8x256xf32> -> vector<8x256xf32>
    %236 = arith.addf %235, %11 : vector<8x256xf32>
    %237 = vector.extract_strided_slice %236 {offsets = [0, 0], sizes = [8, 64], strides = [1, 1]} : vector<8x256xf32> to vector<8x64xf32>
    %238 = arith.negf %237 : vector<8x64xf32>
    %239 = math.exp %238 : vector<8x64xf32>
    %cst_63 = arith.constant 1.000000e+00 : f32
    %240 = vector.broadcast %cst_63 : f32 to vector<8x64xf32>
    %241 = arith.addf %240, %239 : vector<8x64xf32>
    %242 = arith.divf %240, %241 : vector<8x64xf32>
    %243 = vector.extract_strided_slice %236 {offsets = [0, 64], sizes = [8, 64], strides = [1, 1]} : vector<8x256xf32> to vector<8x64xf32>
    %244 = arith.negf %243 : vector<8x64xf32>
    %245 = math.exp %244 : vector<8x64xf32>
    %cst_64 = arith.constant 1.000000e+00 : f32
    %246 = vector.broadcast %cst_64 : f32 to vector<8x64xf32>
    %247 = arith.addf %246, %245 : vector<8x64xf32>
    %248 = arith.divf %246, %247 : vector<8x64xf32>
    %249 = vector.extract_strided_slice %236 {offsets = [0, 128], sizes = [8, 64], strides = [1, 1]} : vector<8x256xf32> to vector<8x64xf32>
    %250 = math.tanh %249 : vector<8x64xf32>
    %251 = vector.extract_strided_slice %236 {offsets = [0, 192], sizes = [8, 64], strides = [1, 1]} : vector<8x256xf32> to vector<8x64xf32>
    %252 = arith.negf %251 : vector<8x64xf32>
    %253 = math.exp %252 : vector<8x64xf32>
    %cst_65 = arith.constant 1.000000e+00 : f32
    %254 = vector.broadcast %cst_65 : f32 to vector<8x64xf32>
    %255 = arith.addf %254, %253 : vector<8x64xf32>
    %256 = arith.divf %254, %255 : vector<8x64xf32>
    %257 = arith.mulf %248, %168 : vector<8x64xf32>
    %258 = arith.mulf %242, %250 : vector<8x64xf32>
    %259 = arith.addf %257, %258 : vector<8x64xf32>
    %260 = math.tanh %259 : vector<8x64xf32>
    %261 = arith.mulf %256, %260 : vector<8x64xf32>
    %262 = tpu.concatenate %261, %198 in 1 : vector<8x64xf32>, vector<8x128xf32> -> vector<8x192xf32>
    %cst_66 = arith.constant dense<0.000000e+00> : vector<8x512xf32>
    %263 = tpu.matmul %262, %5, %cst_66 {dimension_numbers = #tpu.dot_dimension_numbers<[1], [0], [0], [1], [0, 0, 1, 1], [], []>} : vector<8x192xf32>, vector<192x512xf32>, vector<8x512xf32> -> vector<8x512xf32>
    %264 = arith.addf %263, %14 : vector<8x512xf32>
    %265 = vector.extract_strided_slice %264 {offsets = [0, 0], sizes = [8, 128], strides = [1, 1]} : vector<8x512xf32> to vector<8x128xf32>
    %266 = arith.negf %265 : vector<8x128xf32>
    %267 = math.exp %266 : vector<8x128xf32>
    %cst_67 = arith.constant 1.000000e+00 : f32
    %268 = vector.broadcast %cst_67 : f32 to vector<8x128xf32>
    %269 = arith.addf %268, %267 : vector<8x128xf32>
    %270 = arith.divf %268, %269 : vector<8x128xf32>
    %271 = vector.extract_strided_slice %264 {offsets = [0, 128], sizes = [8, 128], strides = [1, 1]} : vector<8x512xf32> to vector<8x128xf32>
    %272 = arith.negf %271 : vector<8x128xf32>
    %273 = math.exp %272 : vector<8x128xf32>
    %cst_68 = arith.constant 1.000000e+00 : f32
    %274 = vector.broadcast %cst_68 : f32 to vector<8x128xf32>
    %275 = arith.addf %274, %273 : vector<8x128xf32>
    %276 = arith.divf %274, %275 : vector<8x128xf32>
    %277 = vector.extract_strided_slice %264 {offsets = [0, 256], sizes = [8, 128], strides = [1, 1]} : vector<8x512xf32> to vector<8x128xf32>
    %278 = math.tanh %277 : vector<8x128xf32>
    %279 = vector.extract_strided_slice %264 {offsets = [0, 384], sizes = [8, 128], strides = [1, 1]} : vector<8x512xf32> to vector<8x128xf32>
    %280 = arith.negf %279 : vector<8x128xf32>
    %281 = math.exp %280 : vector<8x128xf32>
    %cst_69 = arith.constant 1.000000e+00 : f32
    %282 = vector.broadcast %cst_69 : f32 to vector<8x128xf32>
    %283 = arith.addf %282, %281 : vector<8x128xf32>
    %284 = arith.divf %282, %283 : vector<8x128xf32>
    %285 = arith.mulf %276, %196 : vector<8x128xf32>
    %286 = arith.mulf %270, %278 : vector<8x128xf32>
    %287 = arith.addf %285, %286 : vector<8x128xf32>
    %288 = math.tanh %287 : vector<8x128xf32>
    %289 = arith.mulf %284, %288 : vector<8x128xf32>
    %290 = arith.index_cast %c2_i32 : i32 to index
    %c0_70 = arith.constant 0 : index
    %c0_71 = arith.constant 0 : index
    %291 = vector.load %arg9[%290, %c0_70, %c0_71] : memref<8x8x128xf32, #tpu.memory_space<vmem>>, vector<1x8x128xf32>
    %292 = vector.shape_cast %291 : vector<1x8x128xf32> to vector<8x128xf32>
    %293 = vector.shape_cast %289 : vector<8x128xf32> to vector<1x8x128xf32>
    tpu.vector_store %arg9[%290, %c0_70, %c0_71], %293 {strides = array<i32>} : memref<8x8x128xf32, #tpu.memory_space<vmem>>, vector<1x8x128xf32>,
    %c3_i32 = arith.constant 3 : i32
    %294 = arith.index_cast %c3_i32 : i32 to index
    %c0_72 = arith.constant 0 : index
    %c0_73 = arith.constant 0 : index
    %295 = vector.load %arg2[%294, %c0_72, %c0_73] : memref<8x8x4xf32, #tpu.memory_space<vmem>>, vector<1x8x4xf32>
    %296 = vector.shape_cast %295 : vector<1x8x4xf32> to vector<8x4xf32>
    %297 = tpu.concatenate %296, %233 in 1 : vector<8x4xf32>, vector<8x32xf32> -> vector<8x36xf32>
    %cst_74 = arith.constant dense<0.000000e+00> : vector<8x128xf32>
    %298 = tpu.matmul %297, %3, %cst_74 {dimension_numbers = #tpu.dot_dimension_numbers<[1], [0], [0], [1], [0, 0, 1, 1], [], []>} : vector<8x36xf32>, vector<36x128xf32>, vector<8x128xf32> -> vector<8x128xf32>
    %299 = arith.addf %298, %8 : vector<8x128xf32>
    %300 = vector.extract_strided_slice %299 {offsets = [0, 0], sizes = [8, 32], strides = [1, 1]} : vector<8x128xf32> to vector<8x32xf32>
    %301 = arith.negf %300 : vector<8x32xf32>
    %302 = math.exp %301 : vector<8x32xf32>
    %cst_75 = arith.constant 1.000000e+00 : f32
    %303 = vector.broadcast %cst_75 : f32 to vector<8x32xf32>
    %304 = arith.addf %303, %302 : vector<8x32xf32>
    %305 = arith.divf %303, %304 : vector<8x32xf32>
    %306 = vector.extract_strided_slice %299 {offsets = [0, 32], sizes = [8, 32], strides = [1, 1]} : vector<8x128xf32> to vector<8x32xf32>
    %307 = arith.negf %306 : vector<8x32xf32>
    %308 = math.exp %307 : vector<8x32xf32>
    %cst_76 = arith.constant 1.000000e+00 : f32
    %309 = vector.broadcast %cst_76 : f32 to vector<8x32xf32>
    %310 = arith.addf %309, %308 : vector<8x32xf32>
    %311 = arith.divf %309, %310 : vector<8x32xf32>
    %312 = vector.extract_strided_slice %299 {offsets = [0, 64], sizes = [8, 32], strides = [1, 1]} : vector<8x128xf32> to vector<8x32xf32>
    %313 = math.tanh %312 : vector<8x32xf32>
    %314 = vector.extract_strided_slice %299 {offsets = [0, 96], sizes = [8, 32], strides = [1, 1]} : vector<8x128xf32> to vector<8x32xf32>
    %315 = arith.negf %314 : vector<8x32xf32>
    %316 = math.exp %315 : vector<8x32xf32>
    %cst_77 = arith.constant 1.000000e+00 : f32
    %317 = vector.broadcast %cst_77 : f32 to vector<8x32xf32>
    %318 = arith.addf %317, %316 : vector<8x32xf32>
    %319 = arith.divf %317, %318 : vector<8x32xf32>
    %320 = arith.mulf %311, %231 : vector<8x32xf32>
    %321 = arith.mulf %305, %313 : vector<8x32xf32>
    %322 = arith.addf %320, %321 : vector<8x32xf32>
    %323 = math.tanh %322 : vector<8x32xf32>
    %324 = arith.mulf %319, %323 : vector<8x32xf32>
    %325 = tpu.concatenate %324, %261 in 1 : vector<8x32xf32>, vector<8x64xf32> -> vector<8x96xf32>
    %cst_78 = arith.constant dense<0.000000e+00> : vector<8x256xf32>
    %326 = tpu.matmul %325, %4, %cst_78 {dimension_numbers = #tpu.dot_dimension_numbers<[1], [0], [0], [1], [0, 0, 1, 1], [], []>} : vector<8x96xf32>, vector<96x256xf32>, vector<8x256xf32> -> vector<8x256xf32>
    %327 = arith.addf %326, %11 : vector<8x256xf32>
    %328 = vector.extract_strided_slice %327 {offsets = [0, 0], sizes = [8, 64], strides = [1, 1]} : vector<8x256xf32> to vector<8x64xf32>
    %329 = arith.negf %328 : vector<8x64xf32>
    %330 = math.exp %329 : vector<8x64xf32>
    %cst_79 = arith.constant 1.000000e+00 : f32
    %331 = vector.broadcast %cst_79 : f32 to vector<8x64xf32>
    %332 = arith.addf %331, %330 : vector<8x64xf32>
    %333 = arith.divf %331, %332 : vector<8x64xf32>
    %334 = vector.extract_strided_slice %327 {offsets = [0, 64], sizes = [8, 64], strides = [1, 1]} : vector<8x256xf32> to vector<8x64xf32>
    %335 = arith.negf %334 : vector<8x64xf32>
    %336 = math.exp %335 : vector<8x64xf32>
    %cst_80 = arith.constant 1.000000e+00 : f32
    %337 = vector.broadcast %cst_80 : f32 to vector<8x64xf32>
    %338 = arith.addf %337, %336 : vector<8x64xf32>
    %339 = arith.divf %337, %338 : vector<8x64xf32>
    %340 = vector.extract_strided_slice %327 {offsets = [0, 128], sizes = [8, 64], strides = [1, 1]} : vector<8x256xf32> to vector<8x64xf32>
    %341 = math.tanh %340 : vector<8x64xf32>
    %342 = vector.extract_strided_slice %327 {offsets = [0, 192], sizes = [8, 64], strides = [1, 1]} : vector<8x256xf32> to vector<8x64xf32>
    %343 = arith.negf %342 : vector<8x64xf32>
    %344 = math.exp %343 : vector<8x64xf32>
    %cst_81 = arith.constant 1.000000e+00 : f32
    %345 = vector.broadcast %cst_81 : f32 to vector<8x64xf32>
    %346 = arith.addf %345, %344 : vector<8x64xf32>
    %347 = arith.divf %345, %346 : vector<8x64xf32>
    %348 = arith.mulf %339, %259 : vector<8x64xf32>
    %349 = arith.mulf %333, %341 : vector<8x64xf32>
    %350 = arith.addf %348, %349 : vector<8x64xf32>
    %351 = math.tanh %350 : vector<8x64xf32>
    %352 = arith.mulf %347, %351 : vector<8x64xf32>
    %353 = tpu.concatenate %352, %289 in 1 : vector<8x64xf32>, vector<8x128xf32> -> vector<8x192xf32>
    %cst_82 = arith.constant dense<0.000000e+00> : vector<8x512xf32>
    %354 = tpu.matmul %353, %5, %cst_82 {dimension_numbers = #tpu.dot_dimension_numbers<[1], [0], [0], [1], [0, 0, 1, 1], [], []>} : vector<8x192xf32>, vector<192x512xf32>, vector<8x512xf32> -> vector<8x512xf32>
    %355 = arith.addf %354, %14 : vector<8x512xf32>
    %356 = vector.extract_strided_slice %355 {offsets = [0, 0], sizes = [8, 128], strides = [1, 1]} : vector<8x512xf32> to vector<8x128xf32>
    %357 = arith.negf %356 : vector<8x128xf32>
    %358 = math.exp %357 : vector<8x128xf32>
    %cst_83 = arith.constant 1.000000e+00 : f32
    %359 = vector.broadcast %cst_83 : f32 to vector<8x128xf32>
    %360 = arith.addf %359, %358 : vector<8x128xf32>
    %361 = arith.divf %359, %360 : vector<8x128xf32>
    %362 = vector.extract_strided_slice %355 {offsets = [0, 128], sizes = [8, 128], strides = [1, 1]} : vector<8x512xf32> to vector<8x128xf32>
    %363 = arith.negf %362 : vector<8x128xf32>
    %364 = math.exp %363 : vector<8x128xf32>
    %cst_84 = arith.constant 1.000000e+00 : f32
    %365 = vector.broadcast %cst_84 : f32 to vector<8x128xf32>
    %366 = arith.addf %365, %364 : vector<8x128xf32>
    %367 = arith.divf %365, %366 : vector<8x128xf32>
    %368 = vector.extract_strided_slice %355 {offsets = [0, 256], sizes = [8, 128], strides = [1, 1]} : vector<8x512xf32> to vector<8x128xf32>
    %369 = math.tanh %368 : vector<8x128xf32>
    %370 = vector.extract_strided_slice %355 {offsets = [0, 384], sizes = [8, 128], strides = [1, 1]} : vector<8x512xf32> to vector<8x128xf32>
    %371 = arith.negf %370 : vector<8x128xf32>
    %372 = math.exp %371 : vector<8x128xf32>
    %cst_85 = arith.constant 1.000000e+00 : f32
    %373 = vector.broadcast %cst_85 : f32 to vector<8x128xf32>
    %374 = arith.addf %373, %372 : vector<8x128xf32>
    %375 = arith.divf %373, %374 : vector<8x128xf32>
    %376 = arith.mulf %367, %287 : vector<8x128xf32>
    %377 = arith.mulf %361, %369 : vector<8x128xf32>
    %378 = arith.addf %376, %377 : vector<8x128xf32>
    %379 = math.tanh %378 : vector<8x128xf32>
    %380 = arith.mulf %375, %379 : vector<8x128xf32>
    %381 = arith.index_cast %c3_i32 : i32 to index
    %c0_86 = arith.constant 0 : index
    %c0_87 = arith.constant 0 : index
    %382 = vector.load %arg9[%381, %c0_86, %c0_87] : memref<8x8x128xf32, #tpu.memory_space<vmem>>, vector<1x8x128xf32>
    %383 = vector.shape_cast %382 : vector<1x8x128xf32> to vector<8x128xf32>
    %384 = vector.shape_cast %380 : vector<8x128xf32> to vector<1x8x128xf32>
    tpu.vector_store %arg9[%381, %c0_86, %c0_87], %384 {strides = array<i32>} : memref<8x8x128xf32, #tpu.memory_space<vmem>>, vector<1x8x128xf32>,
    %c4_i32 = arith.constant 4 : i32
    %385 = arith.index_cast %c4_i32 : i32 to index
    %c0_88 = arith.constant 0 : index
    %c0_89 = arith.constant 0 : index
    %386 = vector.load %arg2[%385, %c0_88, %c0_89] : memref<8x8x4xf32, #tpu.memory_space<vmem>>, vector<1x8x4xf32>
    %387 = vector.shape_cast %386 : vector<1x8x4xf32> to vector<8x4xf32>
    %388 = tpu.concatenate %387, %324 in 1 : vector<8x4xf32>, vector<8x32xf32> -> vector<8x36xf32>
    %cst_90 = arith.constant dense<0.000000e+00> : vector<8x128xf32>
    %389 = tpu.matmul %388, %3, %cst_90 {dimension_numbers = #tpu.dot_dimension_numbers<[1], [0], [0], [1], [0, 0, 1, 1], [], []>} : vector<8x36xf32>, vector<36x128xf32>, vector<8x128xf32> -> vector<8x128xf32>
    %390 = arith.addf %389, %8 : vector<8x128xf32>
    %391 = vector.extract_strided_slice %390 {offsets = [0, 0], sizes = [8, 32], strides = [1, 1]} : vector<8x128xf32> to vector<8x32xf32>
    %392 = arith.negf %391 : vector<8x32xf32>
    %393 = math.exp %392 : vector<8x32xf32>
    %cst_91 = arith.constant 1.000000e+00 : f32
    %394 = vector.broadcast %cst_91 : f32 to vector<8x32xf32>
    %395 = arith.addf %394, %393 : vector<8x32xf32>
    %396 = arith.divf %394, %395 : vector<8x32xf32>
    %397 = vector.extract_strided_slice %390 {offsets = [0, 32], sizes = [8, 32], strides = [1, 1]} : vector<8x128xf32> to vector<8x32xf32>
    %398 = arith.negf %397 : vector<8x32xf32>
    %399 = math.exp %398 : vector<8x32xf32>
    %cst_92 = arith.constant 1.000000e+00 : f32
    %400 = vector.broadcast %cst_92 : f32 to vector<8x32xf32>
    %401 = arith.addf %400, %399 : vector<8x32xf32>
    %402 = arith.divf %400, %401 : vector<8x32xf32>
    %403 = vector.extract_strided_slice %390 {offsets = [0, 64], sizes = [8, 32], strides = [1, 1]} : vector<8x128xf32> to vector<8x32xf32>
    %404 = math.tanh %403 : vector<8x32xf32>
    %405 = vector.extract_strided_slice %390 {offsets = [0, 96], sizes = [8, 32], strides = [1, 1]} : vector<8x128xf32> to vector<8x32xf32>
    %406 = arith.negf %405 : vector<8x32xf32>
    %407 = math.exp %406 : vector<8x32xf32>
    %cst_93 = arith.constant 1.000000e+00 : f32
    %408 = vector.broadcast %cst_93 : f32 to vector<8x32xf32>
    %409 = arith.addf %408, %407 : vector<8x32xf32>
    %410 = arith.divf %408, %409 : vector<8x32xf32>
    %411 = arith.mulf %402, %322 : vector<8x32xf32>
    %412 = arith.mulf %396, %404 : vector<8x32xf32>
    %413 = arith.addf %411, %412 : vector<8x32xf32>
    %414 = math.tanh %413 : vector<8x32xf32>
    %415 = arith.mulf %410, %414 : vector<8x32xf32>
    %416 = tpu.concatenate %415, %352 in 1 : vector<8x32xf32>, vector<8x64xf32> -> vector<8x96xf32>
    %cst_94 = arith.constant dense<0.000000e+00> : vector<8x256xf32>
    %417 = tpu.matmul %416, %4, %cst_94 {dimension_numbers = #tpu.dot_dimension_numbers<[1], [0], [0], [1], [0, 0, 1, 1], [], []>} : vector<8x96xf32>, vector<96x256xf32>, vector<8x256xf32> -> vector<8x256xf32>
    %418 = arith.addf %417, %11 : vector<8x256xf32>
    %419 = vector.extract_strided_slice %418 {offsets = [0, 0], sizes = [8, 64], strides = [1, 1]} : vector<8x256xf32> to vector<8x64xf32>
    %420 = arith.negf %419 : vector<8x64xf32>
    %421 = math.exp %420 : vector<8x64xf32>
    %cst_95 = arith.constant 1.000000e+00 : f32
    %422 = vector.broadcast %cst_95 : f32 to vector<8x64xf32>
    %423 = arith.addf %422, %421 : vector<8x64xf32>
    %424 = arith.divf %422, %423 : vector<8x64xf32>
    %425 = vector.extract_strided_slice %418 {offsets = [0, 64], sizes = [8, 64], strides = [1, 1]} : vector<8x256xf32> to vector<8x64xf32>
    %426 = arith.negf %425 : vector<8x64xf32>
    %427 = math.exp %426 : vector<8x64xf32>
    %cst_96 = arith.constant 1.000000e+00 : f32
    %428 = vector.broadcast %cst_96 : f32 to vector<8x64xf32>
    %429 = arith.addf %428, %427 : vector<8x64xf32>
    %430 = arith.divf %428, %429 : vector<8x64xf32>
    %431 = vector.extract_strided_slice %418 {offsets = [0, 128], sizes = [8, 64], strides = [1, 1]} : vector<8x256xf32> to vector<8x64xf32>
    %432 = math.tanh %431 : vector<8x64xf32>
    %433 = vector.extract_strided_slice %418 {offsets = [0, 192], sizes = [8, 64], strides = [1, 1]} : vector<8x256xf32> to vector<8x64xf32>
    %434 = arith.negf %433 : vector<8x64xf32>
    %435 = math.exp %434 : vector<8x64xf32>
    %cst_97 = arith.constant 1.000000e+00 : f32
    %436 = vector.broadcast %cst_97 : f32 to vector<8x64xf32>
    %437 = arith.addf %436, %435 : vector<8x64xf32>
    %438 = arith.divf %436, %437 : vector<8x64xf32>
    %439 = arith.mulf %430, %350 : vector<8x64xf32>
    %440 = arith.mulf %424, %432 : vector<8x64xf32>
    %441 = arith.addf %439, %440 : vector<8x64xf32>
    %442 = math.tanh %441 : vector<8x64xf32>
    %443 = arith.mulf %438, %442 : vector<8x64xf32>
    %444 = tpu.concatenate %443, %380 in 1 : vector<8x64xf32>, vector<8x128xf32> -> vector<8x192xf32>
    %cst_98 = arith.constant dense<0.000000e+00> : vector<8x512xf32>
    %445 = tpu.matmul %444, %5, %cst_98 {dimension_numbers = #tpu.dot_dimension_numbers<[1], [0], [0], [1], [0, 0, 1, 1], [], []>} : vector<8x192xf32>, vector<192x512xf32>, vector<8x512xf32> -> vector<8x512xf32>
    %446 = arith.addf %445, %14 : vector<8x512xf32>
    %447 = vector.extract_strided_slice %446 {offsets = [0, 0], sizes = [8, 128], strides = [1, 1]} : vector<8x512xf32> to vector<8x128xf32>
    %448 = arith.negf %447 : vector<8x128xf32>
    %449 = math.exp %448 : vector<8x128xf32>
    %cst_99 = arith.constant 1.000000e+00 : f32
    %450 = vector.broadcast %cst_99 : f32 to vector<8x128xf32>
    %451 = arith.addf %450, %449 : vector<8x128xf32>
    %452 = arith.divf %450, %451 : vector<8x128xf32>
    %453 = vector.extract_strided_slice %446 {offsets = [0, 128], sizes = [8, 128], strides = [1, 1]} : vector<8x512xf32> to vector<8x128xf32>
    %454 = arith.negf %453 : vector<8x128xf32>
    %455 = math.exp %454 : vector<8x128xf32>
    %cst_100 = arith.constant 1.000000e+00 : f32
    %456 = vector.broadcast %cst_100 : f32 to vector<8x128xf32>
    %457 = arith.addf %456, %455 : vector<8x128xf32>
    %458 = arith.divf %456, %457 : vector<8x128xf32>
    %459 = vector.extract_strided_slice %446 {offsets = [0, 256], sizes = [8, 128], strides = [1, 1]} : vector<8x512xf32> to vector<8x128xf32>
    %460 = math.tanh %459 : vector<8x128xf32>
    %461 = vector.extract_strided_slice %446 {offsets = [0, 384], sizes = [8, 128], strides = [1, 1]} : vector<8x512xf32> to vector<8x128xf32>
    %462 = arith.negf %461 : vector<8x128xf32>
    %463 = math.exp %462 : vector<8x128xf32>
    %cst_101 = arith.constant 1.000000e+00 : f32
    %464 = vector.broadcast %cst_101 : f32 to vector<8x128xf32>
    %465 = arith.addf %464, %463 : vector<8x128xf32>
    %466 = arith.divf %464, %465 : vector<8x128xf32>
    %467 = arith.mulf %458, %378 : vector<8x128xf32>
    %468 = arith.mulf %452, %460 : vector<8x128xf32>
    %469 = arith.addf %467, %468 : vector<8x128xf32>
    %470 = math.tanh %469 : vector<8x128xf32>
    %471 = arith.mulf %466, %470 : vector<8x128xf32>
    %472 = arith.index_cast %c4_i32 : i32 to index
    %c0_102 = arith.constant 0 : index
    %c0_103 = arith.constant 0 : index
    %473 = vector.load %arg9[%472, %c0_102, %c0_103] : memref<8x8x128xf32, #tpu.memory_space<vmem>>, vector<1x8x128xf32>
    %474 = vector.shape_cast %473 : vector<1x8x128xf32> to vector<8x128xf32>
    %475 = vector.shape_cast %471 : vector<8x128xf32> to vector<1x8x128xf32>
    tpu.vector_store %arg9[%472, %c0_102, %c0_103], %475 {strides = array<i32>} : memref<8x8x128xf32, #tpu.memory_space<vmem>>, vector<1x8x128xf32>,
    %c5_i32 = arith.constant 5 : i32
    %476 = arith.index_cast %c5_i32 : i32 to index
    %c0_104 = arith.constant 0 : index
    %c0_105 = arith.constant 0 : index
    %477 = vector.load %arg2[%476, %c0_104, %c0_105] : memref<8x8x4xf32, #tpu.memory_space<vmem>>, vector<1x8x4xf32>
    %478 = vector.shape_cast %477 : vector<1x8x4xf32> to vector<8x4xf32>
    %479 = tpu.concatenate %478, %415 in 1 : vector<8x4xf32>, vector<8x32xf32> -> vector<8x36xf32>
    %cst_106 = arith.constant dense<0.000000e+00> : vector<8x128xf32>
    %480 = tpu.matmul %479, %3, %cst_106 {dimension_numbers = #tpu.dot_dimension_numbers<[1], [0], [0], [1], [0, 0, 1, 1], [], []>} : vector<8x36xf32>, vector<36x128xf32>, vector<8x128xf32> -> vector<8x128xf32>
    %481 = arith.addf %480, %8 : vector<8x128xf32>
    %482 = vector.extract_strided_slice %481 {offsets = [0, 0], sizes = [8, 32], strides = [1, 1]} : vector<8x128xf32> to vector<8x32xf32>
    %483 = arith.negf %482 : vector<8x32xf32>
    %484 = math.exp %483 : vector<8x32xf32>
    %cst_107 = arith.constant 1.000000e+00 : f32
    %485 = vector.broadcast %cst_107 : f32 to vector<8x32xf32>
    %486 = arith.addf %485, %484 : vector<8x32xf32>
    %487 = arith.divf %485, %486 : vector<8x32xf32>
    %488 = vector.extract_strided_slice %481 {offsets = [0, 32], sizes = [8, 32], strides = [1, 1]} : vector<8x128xf32> to vector<8x32xf32>
    %489 = arith.negf %488 : vector<8x32xf32>
    %490 = math.exp %489 : vector<8x32xf32>
    %cst_108 = arith.constant 1.000000e+00 : f32
    %491 = vector.broadcast %cst_108 : f32 to vector<8x32xf32>
    %492 = arith.addf %491, %490 : vector<8x32xf32>
    %493 = arith.divf %491, %492 : vector<8x32xf32>
    %494 = vector.extract_strided_slice %481 {offsets = [0, 64], sizes = [8, 32], strides = [1, 1]} : vector<8x128xf32> to vector<8x32xf32>
    %495 = math.tanh %494 : vector<8x32xf32>
    %496 = vector.extract_strided_slice %481 {offsets = [0, 96], sizes = [8, 32], strides = [1, 1]} : vector<8x128xf32> to vector<8x32xf32>
    %497 = arith.negf %496 : vector<8x32xf32>
    %498 = math.exp %497 : vector<8x32xf32>
    %cst_109 = arith.constant 1.000000e+00 : f32
    %499 = vector.broadcast %cst_109 : f32 to vector<8x32xf32>
    %500 = arith.addf %499, %498 : vector<8x32xf32>
    %501 = arith.divf %499, %500 : vector<8x32xf32>
    %502 = arith.mulf %493, %413 : vector<8x32xf32>
    %503 = arith.mulf %487, %495 : vector<8x32xf32>
    %504 = arith.addf %502, %503 : vector<8x32xf32>
    %505 = math.tanh %504 : vector<8x32xf32>
    %506 = arith.mulf %501, %505 : vector<8x32xf32>
    %507 = tpu.concatenate %506, %443 in 1 : vector<8x32xf32>, vector<8x64xf32> -> vector<8x96xf32>
    %cst_110 = arith.constant dense<0.000000e+00> : vector<8x256xf32>
    %508 = tpu.matmul %507, %4, %cst_110 {dimension_numbers = #tpu.dot_dimension_numbers<[1], [0], [0], [1], [0, 0, 1, 1], [], []>} : vector<8x96xf32>, vector<96x256xf32>, vector<8x256xf32> -> vector<8x256xf32>
    %509 = arith.addf %508, %11 : vector<8x256xf32>
    %510 = vector.extract_strided_slice %509 {offsets = [0, 0], sizes = [8, 64], strides = [1, 1]} : vector<8x256xf32> to vector<8x64xf32>
    %511 = arith.negf %510 : vector<8x64xf32>
    %512 = math.exp %511 : vector<8x64xf32>
    %cst_111 = arith.constant 1.000000e+00 : f32
    %513 = vector.broadcast %cst_111 : f32 to vector<8x64xf32>
    %514 = arith.addf %513, %512 : vector<8x64xf32>
    %515 = arith.divf %513, %514 : vector<8x64xf32>
    %516 = vector.extract_strided_slice %509 {offsets = [0, 64], sizes = [8, 64], strides = [1, 1]} : vector<8x256xf32> to vector<8x64xf32>
    %517 = arith.negf %516 : vector<8x64xf32>
    %518 = math.exp %517 : vector<8x64xf32>
    %cst_112 = arith.constant 1.000000e+00 : f32
    %519 = vector.broadcast %cst_112 : f32 to vector<8x64xf32>
    %520 = arith.addf %519, %518 : vector<8x64xf32>
    %521 = arith.divf %519, %520 : vector<8x64xf32>
    %522 = vector.extract_strided_slice %509 {offsets = [0, 128], sizes = [8, 64], strides = [1, 1]} : vector<8x256xf32> to vector<8x64xf32>
    %523 = math.tanh %522 : vector<8x64xf32>
    %524 = vector.extract_strided_slice %509 {offsets = [0, 192], sizes = [8, 64], strides = [1, 1]} : vector<8x256xf32> to vector<8x64xf32>
    %525 = arith.negf %524 : vector<8x64xf32>
    %526 = math.exp %525 : vector<8x64xf32>
    %cst_113 = arith.constant 1.000000e+00 : f32
    %527 = vector.broadcast %cst_113 : f32 to vector<8x64xf32>
    %528 = arith.addf %527, %526 : vector<8x64xf32>
    %529 = arith.divf %527, %528 : vector<8x64xf32>
    %530 = arith.mulf %521, %441 : vector<8x64xf32>
    %531 = arith.mulf %515, %523 : vector<8x64xf32>
    %532 = arith.addf %530, %531 : vector<8x64xf32>
    %533 = math.tanh %532 : vector<8x64xf32>
    %534 = arith.mulf %529, %533 : vector<8x64xf32>
    %535 = tpu.concatenate %534, %471 in 1 : vector<8x64xf32>, vector<8x128xf32> -> vector<8x192xf32>
    %cst_114 = arith.constant dense<0.000000e+00> : vector<8x512xf32>
    %536 = tpu.matmul %535, %5, %cst_114 {dimension_numbers = #tpu.dot_dimension_numbers<[1], [0], [0], [1], [0, 0, 1, 1], [], []>} : vector<8x192xf32>, vector<192x512xf32>, vector<8x512xf32> -> vector<8x512xf32>
    %537 = arith.addf %536, %14 : vector<8x512xf32>
    %538 = vector.extract_strided_slice %537 {offsets = [0, 0], sizes = [8, 128], strides = [1, 1]} : vector<8x512xf32> to vector<8x128xf32>
    %539 = arith.negf %538 : vector<8x128xf32>
    %540 = math.exp %539 : vector<8x128xf32>
    %cst_115 = arith.constant 1.000000e+00 : f32
    %541 = vector.broadcast %cst_115 : f32 to vector<8x128xf32>
    %542 = arith.addf %541, %540 : vector<8x128xf32>
    %543 = arith.divf %541, %542 : vector<8x128xf32>
    %544 = vector.extract_strided_slice %537 {offsets = [0, 128], sizes = [8, 128], strides = [1, 1]} : vector<8x512xf32> to vector<8x128xf32>
    %545 = arith.negf %544 : vector<8x128xf32>
    %546 = math.exp %545 : vector<8x128xf32>
    %cst_116 = arith.constant 1.000000e+00 : f32
    %547 = vector.broadcast %cst_116 : f32 to vector<8x128xf32>
    %548 = arith.addf %547, %546 : vector<8x128xf32>
    %549 = arith.divf %547, %548 : vector<8x128xf32>
    %550 = vector.extract_strided_slice %537 {offsets = [0, 256], sizes = [8, 128], strides = [1, 1]} : vector<8x512xf32> to vector<8x128xf32>
    %551 = math.tanh %550 : vector<8x128xf32>
    %552 = vector.extract_strided_slice %537 {offsets = [0, 384], sizes = [8, 128], strides = [1, 1]} : vector<8x512xf32> to vector<8x128xf32>
    %553 = arith.negf %552 : vector<8x128xf32>
    %554 = math.exp %553 : vector<8x128xf32>
    %cst_117 = arith.constant 1.000000e+00 : f32
    %555 = vector.broadcast %cst_117 : f32 to vector<8x128xf32>
    %556 = arith.addf %555, %554 : vector<8x128xf32>
    %557 = arith.divf %555, %556 : vector<8x128xf32>
    %558 = arith.mulf %549, %469 : vector<8x128xf32>
    %559 = arith.mulf %543, %551 : vector<8x128xf32>
    %560 = arith.addf %558, %559 : vector<8x128xf32>
    %561 = math.tanh %560 : vector<8x128xf32>
    %562 = arith.mulf %557, %561 : vector<8x128xf32>
    %563 = arith.index_cast %c5_i32 : i32 to index
    %c0_118 = arith.constant 0 : index
    %c0_119 = arith.constant 0 : index
    %564 = vector.load %arg9[%563, %c0_118, %c0_119] : memref<8x8x128xf32, #tpu.memory_space<vmem>>, vector<1x8x128xf32>
    %565 = vector.shape_cast %564 : vector<1x8x128xf32> to vector<8x128xf32>
    %566 = vector.shape_cast %562 : vector<8x128xf32> to vector<1x8x128xf32>
    tpu.vector_store %arg9[%563, %c0_118, %c0_119], %566 {strides = array<i32>} : memref<8x8x128xf32, #tpu.memory_space<vmem>>, vector<1x8x128xf32>,
    %c6_i32 = arith.constant 6 : i32
    %567 = arith.index_cast %c6_i32 : i32 to index
    %c0_120 = arith.constant 0 : index
    %c0_121 = arith.constant 0 : index
    %568 = vector.load %arg2[%567, %c0_120, %c0_121] : memref<8x8x4xf32, #tpu.memory_space<vmem>>, vector<1x8x4xf32>
    %569 = vector.shape_cast %568 : vector<1x8x4xf32> to vector<8x4xf32>
    %570 = tpu.concatenate %569, %506 in 1 : vector<8x4xf32>, vector<8x32xf32> -> vector<8x36xf32>
    %cst_122 = arith.constant dense<0.000000e+00> : vector<8x128xf32>
    %571 = tpu.matmul %570, %3, %cst_122 {dimension_numbers = #tpu.dot_dimension_numbers<[1], [0], [0], [1], [0, 0, 1, 1], [], []>} : vector<8x36xf32>, vector<36x128xf32>, vector<8x128xf32> -> vector<8x128xf32>
    %572 = arith.addf %571, %8 : vector<8x128xf32>
    %573 = vector.extract_strided_slice %572 {offsets = [0, 0], sizes = [8, 32], strides = [1, 1]} : vector<8x128xf32> to vector<8x32xf32>
    %574 = arith.negf %573 : vector<8x32xf32>
    %575 = math.exp %574 : vector<8x32xf32>
    %cst_123 = arith.constant 1.000000e+00 : f32
    %576 = vector.broadcast %cst_123 : f32 to vector<8x32xf32>
    %577 = arith.addf %576, %575 : vector<8x32xf32>
    %578 = arith.divf %576, %577 : vector<8x32xf32>
    %579 = vector.extract_strided_slice %572 {offsets = [0, 32], sizes = [8, 32], strides = [1, 1]} : vector<8x128xf32> to vector<8x32xf32>
    %580 = arith.negf %579 : vector<8x32xf32>
    %581 = math.exp %580 : vector<8x32xf32>
    %cst_124 = arith.constant 1.000000e+00 : f32
    %582 = vector.broadcast %cst_124 : f32 to vector<8x32xf32>
    %583 = arith.addf %582, %581 : vector<8x32xf32>
    %584 = arith.divf %582, %583 : vector<8x32xf32>
    %585 = vector.extract_strided_slice %572 {offsets = [0, 64], sizes = [8, 32], strides = [1, 1]} : vector<8x128xf32> to vector<8x32xf32>
    %586 = math.tanh %585 : vector<8x32xf32>
    %587 = vector.extract_strided_slice %572 {offsets = [0, 96], sizes = [8, 32], strides = [1, 1]} : vector<8x128xf32> to vector<8x32xf32>
    %588 = arith.negf %587 : vector<8x32xf32>
    %589 = math.exp %588 : vector<8x32xf32>
    %cst_125 = arith.constant 1.000000e+00 : f32
    %590 = vector.broadcast %cst_125 : f32 to vector<8x32xf32>
    %591 = arith.addf %590, %589 : vector<8x32xf32>
    %592 = arith.divf %590, %591 : vector<8x32xf32>
    %593 = arith.mulf %584, %504 : vector<8x32xf32>
    %594 = arith.mulf %578, %586 : vector<8x32xf32>
    %595 = arith.addf %593, %594 : vector<8x32xf32>
    %596 = math.tanh %595 : vector<8x32xf32>
    %597 = arith.mulf %592, %596 : vector<8x32xf32>
    %598 = tpu.concatenate %597, %534 in 1 : vector<8x32xf32>, vector<8x64xf32> -> vector<8x96xf32>
    %cst_126 = arith.constant dense<0.000000e+00> : vector<8x256xf32>
    %599 = tpu.matmul %598, %4, %cst_126 {dimension_numbers = #tpu.dot_dimension_numbers<[1], [0], [0], [1], [0, 0, 1, 1], [], []>} : vector<8x96xf32>, vector<96x256xf32>, vector<8x256xf32> -> vector<8x256xf32>
    %600 = arith.addf %599, %11 : vector<8x256xf32>
    %601 = vector.extract_strided_slice %600 {offsets = [0, 0], sizes = [8, 64], strides = [1, 1]} : vector<8x256xf32> to vector<8x64xf32>
    %602 = arith.negf %601 : vector<8x64xf32>
    %603 = math.exp %602 : vector<8x64xf32>
    %cst_127 = arith.constant 1.000000e+00 : f32
    %604 = vector.broadcast %cst_127 : f32 to vector<8x64xf32>
    %605 = arith.addf %604, %603 : vector<8x64xf32>
    %606 = arith.divf %604, %605 : vector<8x64xf32>
    %607 = vector.extract_strided_slice %600 {offsets = [0, 64], sizes = [8, 64], strides = [1, 1]} : vector<8x256xf32> to vector<8x64xf32>
    %608 = arith.negf %607 : vector<8x64xf32>
    %609 = math.exp %608 : vector<8x64xf32>
    %cst_128 = arith.constant 1.000000e+00 : f32
    %610 = vector.broadcast %cst_128 : f32 to vector<8x64xf32>
    %611 = arith.addf %610, %609 : vector<8x64xf32>
    %612 = arith.divf %610, %611 : vector<8x64xf32>
    %613 = vector.extract_strided_slice %600 {offsets = [0, 128], sizes = [8, 64], strides = [1, 1]} : vector<8x256xf32> to vector<8x64xf32>
    %614 = math.tanh %613 : vector<8x64xf32>
    %615 = vector.extract_strided_slice %600 {offsets = [0, 192], sizes = [8, 64], strides = [1, 1]} : vector<8x256xf32> to vector<8x64xf32>
    %616 = arith.negf %615 : vector<8x64xf32>
    %617 = math.exp %616 : vector<8x64xf32>
    %cst_129 = arith.constant 1.000000e+00 : f32
    %618 = vector.broadcast %cst_129 : f32 to vector<8x64xf32>
    %619 = arith.addf %618, %617 : vector<8x64xf32>
    %620 = arith.divf %618, %619 : vector<8x64xf32>
    %621 = arith.mulf %612, %532 : vector<8x64xf32>
    %622 = arith.mulf %606, %614 : vector<8x64xf32>
    %623 = arith.addf %621, %622 : vector<8x64xf32>
    %624 = math.tanh %623 : vector<8x64xf32>
    %625 = arith.mulf %620, %624 : vector<8x64xf32>
    %626 = tpu.concatenate %625, %562 in 1 : vector<8x64xf32>, vector<8x128xf32> -> vector<8x192xf32>
    %cst_130 = arith.constant dense<0.000000e+00> : vector<8x512xf32>
    %627 = tpu.matmul %626, %5, %cst_130 {dimension_numbers = #tpu.dot_dimension_numbers<[1], [0], [0], [1], [0, 0, 1, 1], [], []>} : vector<8x192xf32>, vector<192x512xf32>, vector<8x512xf32> -> vector<8x512xf32>
    %628 = arith.addf %627, %14 : vector<8x512xf32>
    %629 = vector.extract_strided_slice %628 {offsets = [0, 0], sizes = [8, 128], strides = [1, 1]} : vector<8x512xf32> to vector<8x128xf32>
    %630 = arith.negf %629 : vector<8x128xf32>
    %631 = math.exp %630 : vector<8x128xf32>
    %cst_131 = arith.constant 1.000000e+00 : f32
    %632 = vector.broadcast %cst_131 : f32 to vector<8x128xf32>
    %633 = arith.addf %632, %631 : vector<8x128xf32>
    %634 = arith.divf %632, %633 : vector<8x128xf32>
    %635 = vector.extract_strided_slice %628 {offsets = [0, 128], sizes = [8, 128], strides = [1, 1]} : vector<8x512xf32> to vector<8x128xf32>
    %636 = arith.negf %635 : vector<8x128xf32>
    %637 = math.exp %636 : vector<8x128xf32>
    %cst_132 = arith.constant 1.000000e+00 : f32
    %638 = vector.broadcast %cst_132 : f32 to vector<8x128xf32>
    %639 = arith.addf %638, %637 : vector<8x128xf32>
    %640 = arith.divf %638, %639 : vector<8x128xf32>
    %641 = vector.extract_strided_slice %628 {offsets = [0, 256], sizes = [8, 128], strides = [1, 1]} : vector<8x512xf32> to vector<8x128xf32>
    %642 = math.tanh %641 : vector<8x128xf32>
    %643 = vector.extract_strided_slice %628 {offsets = [0, 384], sizes = [8, 128], strides = [1, 1]} : vector<8x512xf32> to vector<8x128xf32>
    %644 = arith.negf %643 : vector<8x128xf32>
    %645 = math.exp %644 : vector<8x128xf32>
    %cst_133 = arith.constant 1.000000e+00 : f32
    %646 = vector.broadcast %cst_133 : f32 to vector<8x128xf32>
    %647 = arith.addf %646, %645 : vector<8x128xf32>
    %648 = arith.divf %646, %647 : vector<8x128xf32>
    %649 = arith.mulf %640, %560 : vector<8x128xf32>
    %650 = arith.mulf %634, %642 : vector<8x128xf32>
    %651 = arith.addf %649, %650 : vector<8x128xf32>
    %652 = math.tanh %651 : vector<8x128xf32>
    %653 = arith.mulf %648, %652 : vector<8x128xf32>
    %654 = arith.index_cast %c6_i32 : i32 to index
    %c0_134 = arith.constant 0 : index
    %c0_135 = arith.constant 0 : index
    %655 = vector.load %arg9[%654, %c0_134, %c0_135] : memref<8x8x128xf32, #tpu.memory_space<vmem>>, vector<1x8x128xf32>
    %656 = vector.shape_cast %655 : vector<1x8x128xf32> to vector<8x128xf32>
    %657 = vector.shape_cast %653 : vector<8x128xf32> to vector<1x8x128xf32>
    tpu.vector_store %arg9[%654, %c0_134, %c0_135], %657 {strides = array<i32>} : memref<8x8x128xf32, #tpu.memory_space<vmem>>, vector<1x8x128xf32>,
    %c7_i32 = arith.constant 7 : i32
    %658 = arith.index_cast %c7_i32 : i32 to index
    %c0_136 = arith.constant 0 : index
    %c0_137 = arith.constant 0 : index
    %659 = vector.load %arg2[%658, %c0_136, %c0_137] : memref<8x8x4xf32, #tpu.memory_space<vmem>>, vector<1x8x4xf32>
    %660 = vector.shape_cast %659 : vector<1x8x4xf32> to vector<8x4xf32>
    %661 = tpu.concatenate %660, %597 in 1 : vector<8x4xf32>, vector<8x32xf32> -> vector<8x36xf32>
    %cst_138 = arith.constant dense<0.000000e+00> : vector<8x128xf32>
    %662 = tpu.matmul %661, %3, %cst_138 {dimension_numbers = #tpu.dot_dimension_numbers<[1], [0], [0], [1], [0, 0, 1, 1], [], []>} : vector<8x36xf32>, vector<36x128xf32>, vector<8x128xf32> -> vector<8x128xf32>
    %663 = arith.addf %662, %8 : vector<8x128xf32>
    %664 = vector.extract_strided_slice %663 {offsets = [0, 0], sizes = [8, 32], strides = [1, 1]} : vector<8x128xf32> to vector<8x32xf32>
    %665 = arith.negf %664 : vector<8x32xf32>
    %666 = math.exp %665 : vector<8x32xf32>
    %cst_139 = arith.constant 1.000000e+00 : f32
    %667 = vector.broadcast %cst_139 : f32 to vector<8x32xf32>
    %668 = arith.addf %667, %666 : vector<8x32xf32>
    %669 = arith.divf %667, %668 : vector<8x32xf32>
    %670 = vector.extract_strided_slice %663 {offsets = [0, 32], sizes = [8, 32], strides = [1, 1]} : vector<8x128xf32> to vector<8x32xf32>
    %671 = arith.negf %670 : vector<8x32xf32>
    %672 = math.exp %671 : vector<8x32xf32>
    %cst_140 = arith.constant 1.000000e+00 : f32
    %673 = vector.broadcast %cst_140 : f32 to vector<8x32xf32>
    %674 = arith.addf %673, %672 : vector<8x32xf32>
    %675 = arith.divf %673, %674 : vector<8x32xf32>
    %676 = vector.extract_strided_slice %663 {offsets = [0, 64], sizes = [8, 32], strides = [1, 1]} : vector<8x128xf32> to vector<8x32xf32>
    %677 = math.tanh %676 : vector<8x32xf32>
    %678 = vector.extract_strided_slice %663 {offsets = [0, 96], sizes = [8, 32], strides = [1, 1]} : vector<8x128xf32> to vector<8x32xf32>
    %679 = arith.negf %678 : vector<8x32xf32>
    %680 = math.exp %679 : vector<8x32xf32>
    %cst_141 = arith.constant 1.000000e+00 : f32
    %681 = vector.broadcast %cst_141 : f32 to vector<8x32xf32>
    %682 = arith.addf %681, %680 : vector<8x32xf32>
    %683 = arith.divf %681, %682 : vector<8x32xf32>
    %684 = arith.mulf %675, %595 : vector<8x32xf32>
    %685 = arith.mulf %669, %677 : vector<8x32xf32>
    %686 = arith.addf %684, %685 : vector<8x32xf32>
    %687 = math.tanh %686 : vector<8x32xf32>
    %688 = arith.mulf %683, %687 : vector<8x32xf32>
    %689 = tpu.concatenate %688, %625 in 1 : vector<8x32xf32>, vector<8x64xf32> -> vector<8x96xf32>
    %cst_142 = arith.constant dense<0.000000e+00> : vector<8x256xf32>
    %690 = tpu.matmul %689, %4, %cst_142 {dimension_numbers = #tpu.dot_dimension_numbers<[1], [0], [0], [1], [0, 0, 1, 1], [], []>} : vector<8x96xf32>, vector<96x256xf32>, vector<8x256xf32> -> vector<8x256xf32>
    %691 = arith.addf %690, %11 : vector<8x256xf32>
    %692 = vector.extract_strided_slice %691 {offsets = [0, 0], sizes = [8, 64], strides = [1, 1]} : vector<8x256xf32> to vector<8x64xf32>
    %693 = arith.negf %692 : vector<8x64xf32>
    %694 = math.exp %693 : vector<8x64xf32>
    %cst_143 = arith.constant 1.000000e+00 : f32
    %695 = vector.broadcast %cst_143 : f32 to vector<8x64xf32>
    %696 = arith.addf %695, %694 : vector<8x64xf32>
    %697 = arith.divf %695, %696 : vector<8x64xf32>
    %698 = vector.extract_strided_slice %691 {offsets = [0, 64], sizes = [8, 64], strides = [1, 1]} : vector<8x256xf32> to vector<8x64xf32>
    %699 = arith.negf %698 : vector<8x64xf32>
    %700 = math.exp %699 : vector<8x64xf32>
    %cst_144 = arith.constant 1.000000e+00 : f32
    %701 = vector.broadcast %cst_144 : f32 to vector<8x64xf32>
    %702 = arith.addf %701, %700 : vector<8x64xf32>
    %703 = arith.divf %701, %702 : vector<8x64xf32>
    %704 = vector.extract_strided_slice %691 {offsets = [0, 128], sizes = [8, 64], strides = [1, 1]} : vector<8x256xf32> to vector<8x64xf32>
    %705 = math.tanh %704 : vector<8x64xf32>
    %706 = vector.extract_strided_slice %691 {offsets = [0, 192], sizes = [8, 64], strides = [1, 1]} : vector<8x256xf32> to vector<8x64xf32>
    %707 = arith.negf %706 : vector<8x64xf32>
    %708 = math.exp %707 : vector<8x64xf32>
    %cst_145 = arith.constant 1.000000e+00 : f32
    %709 = vector.broadcast %cst_145 : f32 to vector<8x64xf32>
    %710 = arith.addf %709, %708 : vector<8x64xf32>
    %711 = arith.divf %709, %710 : vector<8x64xf32>
    %712 = arith.mulf %703, %623 : vector<8x64xf32>
    %713 = arith.mulf %697, %705 : vector<8x64xf32>
    %714 = arith.addf %712, %713 : vector<8x64xf32>
    %715 = math.tanh %714 : vector<8x64xf32>
    %716 = arith.mulf %711, %715 : vector<8x64xf32>
    %717 = tpu.concatenate %716, %653 in 1 : vector<8x64xf32>, vector<8x128xf32> -> vector<8x192xf32>
    %cst_146 = arith.constant dense<0.000000e+00> : vector<8x512xf32>
    %718 = tpu.matmul %717, %5, %cst_146 {dimension_numbers = #tpu.dot_dimension_numbers<[1], [0], [0], [1], [0, 0, 1, 1], [], []>} : vector<8x192xf32>, vector<192x512xf32>, vector<8x512xf32> -> vector<8x512xf32>
    %719 = arith.addf %718, %14 : vector<8x512xf32>
    %720 = vector.extract_strided_slice %719 {offsets = [0, 0], sizes = [8, 128], strides = [1, 1]} : vector<8x512xf32> to vector<8x128xf32>
    %721 = arith.negf %720 : vector<8x128xf32>
    %722 = math.exp %721 : vector<8x128xf32>
    %cst_147 = arith.constant 1.000000e+00 : f32
    %723 = vector.broadcast %cst_147 : f32 to vector<8x128xf32>
    %724 = arith.addf %723, %722 : vector<8x128xf32>
    %725 = arith.divf %723, %724 : vector<8x128xf32>
    %726 = vector.extract_strided_slice %719 {offsets = [0, 128], sizes = [8, 128], strides = [1, 1]} : vector<8x512xf32> to vector<8x128xf32>
    %727 = arith.negf %726 : vector<8x128xf32>
    %728 = math.exp %727 : vector<8x128xf32>
    %cst_148 = arith.constant 1.000000e+00 : f32
    %729 = vector.broadcast %cst_148 : f32 to vector<8x128xf32>
    %730 = arith.addf %729, %728 : vector<8x128xf32>
    %731 = arith.divf %729, %730 : vector<8x128xf32>
    %732 = vector.extract_strided_slice %719 {offsets = [0, 256], sizes = [8, 128], strides = [1, 1]} : vector<8x512xf32> to vector<8x128xf32>
    %733 = math.tanh %732 : vector<8x128xf32>
    %734 = vector.extract_strided_slice %719 {offsets = [0, 384], sizes = [8, 128], strides = [1, 1]} : vector<8x512xf32> to vector<8x128xf32>
    %735 = arith.negf %734 : vector<8x128xf32>
    %736 = math.exp %735 : vector<8x128xf32>
    %cst_149 = arith.constant 1.000000e+00 : f32
    %737 = vector.broadcast %cst_149 : f32 to vector<8x128xf32>
    %738 = arith.addf %737, %736 : vector<8x128xf32>
    %739 = arith.divf %737, %738 : vector<8x128xf32>
    %740 = arith.mulf %731, %651 : vector<8x128xf32>
    %741 = arith.mulf %725, %733 : vector<8x128xf32>
    %742 = arith.addf %740, %741 : vector<8x128xf32>
    %743 = math.tanh %742 : vector<8x128xf32>
    %744 = arith.mulf %739, %743 : vector<8x128xf32>
    %745 = arith.index_cast %c7_i32 : i32 to index
    %c0_150 = arith.constant 0 : index
    %c0_151 = arith.constant 0 : index
    %746 = vector.load %arg9[%745, %c0_150, %c0_151] : memref<8x8x128xf32, #tpu.memory_space<vmem>>, vector<1x8x128xf32>
    %747 = vector.shape_cast %746 : vector<1x8x128xf32> to vector<8x128xf32>
    %748 = vector.shape_cast %744 : vector<8x128xf32> to vector<1x8x128xf32>
    tpu.vector_store %arg9[%745, %c0_150, %c0_151], %748 {strides = array<i32>} : memref<8x8x128xf32, #tpu.memory_space<vmem>>, vector<1x8x128xf32>,
    %c8_i32 = arith.constant 8 : i32
    %c0_152 = arith.constant 0 : index
    %c0_153 = arith.constant 0 : index
    %749 = vector.load %arg10[%c0_152, %c0_153] : memref<8x32xf32, #tpu.memory_space<vmem>>, vector<8x32xf32>
    tpu.vector_store %arg10[%c0_152, %c0_153], %688 {strides = array<i32>} : memref<8x32xf32, #tpu.memory_space<vmem>>, vector<8x32xf32>,
    %c0_154 = arith.constant 0 : index
    %c0_155 = arith.constant 0 : index
    %750 = vector.load %arg11[%c0_154, %c0_155] : memref<8x32xf32, #tpu.memory_space<vmem>>, vector<8x32xf32>
    tpu.vector_store %arg11[%c0_154, %c0_155], %686 {strides = array<i32>} : memref<8x32xf32, #tpu.memory_space<vmem>>, vector<8x32xf32>,
    %c0_156 = arith.constant 0 : index
    %c0_157 = arith.constant 0 : index
    %751 = vector.load %arg12[%c0_156, %c0_157] : memref<8x64xf32, #tpu.memory_space<vmem>>, vector<8x64xf32>
    tpu.vector_store %arg12[%c0_156, %c0_157], %716 {strides = array<i32>} : memref<8x64xf32, #tpu.memory_space<vmem>>, vector<8x64xf32>,
    %c0_158 = arith.constant 0 : index
    %c0_159 = arith.constant 0 : index
    %752 = vector.load %arg13[%c0_158, %c0_159] : memref<8x64xf32, #tpu.memory_space<vmem>>, vector<8x64xf32>
    tpu.vector_store %arg13[%c0_158, %c0_159], %714 {strides = array<i32>} : memref<8x64xf32, #tpu.memory_space<vmem>>, vector<8x64xf32>,
    %c0_160 = arith.constant 0 : index
    %c0_161 = arith.constant 0 : index
    %753 = vector.load %arg14[%c0_160, %c0_161] : memref<8x128xf32, #tpu.memory_space<vmem>>, vector<8x128xf32>
    tpu.vector_store %arg14[%c0_160, %c0_161], %744 {strides = array<i32>} : memref<8x128xf32, #tpu.memory_space<vmem>>, vector<8x128xf32>,
    %c0_162 = arith.constant 0 : index
    %c0_163 = arith.constant 0 : index
    %754 = vector.load %arg15[%c0_162, %c0_163] : memref<8x128xf32, #tpu.memory_space<vmem>>, vector<8x128xf32>
    tpu.vector_store %arg15[%c0_162, %c0_163], %742 {strides = array<i32>} : memref<8x128xf32, #tpu.memory_space<vmem>>, vector<8x128xf32>,
    return
  }
  func.func @transform_0(%arg0: i32, %arg1: i32) -> (i32, i32, i32) {
    %c0_i32 = arith.constant 0 : i32
    %c0_i32_0 = arith.constant 0 : i32
    return %arg1, %arg0, %c0_i32 : i32, i32, i32
  }
  func.func @transform_1(%arg0: i32, %arg1: i32) -> (i32, i32) {
    %c0_i32 = arith.constant 0 : i32
    %c0_i32_0 = arith.constant 0 : i32
    %c0_i32_1 = arith.constant 0 : i32
    return %c0_i32, %c0_i32_0 : i32, i32
  }
  func.func @transform_2(%arg0: i32, %arg1: i32) -> (i32, i32) {
    %c0_i32 = arith.constant 0 : i32
    %c0_i32_0 = arith.constant 0 : i32
    %c0_i32_1 = arith.constant 0 : i32
    return %c0_i32, %c0_i32_0 : i32, i32
  }
  func.func @transform_3(%arg0: i32, %arg1: i32) -> (i32, i32) {
    %c0_i32 = arith.constant 0 : i32
    %c0_i32_0 = arith.constant 0 : i32
    %c0_i32_1 = arith.constant 0 : i32
    return %c0_i32, %c0_i32_0 : i32, i32
  }
  func.func @transform_4(%arg0: i32, %arg1: i32) -> (i32, i32) {
    %c0_i32 = arith.constant 0 : i32
    %c0_i32_0 = arith.constant 0 : i32
    %c0_i32_1 = arith.constant 0 : i32
    return %c0_i32, %c0_i32_0 : i32, i32
  }
  func.func @transform_5(%arg0: i32, %arg1: i32) -> (i32, i32) {
    %c0_i32 = arith.constant 0 : i32
    %c0_i32_0 = arith.constant 0 : i32
    %c0_i32_1 = arith.constant 0 : i32
    return %c0_i32, %c0_i32_0 : i32, i32
  }
  func.func @transform_6(%arg0: i32, %arg1: i32) -> (i32, i32) {
    %c0_i32 = arith.constant 0 : i32
    %c0_i32_0 = arith.constant 0 : i32
    %c0_i32_1 = arith.constant 0 : i32
    return %c0_i32, %c0_i32_0 : i32, i32
  }
  func.func @transform_7(%arg0: i32, %arg1: i32) -> (i32, i32, i32) {
    %c0_i32 = arith.constant 0 : i32
    %c0_i32_0 = arith.constant 0 : i32
    return %arg1, %arg0, %c0_i32 : i32, i32, i32
  }
}

</mosaic_0001>

<bundles_post_ra>
// kernel: lstm_generator_forward.3
= control target key start
LH: loop header
LB: loop body
LE: loop exit
PB: predicated region body
PF: predicated region fallthrough
CT: control target
= control target key end

     0   :  { %vm158_vm0 = vcmask 31744   ;;  %s431_s1 = inlined_call_operand.vmem [shape: f32[128,4], index: 1, kind: input, shape index: {}]   ;;  %s432_s0 = inlined_call_operand.vmem [shape: f32[64,128], index: 0, kind: input, shape index: {}]   ;;  %s433_s2 = inlined_call_operand.vmem [shape: f32[1,4], index: 2, kind: input, shape index: {}]   ;;  %s434_s3 = inlined_call_operand.vmem [shape: f32[64,4], index: 3, kind: output, shape index: {}]  }
   0x1   :  { %v22_v0 = vld [vmem:[%s431_s1] sm:$0xff]  ;;  %v23_v1 = vld [vmem:[%s431_s1 + $0x8] sm:$0xff]  ;;  %v24_v2 = vld [vmem:[%s431_s1 + $0x10] sm:$0xff] }
   0x2   :  { %v240_v3 = vpack.c.bf16 %v23_v1, %v22_v0  ;;  %v25_v4 = vld [vmem:[%s431_s1 + $0x18] sm:$0xff]  ;;  %v26_v6 = vld [vmem:[%s431_s1 + $0x20] sm:$0xff]  ;;  %v27_v7 = vld [vmem:[%s431_s1 + $0x28] sm:$0xff] }
   0x3   :  { %v244_v5 = vpack.c.bf16 %v25_v4, %v24_v2  ;;  %v248_v8 = vpack.c.bf16 %v27_v7, %v26_v6  ;;  %v14_v9 = vld [vmem:[%s432_s0] sm:$0xff]  ;;  %v28_v11 = vld [vmem:[%s431_s1 + $0x30] sm:$0xff]  ;;  %v29_v12 = vld [vmem:[%s431_s1 + $0x38] sm:$0xff] }
   0x4   :  { %241 = vmatprep.subr.bf16.mxu0 %v240_v3  ;;  %272 = vmatprep.subr.bf16.mxu1 %v240_v3  ;;  %v18_v10 = vld [vmem:[%s432_s0 + $0x20] sm:$0xff]  ;;  %v252_v13 = vpack.c.bf16 %v29_v12, %v28_v11  ;;  %v31_v15 = vld [vmem:[%s431_s1 + $0x48] sm:$0xff]  ;;  %v32_v17 = vld [vmem:[%s431_s1 + $0x50] sm:$0xff] }
   0x5   :  { %243 = vmatpush3.bf16.msra.mxu0 %v240_v3  ;;  %280 = vmatpush3.bf16.msra.mxu1 %v240_v3  ;;  %v30_v14 = vld [vmem:[%s431_s1 + $0x40] sm:$0xff]  ;;  %v33_v18 = vld [vmem:[%s431_s1 + $0x58] sm:$0xff]  ;;  %v35_v21 = vld [vmem:[%s431_s1 + $0x68] sm:$0xff] }
   0x6   :  { %245 = vmatprep.subr.bf16.mxu0 %v244_v5  ;;  %273 = vmatprep.subr.bf16.mxu1 %v244_v5  ;;  %v256_v16 = vpack.c.bf16 %v31_v15, %v30_v14  ;;  %v260_v19 = vpack.c.bf16 %v33_v18, %v32_v17  ;;  %v34_v20 = vld [vmem:[%s431_s1 + $0x60] sm:$0xff]  ;;  %v36_v23 = vld [vmem:[%s431_s1 + $0x70] sm:$0xff]  ;;  %v37_v24 = vld [vmem:[%s431_s1 + $0x78] sm:$0xff] }
   0x7   :  { %228 = vmatprep.mubr.f32.mxu0 %v14_v9  ;;  %234 = vmatprep.mubr.f32.mxu1 %v18_v10  ;;  %v264_v22 = vpack.c.bf16 %v35_v21, %v34_v20  ;;  %v268_v25 = vpack.c.bf16 %v37_v24, %v36_v23  ;;  %v15_v26 = vld [vmem:[%s432_s0 + $0x8] sm:$0xff]  ;;  %v16_v28 = vld [vmem:[%s432_s0 + $0x10] sm:$0xff]  ;;  %v17_v30 = vld [vmem:[%s432_s0 + $0x18] sm:$0xff] }
   0x8   :  { %v19_v27 = vld [vmem:[%s432_s0 + $0x28] sm:$0xff]  ;;  %v20_v29 = vld [vmem:[%s432_s0 + $0x30] sm:$0xff]  ;;  %v21_v31 = vld [vmem:[%s432_s0 + $0x38] sm:$0xff] }
   0x9   :  { %247 = vmatpush3.bf16.msra.mxu0 %v244_v5  ;;  %281 = vmatpush3.bf16.msra.mxu1 %v244_v5  ;;  %v171_v32 = vld [vmem:[%s433_s2] ss:$0 sm:$0xff] }
   0xa   :  { %249 = vmatprep.subr.bf16.mxu0 %v248_v8  ;;  %274 = vmatprep.subr.bf16.mxu1 %v248_v8 }
   0xd   :  { %251 = vmatpush3.bf16.msra.mxu0 %v248_v8  ;;  %282 = vmatpush3.bf16.msra.mxu1 %v248_v8 }
   0xe   :  { %253 = vmatprep.subr.bf16.mxu0 %v252_v13  ;;  %275 = vmatprep.subr.bf16.mxu1 %v252_v13 }
  0x11   :  { %255 = vmatpush3.bf16.msra.mxu0 %v252_v13  ;;  %283 = vmatpush3.bf16.msra.mxu1 %v252_v13 }
  0x12   :  { %257 = vmatprep.subr.bf16.mxu0 %v256_v16  ;;  %276 = vmatprep.subr.bf16.mxu1 %v256_v16 }
  0x15   :  { %259 = vmatpush3.bf16.msra.mxu0 %v256_v16  ;;  %284 = vmatpush3.bf16.msra.mxu1 %v256_v16 }
  0x16   :  { %261 = vmatprep.subr.bf16.mxu0 %v260_v19  ;;  %277 = vmatprep.subr.bf16.mxu1 %v260_v19 }
  0x19   :  { %263 = vmatpush3.bf16.msra.mxu0 %v260_v19  ;;  %285 = vmatpush3.bf16.msra.mxu1 %v260_v19 }
  0x1a   :  { %265 = vmatprep.subr.bf16.mxu0 %v264_v22  ;;  %278 = vmatprep.subr.bf16.mxu1 %v264_v22 }
  0x1d   :  { %267 = vmatpush3.bf16.msra.mxu0 %v264_v22  ;;  %286 = vmatpush3.bf16.msra.mxu1 %v264_v22 }
  0x1e   :  { %269 = vmatprep.subr.bf16.mxu0 %v268_v25  ;;  %279 = vmatprep.subr.bf16.mxu1 %v268_v25 }
  0x21   :  { %271 = vmatpush3.bf16.msra.mxu0 %v268_v25  ;;  %287 = vmatpush3.bf16.msra.mxu1 %v268_v25 }
  0x24   :  { %229 = vmatmul.mubr.f32.vlgmr.msra.gmra.mrb[0].mxu0 %v15_v26  ;;  %235 = vmatmul.mubr.f32.vlgmr.msra.gmra.mrb[0].mxu1 %v19_v27 }
  0x25   :  { %231 = vmatprep.mubr.f32.mxu0 %v16_v28  ;;  %237 = vmatprep.mubr.f32.mxu1 %v20_v29 }
  0x28   :  { %232 = vmatmul.mubr.f32.gmra.mrb[2].mxu0 %v17_v30  ;;  %238 = vmatmul.mubr.f32.gmra.mrb[2].mxu1 %v21_v31 }
  0xf7   :  { %v230_v33 = vpop.f32.mrb[0].mxu0  ;;  %v236_v34 = vpop.f32.mrb[0].mxu1 }
  0xf8   :  { %v117_v35 = vadd.f32 %v230_v33, %v171_v32  ;;  %v137_v36 = vadd.f32 %v236_v34, %v171_v32  ;;  %v111_v37 = vpop.f32.mrb[1].mxu0  ;;  %v131_v38 = vpop.f32.mrb[1].mxu1 }
  0xf9   :  { %v112_v39 = vadd.f32 %v171_v32, %v111_v37  ;;  %v132_v40 = vadd.f32 %v171_v32, %v131_v38 }
  0xfa   :  { %288 = vtanh.f32 %v117_v35 }
  0xfb   :  { %290 = vtanh.f32 %v137_v36  ;;  %v233_v41 = vpop.f32.mrb[2].mxu0  ;;  %v239_v42 = vpop.f32.mrb[2].mxu1 }
  0xfc   :  { %292 = vtanh.f32 %v112_v39  ;;  %v127_v43 = vadd.f32 %v233_v41, %v171_v32  ;;  %v147_v44 = vadd.f32 %v239_v42, %v171_v32  ;;  %v121_v45 = vpop.f32.mrb[3].mxu0  ;;  %v141_v46 = vpop.f32.mrb[3].mxu1 }
  0xfd   :  { %294 = vtanh.f32 %v132_v40  ;;  %v122_v47 = vadd.f32 %v171_v32, %v121_v45  ;;  %v142_v48 = vadd.f32 %v171_v32, %v141_v46 }
  0xfe   :  { %296 = vtanh.f32 %v127_v43 }
  0xff   :  { %298 = vtanh.f32 %v147_v44 }
 0x100   :  { %300 = vtanh.f32 %v122_v47 }
 0x101   :  { %302 = vtanh.f32 %v142_v48 }
 0x104   :  { %v289_v49 = vpop.eup %288 }
 0x105   :  { %v291_v50 = vpop.eup %290  ;;  %160 = vst.msk [vmem:[%s434_s3 + $0x8] sm:$0xff] %vm158_vm0, %v289_v49 }
 0x106   :  { %v293_v51 = vpop.eup %292  ;;  %164 = vst.msk [vmem:[%s434_s3 + $0x28] sm:$0xff] %vm158_vm0, %v291_v50 }
 0x107   :  { %v295_v52 = vpop.eup %294  ;;  %159 = vst.msk [vmem:[%s434_s3] sm:$0xff] %vm158_vm0, %v293_v51 }
 0x108   :  { %v297_v53 = vpop.eup %296  ;;  %163 = vst.msk [vmem:[%s434_s3 + $0x20] sm:$0xff] %vm158_vm0, %v295_v52 }
 0x109   :  { %v299_v54 = vpop.eup %298  ;;  %162 = vst.msk [vmem:[%s434_s3 + $0x18] sm:$0xff] %vm158_vm0, %v297_v53 }
 0x10a   :  { %v301_v55 = vpop.eup %300  ;;  %166 = vst.msk [vmem:[%s434_s3 + $0x38] sm:$0xff] %vm158_vm0, %v299_v54 }
 0x10b   :  { %v303_v56 = vpop.eup %302  ;;  %161 = vst.msk [vmem:[%s434_s3 + $0x10] sm:$0xff] %vm158_vm0, %v301_v55 }
 0x10c   :  { %165 = vst.msk [vmem:[%s434_s3 + $0x30] sm:$0xff] %vm158_vm0, %v303_v56 }

// kernel: lstm_generator_forward.2
= control target key start
LH: loop header
LB: loop body
LE: loop exit
PB: predicated region body
PF: predicated region fallthrough
CT: control target
= control target key end

     0   :  { %vm30_vm0 = vcmask 261120   ;;  %v6457_v0 = vmov 0.0   ;;  %v6459_v1 = vmov 0.0|0.0   ;;  %vm4903_vm1 = vmmov 0   ;;  %s4904_s9 = smov 4   ;;  %s4905_s12 = smov 32   ;;  %s6447_s1 = inlined_call_operand.vmem [shape: f32[36,128], index: 1, kind: input, shape index: {}]   ;;  %s6448_s0 = inlined_call_operand.vmem [shape: f32[8,8,4], index: 0, kind: input, shape index: {}]   ;;  %s6449_s2 = inlined_call_operand.vmem [shape: f32[1,128], index: 2, kind: input, shape index: {}]   ;;  %s6450_s3 = inlined_call_operand.vmem [shape: f32[96,256], index: 3, kind: input, shape index: {}]   ;;  %s6451_s4 = inlined_call_operand.vmem [shape: f32[1,256], index: 4, kind: input, shape index: {}]   ;;  %s6452_s5 = inlined_call_operand.vmem [shape: f32[192,512], index: 5, kind: input, shape index: {}]   ;;  %s6453_s6 = inlined_call_operand.vmem [shape: f32[1,512], index: 6, kind: input, shape index: {}]   ;;  %s6454_s7 = inlined_call_operand.vmem [shape: f32[8,8,128], index: 7, kind: output, shape index: {}]  }
   0x1   :  { %31 = vst.msk [vmem:[#allocation2] sm:$0xff] %vm30_vm0, %v6457_v0  ;;  %32 = vst.msk [vmem:[#allocation3] sm:$0xff] %vm30_vm0, %v6457_v0  ;;  %3588 = vmatprep.subr.bf16.mxu1 %v6459_v1  ;;  %v38_v2 = vld [vmem:[%s6447_s1] sm:$0xff]  ;;  %v39_v3 = vld [vmem:[%s6447_s1 + $0x8] sm:$0xff]  ;;  %3494 = vmatprep.mubr.msk.f32.mxu1 %vm4903_vm1, %v6457_v0  ;;  %vm221_vm2 = vcmask 1043456   ;;  %vm215_vm3 = vcmask 31744  }
   0x2   :  { %v40_v4 = vld [vmem:[%s6447_s1 + $0x10] sm:$0xff]  ;;  %v4963_v5 = vpack.c.bf16 %v39_v3, %v38_v2  ;;  %v41_v6 = vld [vmem:[%s6447_s1 + $0x18] sm:$0xff]  ;;  %v4979_v10 = vld [vmem:[%s6447_s1 + $0x20] sm:$0xf]  ;;  %vm217_vm4 = vcmask 293888   ;;  %s4906_s17 = smov 64  }
   0x3   :  { %v4971_v7 = vpack.c.bf16 %v41_v6, %v40_v4  ;;  %v210_v11 = vld [vmem:[%s6448_s0] sm:$0xff]  ;;  %vm33_vm5 = vcmask 523264   ;;  %v44_v29 = vld [vmem:[%s6450_s3 + $0x8] sm:$0xff]  ;;  %v46_v30 = vld [vmem:[%s6450_s3 + $0x18] sm:$0xff]  ;;  %vm333_vm6 = vcmask 785408  }
   0x4   :  { %3590 = vmatpush3.bf16.msra.mxu1 %v4963_v5  ;;  %v4993_v14 = vld [vmem:[%s6449_s2] ss:$0 sm:$0xff]  ;;  %34 = vst.msk [vmem:[#allocation4] sm:$0xff] %vm33_vm5, %v6457_v0  ;;  %35 = vst.msk [vmem:[#allocation5] sm:$0xff] %vm33_vm5, %v6457_v0  ;;  %v5018_v32 = vpack.c.bf16 %v46_v30, %v44_v29  ;;  %v45_v33 = vld [vmem:[%s6450_s3 + $0x10] sm:$0xff] }
   0x5   :  { %3591 = vmatprep.subr.bf16.mxu1 %v6459_v1  ;;  %v43_v31 = vld [vmem:[%s6450_s3] sm:$0xff]  ;;  %v48_v34 = vld [vmem:[%s6450_s3 + $0x28] sm:$0xff]  ;;  %v50_v35 = vld [vmem:[%s6450_s3 + $0x38] sm:$0xff] }
   0x6   :  { %v5029_v36 = vpack.c.bf16 %v45_v33, %v43_v31  ;;  %v5031_v37 = vpack.c.bf16 %v50_v35, %v48_v34  ;;  %v47_v38 = vld [vmem:[%s6450_s3 + $0x20] sm:$0xff]  ;;  %v49_v39 = vld [vmem:[%s6450_s3 + $0x30] sm:$0xff]  ;;  %v52_v40 = vld [vmem:[%s6450_s3 + $0x48] sm:$0xff] }
   0x7   :  { %v54_v41 = vld [vmem:[%s6450_s3 + $0x58] sm:$0xff]  ;;  %v5047_v42 = vpack.c.bf16 %v49_v39, %v47_v38  ;;  %v51_v44 = vld [vmem:[%s6450_s3 + $0x40] sm:$0xff]  ;;  %v53_v45 = vld [vmem:[%s6450_s3 + $0x50] sm:$0xff] }
   0x8   :  { %v204_v8 = vld [vmem:[#allocation2] sm:$0xff]  ;;  %3593 = vmatpush3.bf16.msra.mxu1 %v4971_v7  ;;  %v205_v9 = vld [vmem:[#allocation3] sm:$0xff]  ;;  %v5050_v43 = vpack.c.bf16 %v54_v41, %v52_v40  ;;  %v58_v47 = vld [vmem:[%s6450_s3 + $0x78] sm:$0xff]  ;;  %v5065_v48 = vpack.c.bf16 %v53_v45, %v51_v44 }
   0x9   :  { %212 = vrot.lane.b32.xlu0 %v204_v8, %s4904_s9  ;;  %3492 = vmatprep.subr.mxu1 %v6457_v0  ;;  %v56_v46 = vld [vmem:[%s6450_s3 + $0x68] sm:$0xff]  ;;  %v55_v51 = vld [vmem:[%s6450_s3 + $0x60] sm:$0xff]  ;;  %v57_v52 = vld [vmem:[%s6450_s3 + $0x70] sm:$0xff] }
   0xa   :  { %303 = vrot.lane.b32.xlu1 %v205_v9, %s4905_s12  ;;  %6553 = vst [vmem:[#allocation8_spill] sm:$0xff] %v5065_v48  ;;  %v5068_v50 = vpack.c.bf16 %v58_v47, %v56_v46  ;;  %v60_v53 = vld [vmem:[%s6450_s3 + $0x88] sm:$0xff]  ;;  %v62_v54 = vld [vmem:[%s6450_s3 + $0x98] sm:$0xff]  ;;  %v5084_v56 = vpack.c.bf16 %v57_v52, %v55_v51  ;;  %v59_v58 = vld [vmem:[%s6450_s3 + $0x80] sm:$0xff] }
   0xb   :  { %v206_v55 = vld [vmem:[#allocation4] sm:$0xff]  ;;  %v5087_v57 = vpack.c.bf16 %v62_v54, %v60_v53  ;;  %v64_v60 = vld [vmem:[%s6450_s3 + $0xa8] sm:$0xff]  ;;  %v66_v61 = vld [vmem:[%s6450_s3 + $0xb8] sm:$0xff] }
   0xc   :  { %3493 = vmatpush3.msk.msra.mxu1 %vm221_vm2, %v4979_v10  ;;  %6554 = vst [vmem:[#allocation9_spill] sm:$0xff] %v5068_v50  ;;  %6555 = vst [vmem:[#allocation10_spill] sm:$0xff] %v5084_v56  ;;  %v61_v59 = vld [vmem:[%s6450_s3 + $0x90] sm:$0xff]  ;;  %v5106_v63 = vpack.c.bf16 %v66_v61, %v64_v60  ;;  %v63_v2 = vld [vmem:[%s6450_s3 + $0xa0] sm:$0xff] }
   0xd   :  { %3595 = vmatprep.subr.bf16.mxu1 %v5018_v32  ;;  %6556 = vst [vmem:[#allocation11_spill] sm:$0xff] %v5087_v57  ;;  %v5103_v62 = vpack.c.bf16 %v61_v59, %v59_v58  ;;  %v65_v3 = vld [vmem:[%s6450_s3 + $0xb0] sm:$0xff]  ;;  %v207_v9 = vld [vmem:[#allocation5] sm:$0xff]  ;;  %v68_v34 = vld [vmem:[%s6452_s5 + $0x8] sm:$0xff]  ;;  %s4908_s3 = smov 96  }
   0xe   :  { %6558 = vst [vmem:[#allocation13_spill] sm:$0xff] %v5106_v63  ;;  %v5115_v4 = vpack.c.bf16 %v65_v3, %v63_v2  ;;  %v72_v35 = vld [vmem:[%s6452_s5 + $0x28] sm:$0xff]  ;;  %v67_v38 = vld [vmem:[%s6452_s5] sm:$0xff]  ;;  %v70_v41 = vld [vmem:[%s6452_s5 + $0x18] sm:$0xff] }
   0xf   :  { %6557 = vst [vmem:[#allocation12_spill] sm:$0xff] %v5103_v62  ;;  %v5158_v39 = vpack.c.bf16 %v72_v35, %v68_v34  ;;  %v71_v40 = vld [vmem:[%s6452_s5 + $0x20] sm:$0xff]  ;;  %v74_v44 = vld [vmem:[%s6452_s5 + $0x38] sm:$0xff]  ;;  %v69_v47 = vld [vmem:[%s6452_s5 + $0x10] sm:$0xff] }
  0x10   :  { %6559 = vst [vmem:[#allocation14_spill] sm:$0xff] %v5115_v4  ;;  %v5169_v45 = vpack.c.bf16 %v71_v40, %v67_v38  ;;  %v5171_v46 = vpack.c.bf16 %v74_v44, %v70_v41  ;;  %v76_v51 = vld [vmem:[%s6452_s5 + $0x48] sm:$0xff]  ;;  %v75_v54 = vld [vmem:[%s6452_s5 + $0x40] sm:$0xff]  ;;  %v78_v60 = vld [vmem:[%s6452_s5 + $0x58] sm:$0xff] }
  0x11   :  { %6562 = vst [vmem:[#allocation17_spill] sm:$0xff] %v5158_v39  ;;  %3619 = vmatprep.subr.bf16.mxu0 %v5158_v39  ;;  %v80_v53 = vld [vmem:[%s6452_s5 + $0x68] sm:$0xff]  ;;  %v82_v61 = vld [vmem:[%s6452_s5 + $0x78] sm:$0xff]  ;;  %v77_v2 = vld [vmem:[%s6452_s5 + $0x50] sm:$0xff] }
  0x12   :  { %6563 = vst [vmem:[#allocation18_spill] sm:$0xff] %v5171_v46  ;;  %3621 = vmatpush1.bf16.msra.mxu0 %v5169_v45  ;;  %v5196_v58 = vpack.c.bf16 %v80_v53, %v76_v51  ;;  %v5210_v3 = vpack.c.bf16 %v82_v61, %v78_v60  ;;  %v95_v38 = vld [vmem:[%s6452_s5 + $0xe0] sm:$0xff]  ;;  %v94_v40 = vld [vmem:[%s6452_s5 + $0xd8] sm:$0xff]  ;;  %v100_v51 = vld [vmem:[%s6452_s5 + $0x108] sm:$0xff] }
  0x13   :  { %v98_v41 = vld [vmem:[%s6452_s5 + $0xf8] sm:$0xff]  ;;  %v104_v53 = vld [vmem:[%s6452_s5 + $0x128] sm:$0xff]  ;;  %v131_v1 = vld [vmem:[%s6452_s5 + $0x200] sm:$0xff] }
  0x14   :  { %3623 = vmatprep.subr.bf16.mxu0 %v5196_v58  ;;  %v5275_v44 = vpack.c.bf16 %v98_v41, %v94_v40  ;;  %v106_v60 = vld [vmem:[%s6452_s5 + $0x138] sm:$0xff]  ;;  %v111_v40 = vld [vmem:[%s6452_s5 + $0x160] sm:$0xff]  ;;  %v109_v41 = vld [vmem:[%s6452_s5 + $0x150] sm:$0xff] }
  0x7b   :  { %v213_v12 = vpop.permute.xlu0 %212 }
  0x7c   :  { %v216_v13 = vsel %vm215_vm3, %v210_v11, %v213_v12  ;;  %v304_v25 = vpop.permute.xlu1 %303 }
  0x7d   :  { %3495 = vmatmul.mubr.msk.f32.vlgmr.msra.gmra.mrb[0].mxu1 %vm217_vm4, %v216_v13 }
  0x7e   :  { %401 = vmatprep.mubr.f32.mxu1 %v6457_v0  ;;  %3597 = vmatpush1.bf16.msra.mxu1 %v5029_v36 }
  0x7f   :  { %3599 = vmatprep.subr.bf16.mxu1 %v5031_v37 }
  0x82   :  { %3601 = vmatpush1.bf16.msra.mxu1 %v5047_v42 }
  0x83   :  { %3603 = vmatprep.subr.bf16.mxu1 %v5050_v43 }
  0x86   :  { %3605 = vmatpush1.bf16.msra.mxu1 %v5065_v48 }
  0x87   :  { %3607 = vmatprep.subr.bf16.mxu1 %v5068_v50 }
  0x8a   :  { %3609 = vmatpush1.bf16.msra.mxu1 %v5084_v56 }
  0x8b   :  { %3611 = vmatprep.subr.bf16.mxu1 %v5087_v57 }
  0x8e   :  { %3613 = vmatpush1.bf16.msra.mxu1 %v5103_v62 }
  0x8f   :  { %3615 = vmatprep.subr.bf16.mxu1 %v5106_v63 }
  0x92   :  { %3617 = vmatpush1.bf16.msra.mxu1 %v5115_v4 }
  0x93   :  { %3667 = vmatprep.subr.bf16.mxu1 %v5171_v46 }
 0x150   :  { %v291_v15 = vpop.f32.mrb[0].mxu1 }
 0x151   :  { %v292_v16 = vadd.f32 %v4993_v14, %v291_v15  ;;  %v3496_v17 = vpop.f32.mrb[1].mxu1  ;;  %v172_v15 = vlaneseq }
 0x153   :  { %4609 = vtanh.f32 %v292_v16  ;;  %v3336_v19 = vmul.f32 -1.442695, %v292_v16  ;;  %v5124_v16 = vshrl.u32 %v172_v15, 7  ;;  %v87_v15 = vld [vmem:[%s6452_s5 + $0xa0] sm:$0xff] }
 0x155   :  { %4611 = vpow2.f32 %v3336_v19  ;;  %v6456_v17 = vsub.s32 0, %v5124_v16 }
 0x15d   :  { %v4610_v18 = vpop.eup %4609 }
 0x15e   :  { %308 = vrot.lane.b32.xlu0 %v4610_v18, %s4906_s17  ;;  %v170_v18 = vld [vmem:[%s6451_s4] sm:$0x3]  ;;  %s4907_s4 = smov 36  }
 0x15f   :  { %v4612_v20 = vpop.eup %4611  ;;  %v5132_v19 = vrot.slane %v170_v18, %v6456_v17 }
 0x160   :  { %v298_v21 = vadd.f32 1.0, %v4612_v20 }
 0x161   :  { %6560 = vst [vmem:[#allocation15_spill] sm:$0xff] %v5132_v19 }
 0x162   :  { %4613 = vrcp.f32 %v298_v21 }
 0x16c   :  { %v4997_v22 = vpop.eup %4613 }
 0x16d   :  { %v306_v26 = vmul.f32 %v4997_v22, %v304_v25 }
 0x1d0   :  { %v309_v23 = vpop.permute.xlu0 %308 }
 0x1d1   :  { %v311_v24 = vmul.f32 %v4997_v22, %v309_v23 }
 0x1d3   :  { %313 = vrot.lane.b32.xlu1 %v311_v24, %s4905_s12  ;;  %v6455_v24 = vsub.s32 1, %v5124_v16 }
 0x1d5   :  { %v5138_v25 = vrot.slane %v170_v18, %v6455_v24  ;;  %v86_v18 = vld [vmem:[%s6452_s5 + $0x98] sm:$0xff]  ;;  %v127_v24 = vld [vmem:[%s6452_s5 + $0x1e0] sm:$0xff] }
 0x1d7   :  { %6561 = vst [vmem:[#allocation16_spill] sm:$0xff] %v5138_v25 }
 0x245   :  { %v314_v27 = vpop.permute.xlu1 %313 }
 0x246   :  { %v5006_v28 = vadd.f32 %v314_v27, %v306_v26 }
 0x248   :  { %4615 = vtanh.f32 %v5006_v28 }
 0x252   :  { %v4616_v49 = vpop.eup %4615 }
 0x253   :  { %319 = vrot.lane.b32.xlu0 %v4616_v49, %s4906_s17  ;;  %v73_v49 = vld [vmem:[%s6452_s5 + $0x30] sm:$0xff] }
 0x254   :  { %v5183_v52 = vpack.c.bf16 %v73_v49, %v69_v47  ;;  %v93_v47 = vld [vmem:[%s6452_s5 + $0xd0] sm:$0xff] }
 0x255   :  { %v97_v49 = vld [vmem:[%s6452_s5 + $0xf0] sm:$0xff] }
 0x256   :  { %v5300_v61 = vpack.c.bf16 %v97_v49, %v93_v47  ;;  %v113_v49 = vld [vmem:[%s6452_s5 + $0x170] sm:$0xff] }
 0x257   :  { %328 = vrot.lane.b32.xlu0 %v206_v55, %s4905_s12  ;;  %v79_v55 = vld [vmem:[%s6452_s5 + $0x60] sm:$0xff] }
 0x258   :  { %v5198_v59 = vpack.c.bf16 %v79_v55, %v75_v54  ;;  %v102_v55 = vld [vmem:[%s6452_s5 + $0x118] sm:$0xff] }
 0x25a   :  { %3625 = vmatpush1.bf16.msra.mxu0 %v5198_v59 }
 0x2c5   :  { %v320_v6 = vpop.permute.xlu0 %319 }
 0x2c6   :  { %v322_v8 = vmul.f32 %v4997_v22, %v320_v6  ;;  %v81_v6 = vld [vmem:[%s6452_s5 + $0x70] sm:$0xff] }
 0x2c8   :  { %324 = vrot.lane.b32.xlu1 %v322_v8, %s4905_s12 }
 0x2c9   :  { %v329_v11 = vpop.permute.xlu0 %328 }
 0x2cc   :  { %422 = vrot.lane.b32.xlu1 %v207_v9, %s4906_s17  ;;  %v88_v9 = vld [vmem:[%s6452_s5 + $0xa8] sm:$0xff] }
 0x33a   :  { %v325_v12 = vpop.permute.xlu1 %324 }
 0x33b   :  { %v332_v13 = vsel %vm30_vm0, %v325_v12, %v329_v11  ;;  %v5222_v11 = vpack.c.bf16 %v81_v6, %v77_v2  ;;  %v5302_v2 = vpack.c.bf16 %v104_v53, %v100_v51  ;;  %v99_v6 = vld [vmem:[%s6452_s5 + $0x100] sm:$0xff]  ;;  %v116_v51 = vld [vmem:[%s6452_s5 + $0x188] sm:$0xff] }
 0x33c   :  { %3337 = vmatmul.mubr.msk.f32.vlgmr.msra.gmra.mrb[2].mxu1 %vm333_vm6, %v332_v13  ;;  %v83_v13 = vld [vmem:[%s6452_s5 + $0x80] sm:$0xff]  ;;  %v120_v53 = vld [vmem:[%s6452_s5 + $0x1a8] sm:$0xff] }
 0x33d   :  { %3669 = vmatpush1.bf16.msra.mxu1 %v5183_v52  ;;  %6564 = vst [vmem:[#allocation19_spill] sm:$0xff] %v5302_v2 }
 0x33e   :  { %3671 = vmatprep.subr.bf16.mxu1 %v5210_v3 }
 0x341   :  { %3673 = vmatpush1.bf16.msra.mxu1 %v5222_v11 }
 0x40f   :  { %v403_v20 = vpop.f32.mrb[2].mxu1 }
 0x410   :  { %v404_v21 = vadd.f32 %v403_v20, %v5132_v19  ;;  %v405_v22 = vpop.f32.mrb[3].mxu1  ;;  %v90_v20 = vld [vmem:[%s6452_s5 + $0xb8] sm:$0xff] }
 0x411   :  { %v5141_v26 = vadd.f32 %v405_v22, %v5138_v25  ;;  %v89_v22 = vld [vmem:[%s6452_s5 + $0xb0] sm:$0xff]  ;;  %v135_v25 = vld [vmem:[%s6452_s5 + $0x220] sm:$0xff] }
 0x412   :  { %v3338_v23 = vmul.f32 -1.442695, %v404_v21  ;;  %v85_v21 = vld [vmem:[%s6452_s5 + $0x90] sm:$0xff] }
 0x413   :  { %v5261_v34 = vpack.c.bf16 %v89_v22, %v85_v21  ;;  %v110_v21 = vld [vmem:[%s6452_s5 + $0x158] sm:$0xff] }
 0x414   :  { %4617 = vpow2.f32 %v3338_v23  ;;  %v5246_v23 = vpack.c.bf16 %v87_v15, %v83_v13  ;;  %v5314_v13 = vpack.c.bf16 %v106_v60, %v102_v55  ;;  %v105_v15 = vld [vmem:[%s6452_s5 + $0x130] sm:$0xff]  ;;  %v114_v22 = vld [vmem:[%s6452_s5 + $0x178] sm:$0xff] }
 0x415   :  { %4619 = vtanh.f32 %v5141_v26  ;;  %v5350_v47 = vpack.c.bf16 %v114_v22, %v110_v21  ;;  %v118_v55 = vld [vmem:[%s6452_s5 + $0x198] sm:$0xff]  ;;  %v121_v22 = vld [vmem:[%s6452_s5 + $0x1b0] sm:$0xff] }
 0x416   :  { %6565 = vst [vmem:[#allocation20_spill] sm:$0xff] %v5314_v13  ;;  %v122_v60 = vld [vmem:[%s6452_s5 + $0x1b8] sm:$0xff] }
 0x417   :  { %6569 = vst [vmem:[#allocation24_spill] sm:$0xff] %v5350_v47  ;;  %v5386_v21 = vpack.c.bf16 %v122_v60, %v118_v55  ;;  %v123_v60 = vld [vmem:[%s6452_s5 + $0x1c0] sm:$0xff] }
 0x419   :  { %6573 = vst [vmem:[#allocation28_spill] sm:$0xff] %v5386_v21 }
 0x41e   :  { %v4618_v27 = vpop.eup %4617 }
 0x41f   :  { %v411_v29 = vadd.f32 1.0, %v4618_v27  ;;  %v4620_v30 = vpop.eup %4619  ;;  %v5248_v27 = vpack.c.bf16 %v90_v20, %v86_v18  ;;  %v108_v18 = vld [vmem:[%s6452_s5 + $0x148] sm:$0xff] }
 0x420   :  { %v112_v20 = vld [vmem:[%s6452_s5 + $0x168] sm:$0xff] }
 0x421   :  { %4621 = vrcp.f32 %v411_v29  ;;  %v92_v29 = vld [vmem:[%s6452_s5 + $0xc8] sm:$0xff]  ;;  %3675 = vmatprep.subr.bf16.mxu1 %v5248_v27 }
 0x422   :  { %3677 = vmatpush1.bf16.msra.mxu1 %v5261_v34 }
 0x423   :  { %3679 = vmatprep.subr.bf16.mxu1 %v5275_v44 }
 0x426   :  { %3681 = vmatpush1.bf16.msra.mxu1 %v5300_v61 }
 0x427   :  { %3683 = vmatprep.subr.bf16.mxu1 %v5314_v13  ;;  %v159_v13 = vld [vmem:[%s6452_s5 + $0x2e0] sm:$0xff] }
 0x42b   :  { %v5144_v31 = vpop.eup %4621 }
 0x42c   :  { %v426_v33 = vmul.f32 %v5144_v31, %v4620_v30  ;;  %v96_v30 = vld [vmem:[%s6452_s5 + $0xe8] sm:$0xff] }
 0x42d   :  { %v5263_v35 = vpack.c.bf16 %v96_v30, %v92_v29 }
 0x42e   :  { %428 = vrot.lane.b32.xlu0 %v426_v33, %s4906_s17  ;;  %v91_v33 = vld [vmem:[%s6452_s5 + $0xc0] sm:$0xff] }
 0x42f   :  { %v5290_v54 = vpack.c.bf16 %v95_v38, %v91_v33  ;;  %v5338_v33 = vpack.c.bf16 %v112_v20, %v108_v18  ;;  %v107_v38 = vld [vmem:[%s6452_s5 + $0x140] sm:$0xff]  ;;  %v117_v20 = vld [vmem:[%s6452_s5 + $0x190] sm:$0xff] }
 0x430   :  { %v119_v18 = vld [vmem:[%s6452_s5 + $0x1a0] sm:$0xff] }
 0x431   :  { %6568 = vst [vmem:[#allocation23_spill] sm:$0xff] %v5338_v33 }
 0x432   :  { %615 = vrot.lane.b32.xlu0 %v322_v8, %s4907_s4  ;;  %v84_v8 = vld [vmem:[%s6452_s5 + $0x88] sm:$0xff] }
 0x433   :  { %v5224_v12 = vpack.c.bf16 %v88_v9, %v84_v8  ;;  %v103_v8 = vld [vmem:[%s6452_s5 + $0x120] sm:$0xff]  ;;  %v101_v9 = vld [vmem:[%s6452_s5 + $0x110] sm:$0xff] }
 0x434   :  { %v5332_v29 = vpack.c.bf16 %v103_v8, %v99_v6  ;;  %v5336_v30 = vpack.c.bf16 %v105_v15, %v101_v9  ;;  %v5368_v6 = vpack.c.bf16 %v111_v40, %v107_v38  ;;  %v5372_v8 = vpack.c.bf16 %v113_v49, %v109_v41  ;;  %v115_v15 = vld [vmem:[%s6452_s5 + $0x180] sm:$0xff]  ;;  %v124_v38 = vld [vmem:[%s6452_s5 + $0x1c8] sm:$0xff]  ;;  %v126_v41 = vld [vmem:[%s6452_s5 + $0x1d8] sm:$0xff] }
 0x435   :  { %3627 = vmatprep.subr.bf16.mxu0 %v5224_v12  ;;  %v5374_v9 = vpack.c.bf16 %v120_v53, %v116_v51  ;;  %v128_v40 = vld [vmem:[%s6452_s5 + $0x1e8] sm:$0xff]  ;;  %v130_v49 = vld [vmem:[%s6452_s5 + $0x1f8] sm:$0xff]  ;;  %v5404_v51 = vpack.c.bf16 %v119_v18, %v115_v15  ;;  %v5408_v53 = vpack.c.bf16 %v121_v22, %v117_v20  ;;  %v125_v15 = vld [vmem:[%s6452_s5 + $0x1d0] sm:$0xff] }
 0x436   :  { %3629 = vmatpush1.bf16.msra.mxu0 %v5246_v23  ;;  %6566 = vst [vmem:[#allocation21_spill] sm:$0xff] %v5332_v29  ;;  %6567 = vst [vmem:[#allocation22_spill] sm:$0xff] %v5336_v30  ;;  %3685 = vmatpush1.bf16.msra.mxu1 %v5336_v30  ;;  %v5410_v55 = vpack.c.bf16 %v128_v40, %v124_v38  ;;  %v5422_v18 = vpack.c.bf16 %v130_v49, %v126_v41  ;;  %v129_v20 = vld [vmem:[%s6452_s5 + $0x1f0] sm:$0xff]  ;;  %v132_v22 = vld [vmem:[%s6452_s5 + $0x208] sm:$0xff] }
 0x437   :  { %3631 = vmatprep.subr.bf16.mxu0 %v5263_v35  ;;  %6570 = vst [vmem:[#allocation25_spill] sm:$0xff] %v5368_v6  ;;  %6571 = vst [vmem:[#allocation26_spill] sm:$0xff] %v5372_v8  ;;  %3687 = vmatprep.subr.bf16.mxu1 %v5350_v47  ;;  %v136_v38 = vld [vmem:[%s6452_s5 + $0x228] sm:$0xff]  ;;  %v134_v40 = vld [vmem:[%s6452_s5 + $0x218] sm:$0xff]  ;;  %v5440_v49 = vpack.c.bf16 %v127_v24, %v123_v60  ;;  %v5444_v17 = vpack.c.bf16 %v129_v20, %v125_v15 }
 0x438   :  { %6572 = vst [vmem:[#allocation27_spill] sm:$0xff] %v5374_v9  ;;  %6574 = vst [vmem:[#allocation29_spill] sm:$0xff] %v5404_v51  ;;  %v138_v41 = vld [vmem:[%s6452_s5 + $0x238] sm:$0xff]  ;;  %v5446_v0 = vpack.c.bf16 %v136_v38, %v132_v22  ;;  %v133_v24 = vld [vmem:[%s6452_s5 + $0x210] sm:$0xff] }
 0x439   :  { %6575 = vst [vmem:[#allocation30_spill] sm:$0xff] %v5408_v53  ;;  %6576 = vst [vmem:[#allocation31_spill] sm:$0xff] %v5410_v55  ;;  %v5458_v60 = vpack.c.bf16 %v138_v41, %v134_v40  ;;  %v137_v15 = vld [vmem:[%s6452_s5 + $0x230] sm:$0xff]  ;;  %v140_v20 = vld [vmem:[%s6452_s5 + $0x248] sm:$0xff]  ;;  %v5476_v41 = vpack.c.bf16 %v135_v25, %v131_v1 }
 0x43a   :  { %3633 = vmatpush1.bf16.msra.mxu0 %v5290_v54  ;;  %3689 = vmatpush1.bf16.msra.mxu1 %v5372_v8  ;;  %6577 = vst [vmem:[#allocation32_spill] sm:$0xff] %v5422_v18  ;;  %6578 = vst [vmem:[#allocation33_spill] sm:$0xff] %v5440_v49  ;;  %v144_v22 = vld [vmem:[%s6452_s5 + $0x268] sm:$0xff]  ;;  %v142_v38 = vld [vmem:[%s6452_s5 + $0x258] sm:$0xff]  ;;  %v5480_v19 = vpack.c.bf16 %v137_v15, %v133_v24 }
 0x43b   :  { %3635 = vmatprep.subr.bf16.mxu0 %v5302_v2  ;;  %3691 = vmatprep.subr.bf16.mxu1 %v5386_v21  ;;  %6579 = vst [vmem:[#allocation34_spill] sm:$0xff] %v5444_v17  ;;  %6580 = vst [vmem:[#allocation35_spill] sm:$0xff] %v5446_v0  ;;  %v146_v40 = vld [vmem:[%s6452_s5 + $0x278] sm:$0xff]  ;;  %v143_v21 = vld [vmem:[%s6452_s5 + $0x260] sm:$0xff] }
 0x43c   :  { %6581 = vst [vmem:[#allocation36_spill] sm:$0xff] %v5458_v60  ;;  %6582 = vst [vmem:[#allocation37_spill] sm:$0xff] %v5476_v41  ;;  %v141_v1 = vld [vmem:[%s6452_s5 + $0x250] sm:$0xff]  ;;  %v5494_v25 = vpack.c.bf16 %v146_v40, %v142_v38  ;;  %v148_v15 = vld [vmem:[%s6452_s5 + $0x288] sm:$0xff] }
 0x43d   :  { %6583 = vst [vmem:[#allocation38_spill] sm:$0xff] %v5480_v19  ;;  %v145_v24 = vld [vmem:[%s6452_s5 + $0x270] sm:$0xff]  ;;  %v154_v38 = vld [vmem:[%s6452_s5 + $0x2b8] sm:$0xff]  ;;  %v147_v8 = vld [vmem:[%s6452_s5 + $0x280] sm:$0xff] }
 0x43e   :  { %3637 = vmatpush1.bf16.msra.mxu0 %v5332_v29  ;;  %3693 = vmatpush1.bf16.msra.mxu1 %v5408_v53  ;;  %v139_v53 = vld [vmem:[%s6452_s5 + $0x240] sm:$0xff]  ;;  %6585 = vst [vmem:[#allocation40_spill] sm:$0xff] %v5494_v25 }
 0x43f   :  { %3639 = vmatprep.subr.bf16.mxu0 %v5338_v33  ;;  %3695 = vmatprep.subr.bf16.mxu1 %v5422_v18  ;;  %v5482_v18 = vpack.c.bf16 %v144_v22, %v140_v20  ;;  %v152_v20 = vld [vmem:[%s6452_s5 + $0x2a8] sm:$0xff]  ;;  %v150_v22 = vld [vmem:[%s6452_s5 + $0x298] sm:$0xff]  ;;  %v5512_v40 = vpack.c.bf16 %v143_v21, %v139_v53  ;;  %v151_v47 = vld [vmem:[%s6452_s5 + $0x2a0] sm:$0xff] }
 0x440   :  { %v149_v21 = vld [vmem:[%s6452_s5 + $0x290] sm:$0xff]  ;;  %v5530_v53 = vpack.c.bf16 %v154_v38, %v150_v22  ;;  %v162_v22 = vld [vmem:[%s6452_s5 + $0x2f8] sm:$0xff]  ;;  %v5548_v38 = vpack.c.bf16 %v151_v47, %v147_v8  ;;  %v155_v30 = vld [vmem:[%s6452_s5 + $0x2c0] sm:$0xff] }
 0x441   :  { %6584 = vst [vmem:[#allocation39_spill] sm:$0xff] %v5482_v18  ;;  %6586 = vst [vmem:[#allocation41_spill] sm:$0xff] %v5512_v40  ;;  %v5566_v8 = vpack.c.bf16 %v159_v13, %v155_v30 }
 0x442   :  { %3641 = vmatpush1.bf16.msra.mxu0 %v5368_v6  ;;  %3697 = vmatpush1.bf16.msra.mxu1 %v5444_v17  ;;  %v5518_v17 = vpack.c.bf16 %v152_v20, %v148_v15  ;;  %6589 = vst [vmem:[#allocation44_spill] sm:$0xff] %v5530_v53  ;;  %v160_v15 = vld [vmem:[%s6452_s5 + $0x2e8] sm:$0xff]  ;;  %v158_v20 = vld [vmem:[%s6452_s5 + $0x2d8] sm:$0xff]  ;;  %6590 = vst [vmem:[#allocation45_spill] sm:$0xff] %v5548_v38 }
 0x443   :  { %3643 = vmatprep.subr.bf16.mxu0 %v5374_v9  ;;  %3699 = vmatprep.subr.bf16.mxu1 %v5458_v60  ;;  %v5516_v60 = vpack.c.bf16 %v145_v24, %v141_v1  ;;  %v153_v1 = vld [vmem:[%s6452_s5 + $0x2b0] sm:$0xff]  ;;  %v156_v24 = vld [vmem:[%s6452_s5 + $0x2c8] sm:$0xff]  ;;  %v5563_v47 = vpack.c.bf16 %v162_v22, %v158_v20  ;;  %6594 = vst [vmem:[#allocation49_spill] sm:$0xff] %v5566_v8 }
 0x444   :  { %6588 = vst [vmem:[#allocation43_spill] sm:$0xff] %v5518_v17 }
 0x445   :  { %6587 = vst [vmem:[#allocation42_spill] sm:$0xff] %v5516_v60  ;;  %6593 = vst [vmem:[#allocation48_spill] sm:$0xff] %v5563_v47 }
 0x446   :  { %3645 = vmatpush1.bf16.msra.mxu0 %v5404_v51  ;;  %3701 = vmatpush1.bf16.msra.mxu1 %v5480_v19  ;;  %v5554_v19 = vpack.c.bf16 %v160_v15, %v156_v24  ;;  %v423_v15 = vpop.permute.xlu1 %422 }
 0x447   :  { %3647 = vmatprep.subr.bf16.mxu0 %v5410_v55  ;;  %3703 = vmatprep.subr.bf16.mxu1 %v5494_v25  ;;  %v5552_v25 = vpack.c.bf16 %v153_v1, %v149_v21  ;;  %v6595_v21 = vmov 0.0|0.0   ;;  %v3339_v1 = vmul.f32 -1.442695, %v5141_v26  ;;  %v425_v22 = vmul.f32 %v5144_v31, %v423_v15 }
 0x448   :  { %6592 = vst [vmem:[#allocation47_spill] sm:$0xff] %v5554_v19  ;;  %v6597_v15 = vmov 0.0  }
 0x449   :  { %6591 = vst [vmem:[#allocation46_spill] sm:$0xff] %v5552_v25  ;;  %4623 = vpow2.f32 %v3339_v1 }
 0x44a   :  { %3649 = vmatpush1.bf16.msra.mxu0 %v5440_v49  ;;  %3705 = vmatpush1.bf16.msra.mxu1 %v5516_v60 }
 0x44b   :  { %3651 = vmatprep.subr.bf16.mxu0 %v5446_v0  ;;  %3707 = vmatprep.subr.bf16.mxu1 %v5530_v53 }
 0x44e   :  { %3653 = vmatpush1.bf16.msra.mxu0 %v5476_v41  ;;  %3709 = vmatpush1.bf16.msra.mxu1 %v5552_v25  ;;  %v161_v25 = vld [vmem:[%s6452_s5 + $0x2f0] sm:$0xff] }
 0x44f   :  { %3655 = vmatprep.subr.bf16.mxu0 %v5482_v18  ;;  %3711 = vmatprep.subr.bf16.mxu1 %v5563_v47  ;;  %v157_v47 = vld [vmem:[%s6452_s5 + $0x2d0] sm:$0xff] }
 0x450   :  { %v5584_v26 = vpack.c.bf16 %v161_v25, %v157_v47  ;;  %v3345_v47 = vld [vmem:[%s6448_s0 + $0x8] sm:$0xff] }
 0x452   :  { %3657 = vmatpush1.bf16.msra.mxu0 %v5512_v40  ;;  %6596 = vst [vmem:[#allocation50_spill] sm:$0xff] %v5584_v26  ;;  %3713 = vmatpush1.bf16.msra.mxu1 %v5584_v26 }
 0x453   :  { %3659 = vmatprep.subr.bf16.mxu0 %v5518_v17  ;;  %v4624_v24 = vpop.eup %4623  ;;  %3745 = vmatprep.subr.bf16.mxu1 %v5158_v39 }
 0x454   :  { %v418_v20 = vadd.f32 1.0, %v4624_v24 }
 0x456   :  { %3661 = vmatpush1.bf16.msra.mxu0 %v5548_v38  ;;  %4625 = vrcp.f32 %v418_v20 }
 0x457   :  { %3663 = vmatprep.subr.bf16.mxu0 %v5554_v19 }
 0x45a   :  { %3665 = vmatpush1.bf16.msra.mxu0 %v5566_v8 }
 0x45b   :  { %3714 = vmatprep.subr.bf16.mxu0 %v6595_v21 }
 0x460   :  { %v4626_v31 = vpop.eup %4625 }
 0x4a0   :  { %v429_v13 = vpop.permute.xlu0 %428 }
 0x4a1   :  { %v5575_v30 = vadd.f32 %v429_v13, %v425_v22 }
 0x4a3   :  { %4627 = vtanh.f32 %v5575_v30 }
 0x4ad   :  { %v4628_v1 = vpop.eup %4627 }
 0x4ae   :  { %v5588_v24 = vmul.f32 %v4628_v1, %v4626_v31  ;;  %v6598_v1 = vsub.s32 0, %v5124_v16 }
 0x4b0   :  { %v4604_v20 = vpack.i.bf16 %v6597_v15, %v5588_v24 }
 0x4b2   :  { %4605 = vrot.lane.b32.xlu1 %v4604_v20, %s4906_s17 }
 0x524   :  { %v4606_v22 = vpop.permute.xlu1 %4605 }
 0x525   :  { %v4608_v13 = vunpack.i.h.bf16 %v4606_v22  ;;  %v4607_v53 = vunpack.i.l.bf16 %v4606_v22  ;;  %v6600_v22 = vsub.s32 1, %v5124_v16 }
 0x527   :  { %3340 = vmatprep.mubr.msk.f32.mxu0 %vm33_vm5, %v4608_v13  ;;  %3341 = vmatprep.mubr.msk.f32.mxu1 %vm33_vm5, %v4608_v13  ;;  %v443_v25 = vsel %vm33_vm5, %v4607_v53, %v4608_v13  ;;  %v616_v53 = vpop.permute.xlu0 %615 }
 0x528   :  { %511 = vmatmul.mubr.f32.vlgmr.msra.gmra.mrb[0].mxu0 %v443_v25  ;;  %582 = vmatmul.mubr.f32.vlgmr.msra.gmra.mrb[4].mxu1 %v443_v25  ;;  %v618_v31 = vsel %vm215_vm3, %v3345_v47, %v616_v53  ;;  %v198_v53 = vsub.s32 3, %v5124_v16 }
 0x529   :  { %3716 = vmatpush3.bf16.msra.mxu0 %v4963_v5  ;;  %3507 = vmatprep.mubr.msk.f32.mxu0 %vm4903_vm1, %v6597_v15 }
 0x52a   :  { %3717 = vmatprep.subr.bf16.mxu0 %v6595_v21  ;;  %3747 = vmatpush1.bf16.msra.mxu1 %v5169_v45 }
 0x52b   :  { %3749 = vmatprep.subr.bf16.mxu1 %v5196_v58 }
 0x52d   :  { %3719 = vmatpush3.bf16.msra.mxu0 %v4971_v7 }
 0x52e   :  { %3505 = vmatprep.subr.mxu0 %v6597_v15  ;;  %3751 = vmatpush1.bf16.msra.mxu1 %v5198_v59 }
 0x52f   :  { %3753 = vmatprep.subr.bf16.mxu1 %v5224_v12 }
 0x531   :  { %3506 = vmatpush3.msk.msra.mxu0 %vm221_vm2, %v4979_v10  ;;  %v182_v10 = vld [vmem:[%s6453_s6] sm:$0xf] }
 0x532   :  { %3508 = vmatmul.mubr.msk.f32.vlgmr.msra.gmra.mrb[2].mxu0 %vm217_vm4, %v618_v31  ;;  %3721 = vmatprep.subr.bf16.mxu0 %v5018_v32  ;;  %v5652_v20 = vrot.slane %v182_v10, %v6598_v1  ;;  %v5656_v13 = vrot.slane %v182_v10, %v6600_v22  ;;  %v194_v1 = vsub.s32 2, %v5124_v16 }
 0x533   :  { %3723 = vmatpush1.bf16.msra.mxu0 %v5029_v36  ;;  %791 = vmatprep.mubr.f32.mxu0 %v6597_v15 }
 0x534   :  { %3725 = vmatprep.subr.bf16.mxu0 %v5031_v37  ;;  %3755 = vmatpush1.bf16.msra.mxu1 %v5246_v23  ;;  %6599 = vst [vmem:[#allocation51_spill] sm:$0xff] %v5652_v20  ;;  %6601 = vst [vmem:[#allocation52_spill] sm:$0xff] %v5656_v13 }
 0x535   :  { %3757 = vmatprep.subr.bf16.mxu1 %v5263_v35 }
 0x537   :  { %3727 = vmatpush1.bf16.msra.mxu0 %v5047_v42 }
 0x538   :  { %3729 = vmatprep.subr.bf16.mxu0 %v5050_v43  ;;  %3759 = vmatpush1.bf16.msra.mxu1 %v5290_v54 }
 0x539   :  { %3761 = vmatprep.subr.bf16.mxu1 %v5302_v2 }
 0x53b   :  { %3731 = vmatpush1.bf16.msra.mxu0 %v5065_v48 }
 0x53c   :  { %3733 = vmatprep.subr.bf16.mxu0 %v5068_v50  ;;  %3763 = vmatpush1.bf16.msra.mxu1 %v5332_v29 }
 0x53d   :  { %3765 = vmatprep.subr.bf16.mxu1 %v5338_v33 }
 0x53f   :  { %3735 = vmatpush1.bf16.msra.mxu0 %v5084_v56 }
 0x540   :  { %3737 = vmatprep.subr.bf16.mxu0 %v5087_v57  ;;  %3767 = vmatpush1.bf16.msra.mxu1 %v5368_v6 }
 0x541   :  { %3769 = vmatprep.subr.bf16.mxu1 %v5374_v9 }
 0x543   :  { %3739 = vmatpush1.bf16.msra.mxu0 %v5103_v62 }
 0x544   :  { %3741 = vmatprep.subr.bf16.mxu0 %v5106_v63  ;;  %3771 = vmatpush1.bf16.msra.mxu1 %v5404_v51 }
 0x545   :  { %3773 = vmatprep.subr.bf16.mxu1 %v5410_v55 }
 0x547   :  { %3743 = vmatpush1.bf16.msra.mxu0 %v5115_v4 }
 0x548   :  { %3793 = vmatprep.subr.bf16.mxu0 %v5171_v46  ;;  %3775 = vmatpush1.bf16.msra.mxu1 %v5440_v49 }
 0x549   :  { %3777 = vmatprep.subr.bf16.mxu1 %v5446_v0 }
 0x54c   :  { %3779 = vmatpush1.bf16.msra.mxu1 %v5476_v41  ;;  %v5665_v41 = vrot.slane %v182_v10, %v194_v1 }
 0x54d   :  { %3781 = vmatprep.subr.bf16.mxu1 %v5482_v18  ;;  %v5661_v18 = vrot.slane %v182_v10, %v198_v53 }
 0x54e   :  { %6603 = vst [vmem:[#allocation54_spill] sm:$0xff] %v5665_v41 }
 0x54f   :  { %6602 = vst [vmem:[#allocation53_spill] sm:$0xff] %v5661_v18 }
 0x550   :  { %3783 = vmatpush1.bf16.msra.mxu1 %v5512_v40 }
 0x551   :  { %3785 = vmatprep.subr.bf16.mxu1 %v5518_v17 }
 0x554   :  { %3787 = vmatpush1.bf16.msra.mxu1 %v5548_v38 }
 0x555   :  { %3789 = vmatprep.subr.bf16.mxu1 %v5554_v19 }
 0x558   :  { %3791 = vmatpush1.bf16.msra.mxu1 %v5566_v8 }
 0x559   :  { %3840 = vmatprep.subr.bf16.mxu1 %v6595_v21 }
 0x5fb   :  { %v512_v25 = vpop.f32.mrb[0].mxu0  ;;  %v583_v47 = vpop.f32.mrb[4].mxu1 }
 0x5fc   :  { %v513_v31 = vadd.f32 %v512_v25, %v5652_v20  ;;  %v514_v8 = vpop.f32.mrb[1].mxu0  ;;  %v585_v19 = vpop.f32.mrb[5].mxu1  ;;  %v584_v46 = vadd.f32 %v583_v47, %v5665_v41 }
 0x5fd   :  { %v515_v38 = vadd.f32 %v514_v8, %v5656_v13  ;;  %v586_v22 = vadd.f32 %v585_v19, %v5661_v18 }
 0x5fe   :  { %v3342_v17 = vmul.f32 -1.442695, %v513_v31 }
 0x5ff   :  { %v3343_v40 = vmul.f32 -1.442695, %v515_v38  ;;  %v3344_v20 = vmul.f32 -1.442695, %v586_v22 }
 0x600   :  { %4629 = vpow2.f32 %v3342_v17 }
 0x601   :  { %4631 = vpow2.f32 %v3343_v40 }
 0x605   :  { %v688_v0 = vpop.f32.mrb[2].mxu0 }
 0x606   :  { %v689_v49 = vadd.f32 %v4993_v14, %v688_v0  ;;  %v3509_v25 = vpop.f32.mrb[3].mxu0 }
 0x608   :  { %4633 = vtanh.f32 %v689_v49  ;;  %v3348_v25 = vmul.f32 -1.442695, %v689_v49 }
 0x609   :  { %4635 = vpow2.f32 %v3344_v20 }
 0x60a   :  { %v4630_v8 = vpop.eup %4629  ;;  %4637 = vtanh.f32 %v584_v46 }
 0x60b   :  { %v4632_v38 = vpop.eup %4631  ;;  %v591_v53 = vadd.f32 1.0, %v4630_v8 }
 0x60c   :  { %v597_v17 = vadd.f32 1.0, %v4632_v38 }
 0x60d   :  { %4639 = vrcp.f32 %v591_v53 }
 0x60e   :  { %4641 = vrcp.f32 %v597_v17 }
 0x612   :  { %v4634_v16 = vpop.eup %4633 }
 0x613   :  { %701 = vrot.lane.b32.xlu1 %v4634_v16, %s4906_s17  ;;  %v4636_v19 = vpop.eup %4635 }
 0x614   :  { %v4638_v40 = vpop.eup %4637  ;;  %v604_v31 = vadd.f32 1.0, %v4636_v19 }
 0x616   :  { %4643 = vrcp.f32 %v604_v31 }
 0x617   :  { %v4640_v10 = vpop.eup %4639 }
 0x618   :  { %v4642_v0 = vpop.eup %4641  ;;  %v608_v14 = vmul.f32 %v4640_v10, %v4638_v40 }
 0x619   :  { %v607_v1 = vmul.f32 0.0, %v4642_v0 }
 0x61b   :  { %v5670_v47 = vadd.f32 %v608_v14, %v607_v1 }
 0x61d   :  { %4645 = vtanh.f32 %v5670_v47 }
 0x61e   :  { %4647 = vpow2.f32 %v3348_v25  ;;  %v6607_v25 = vld [vmem:[#allocation26_spill] sm:$0xff] }
 0x620   :  { %v4644_v20 = vpop.eup %4643 }
 0x627   :  { %v4646_v46 = vpop.eup %4645 }
 0x628   :  { %v5673_v22 = vmul.f32 %v4646_v46, %v4644_v20  ;;  %v4648_v8 = vpop.eup %4647  ;;  %v6605_v20 = vld [vmem:[#allocation22_spill] sm:$0xff]  ;;  %v6606_v46 = vld [vmem:[#allocation24_spill] sm:$0xff] }
 0x629   :  { %v695_v38 = vadd.f32 1.0, %v4648_v8  ;;  %v6608_v8 = vld [vmem:[#allocation28_spill] sm:$0xff] }
 0x62a   :  { %612 = vst [vmem:[%s6454_s7] sm:$0xff] %v5673_v22 }
 0x62b   :  { %4649 = vrcp.f32 %v695_v38  ;;  %v6609_v38 = vld [vmem:[#allocation30_spill] sm:$0xff] }
 0x635   :  { %v4650_v53 = vpop.eup %4649 }
 0x636   :  { %v699_v19 = vmul.f32 %v4650_v53, %v5006_v28 }
 0x685   :  { %v702_v17 = vpop.permute.xlu1 %701 }
 0x686   :  { %v704_v16 = vmul.f32 %v4650_v53, %v702_v17  ;;  %v6611_v17 = vld [vmem:[#allocation34_spill] sm:$0xff] }
 0x688   :  { %706 = vrot.lane.b32.xlu0 %v704_v16, %s4905_s12  ;;  %v6612_v16 = vld [vmem:[#allocation36_spill] sm:$0xff] }
 0x6fa   :  { %v707_v40 = vpop.permute.xlu0 %706 }
 0x6fb   :  { %v5681_v10 = vadd.f32 %v707_v40, %v699_v19  ;;  %v6613_v19 = vld [vmem:[#allocation38_spill] sm:$0xff]  ;;  %v6614_v40 = vld [vmem:[#allocation40_spill] sm:$0xff] }
 0x6fd   :  { %4651 = vtanh.f32 %v5681_v10 }
 0x707   :  { %v4652_v0 = vpop.eup %4651 }
 0x708   :  { %712 = vrot.lane.b32.xlu1 %v4652_v0, %s4906_s17  ;;  %v6615_v0 = vld [vmem:[#allocation44_spill] sm:$0xff] }
 0x70c   :  { %720 = vrot.lane.b32.xlu1 %v5588_v24, %s4908_s3  ;;  %v6604_v24 = vld [vmem:[#allocation20_spill] sm:$0xff] }
 0x77a   :  { %v713_v49 = vpop.permute.xlu1 %712 }
 0x77b   :  { %v715_v14 = vmul.f32 %v4650_v53, %v713_v49  ;;  %v6610_v53 = vld [vmem:[#allocation32_spill] sm:$0xff]  ;;  %v6616_v49 = vld [vmem:[#allocation46_spill] sm:$0xff] }
 0x77d   :  { %717 = vrot.lane.b32.xlu0 %v715_v14, %s4905_s12 }
 0x77e   :  { %v721_v31 = vpop.permute.xlu1 %720 }
 0x7ef   :  { %v718_v1 = vpop.permute.xlu0 %717 }
 0x7f0   :  { %v723_v28 = vsel %vm30_vm0, %v718_v1, %v721_v31  ;;  %v6617_v31 = vld [vmem:[#allocation48_spill] sm:$0xff] }
 0x7f1   :  { %3349 = vmatmul.mubr.msk.f32.vlgmr.msra.gmra.mrb[4].mxu0 %vm333_vm6, %v723_v28  ;;  %v6618_v28 = vld [vmem:[#allocation15_spill] sm:$0xff] }
 0x7f2   :  { %3795 = vmatpush1.bf16.msra.mxu0 %v5183_v52 }
 0x7f3   :  { %3797 = vmatprep.subr.bf16.mxu0 %v5210_v3 }
 0x7f6   :  { %3799 = vmatpush1.bf16.msra.mxu0 %v5222_v11 }
 0x7f7   :  { %3801 = vmatprep.subr.bf16.mxu0 %v5248_v27 }
 0x7fa   :  { %3803 = vmatpush1.bf16.msra.mxu0 %v5261_v34 }
 0x7fb   :  { %3805 = vmatprep.subr.bf16.mxu0 %v5275_v44 }
 0x7fe   :  { %3807 = vmatpush1.bf16.msra.mxu0 %v5300_v61 }
 0x7ff   :  { %3809 = vmatprep.subr.bf16.mxu0 %v6604_v24 }
 0x802   :  { %3811 = vmatpush1.bf16.msra.mxu0 %v6605_v20 }
 0x803   :  { %3813 = vmatprep.subr.bf16.mxu0 %v6606_v46 }
 0x806   :  { %3815 = vmatpush1.bf16.msra.mxu0 %v6607_v25 }
 0x807   :  { %3817 = vmatprep.subr.bf16.mxu0 %v6608_v8 }
 0x80a   :  { %3819 = vmatpush1.bf16.msra.mxu0 %v6609_v38 }
 0x80b   :  { %3821 = vmatprep.subr.bf16.mxu0 %v6610_v53 }
 0x80e   :  { %3823 = vmatpush1.bf16.msra.mxu0 %v6611_v17 }
 0x80f   :  { %3825 = vmatprep.subr.bf16.mxu0 %v6612_v16 }
 0x812   :  { %3827 = vmatpush1.bf16.msra.mxu0 %v6613_v19  ;;  %v6619_v19 = vld [vmem:[#allocation16_spill] sm:$0xff] }
 0x813   :  { %3829 = vmatprep.subr.bf16.mxu0 %v6614_v40 }
 0x816   :  { %3831 = vmatpush1.bf16.msra.mxu0 %v5516_v60 }
 0x817   :  { %3833 = vmatprep.subr.bf16.mxu0 %v6615_v0 }
 0x81a   :  { %3835 = vmatpush1.bf16.msra.mxu0 %v6616_v49 }
 0x81b   :  { %3837 = vmatprep.subr.bf16.mxu0 %v6617_v31 }
 0x81e   :  { %3839 = vmatpush1.bf16.msra.mxu0 %v5584_v26 }
 0x81f   :  { %3871 = vmatprep.subr.bf16.mxu0 %v5158_v39 }
 0x8c4   :  { %v793_v1 = vpop.f32.mrb[4].mxu0 }
 0x8c5   :  { %v794_v17 = vadd.f32 %v793_v1, %v6618_v28  ;;  %v795_v16 = vpop.f32.mrb[5].mxu0 }
 0x8c6   :  { %v796_v40 = vadd.f32 %v795_v16, %v6619_v19 }
 0x8c7   :  { %v3350_v53 = vmul.f32 -1.442695, %v794_v17 }
 0x8c8   :  { %v3351_v39 = vmul.f32 -1.442695, %v796_v40 }
 0x8c9   :  { %4653 = vpow2.f32 %v3350_v53 }
 0x8ca   :  { %4655 = vtanh.f32 %v796_v40 }
 0x8d3   :  { %v4654_v38 = vpop.eup %4653 }
 0x8d4   :  { %v801_v60 = vadd.f32 1.0, %v4654_v38  ;;  %v4656_v0 = vpop.eup %4655 }
 0x8d6   :  { %4657 = vrcp.f32 %v801_v60 }
 0x8d7   :  { %4659 = vpow2.f32 %v3351_v39 }
 0x8e0   :  { %v4658_v49 = vpop.eup %4657 }
 0x8e1   :  { %v812_v8 = vmul.f32 %v4658_v49, %v4656_v0  ;;  %v4660_v1 = vpop.eup %4659  ;;  %v811_v53 = vmul.f32 %v4658_v49, %v5575_v30  ;;  %v5748_v49 = vld [vmem:[%s6447_s1 + $0x20] sm:$0xf] }
 0x8e2   :  { %v808_v28 = vadd.f32 1.0, %v4660_v1  ;;  %v6621_v1 = vld [vmem:[#allocation33_spill] sm:$0xff] }
 0x8e3   :  { %814 = vrot.lane.b32.xlu0 %v812_v8, %s4906_s17 }
 0x8e4   :  { %4661 = vrcp.f32 %v808_v28  ;;  %v6620_v28 = vld [vmem:[#allocation18_spill] sm:$0xff] }
 0x8e7   :  { %825 = vrot.lane.b32.xlu0 %v5673_v22, %s4906_s17 }
 0x8ee   :  { %v4662_v8 = vpop.eup %4661 }
 0x955   :  { %v815_v17 = vpop.permute.xlu0 %814 }
 0x956   :  { %v5720_v16 = vadd.f32 %v815_v17, %v811_v53  ;;  %v6622_v53 = vld [vmem:[#allocation35_spill] sm:$0xff]  ;;  %v6623_v17 = vld [vmem:[#allocation37_spill] sm:$0xff] }
 0x958   :  { %4663 = vtanh.f32 %v5720_v16 }
 0x959   :  { %v826_v60 = vpop.permute.xlu0 %825 }
 0x95a   :  { %3352 = vmatprep.mubr.msk.f32.mxu1 %vm33_vm5, %v826_v60  ;;  %3353 = vmatprep.mubr.msk.f32.mxu0 %vm33_vm5, %v826_v60 }
 0x962   :  { %v4664_v38 = vpop.eup %4663 }
 0x963   :  { %v5725_v22 = vmul.f32 %v4664_v38, %v4662_v8  ;;  %v6625_v8 = vld [vmem:[#allocation41_spill] sm:$0xff]  ;;  %v6626_v38 = vld [vmem:[#allocation43_spill] sm:$0xff] }
 0x965   :  { %821 = vrot.lane.b32.xlu1 %v5725_v22, %s4906_s17 }
 0x969   :  { %1001 = vrot.lane.b32.xlu1 %v715_v14, %s4907_s4  ;;  %v3358_v14 = vld [vmem:[%s6448_s0 + $0x10] sm:$0xff] }
 0x9d7   :  { %v822_v39 = vpop.permute.xlu1 %821 }
 0x9d8   :  { %v828_v30 = vsel %vm33_vm5, %v822_v39, %v826_v60  ;;  %v6624_v60 = vld [vmem:[#allocation39_spill] sm:$0xff]  ;;  %v6627_v39 = vld [vmem:[#allocation45_spill] sm:$0xff] }
 0x9d9   :  { %896 = vmatmul.mubr.f32.vlgmr.msra.gmra.mrb[6].mxu1 %v828_v30  ;;  %967 = vmatmul.mubr.f32.vlgmr.msra.gmra.mrb[6].mxu0 %v828_v30  ;;  %v6628_v30 = vld [vmem:[#allocation47_spill] sm:$0xff] }
 0x9da   :  { %3842 = vmatpush3.bf16.msra.mxu1 %v4963_v5  ;;  %3520 = vmatprep.mubr.msk.f32.mxu1 %vm4903_vm1, %v6597_v15 }
 0x9db   :  { %3843 = vmatprep.subr.bf16.mxu1 %v6595_v21  ;;  %3873 = vmatpush1.bf16.msra.mxu0 %v5169_v45  ;;  %v1002_v40 = vpop.permute.xlu1 %1001 }
 0x9dc   :  { %3875 = vmatprep.subr.bf16.mxu0 %v5196_v58  ;;  %v1004_v0 = vsel %vm215_vm3, %v3358_v14, %v1002_v40  ;;  %v6629_v14 = vld [vmem:[#allocation49_spill] sm:$0xff] }
 0x9de   :  { %3845 = vmatpush3.bf16.msra.mxu1 %v4971_v7 }
 0x9df   :  { %3518 = vmatprep.subr.mxu1 %v6597_v15  ;;  %3877 = vmatpush1.bf16.msra.mxu0 %v5198_v59 }
 0x9e0   :  { %3879 = vmatprep.subr.bf16.mxu0 %v5224_v12 }
 0x9e2   :  { %3519 = vmatpush3.msk.msra.mxu1 %vm221_vm2, %v5748_v49 }
 0x9e3   :  { %3521 = vmatmul.mubr.msk.f32.vlgmr.msra.gmra.mrb[8].mxu1 %vm217_vm4, %v1004_v0  ;;  %3847 = vmatprep.subr.bf16.mxu1 %v5018_v32 }
 0x9e4   :  { %3849 = vmatpush1.bf16.msra.mxu1 %v5029_v36  ;;  %1177 = vmatprep.mubr.f32.mxu1 %v6597_v15 }
 0x9e5   :  { %3851 = vmatprep.subr.bf16.mxu1 %v5031_v37  ;;  %3881 = vmatpush1.bf16.msra.mxu0 %v5246_v23 }
 0x9e6   :  { %3883 = vmatprep.subr.bf16.mxu0 %v5263_v35 }
 0x9e8   :  { %3853 = vmatpush1.bf16.msra.mxu1 %v5047_v42 }
 0x9e9   :  { %3855 = vmatprep.subr.bf16.mxu1 %v5050_v43  ;;  %3885 = vmatpush1.bf16.msra.mxu0 %v5290_v54 }
 0x9ea   :  { %3887 = vmatprep.subr.bf16.mxu0 %v5302_v2 }
 0x9ec   :  { %3857 = vmatpush1.bf16.msra.mxu1 %v5065_v48 }
 0x9ed   :  { %3859 = vmatprep.subr.bf16.mxu1 %v5068_v50  ;;  %3889 = vmatpush1.bf16.msra.mxu0 %v5332_v29 }
 0x9ee   :  { %3891 = vmatprep.subr.bf16.mxu0 %v5338_v33 }
 0x9f0   :  { %3861 = vmatpush1.bf16.msra.mxu1 %v5084_v56 }
 0x9f1   :  { %3863 = vmatprep.subr.bf16.mxu1 %v5087_v57  ;;  %3893 = vmatpush1.bf16.msra.mxu0 %v5368_v6 }
 0x9f2   :  { %3895 = vmatprep.subr.bf16.mxu0 %v5374_v9 }
 0x9f4   :  { %3865 = vmatpush1.bf16.msra.mxu1 %v5103_v62 }
 0x9f5   :  { %3867 = vmatprep.subr.bf16.mxu1 %v5106_v63  ;;  %3897 = vmatpush1.bf16.msra.mxu0 %v5404_v51 }
 0x9f6   :  { %3899 = vmatprep.subr.bf16.mxu0 %v5410_v55 }
 0x9f8   :  { %3869 = vmatpush1.bf16.msra.mxu1 %v5115_v4 }
 0x9f9   :  { %3919 = vmatprep.subr.bf16.mxu1 %v6620_v28  ;;  %3901 = vmatpush1.bf16.msra.mxu0 %v6621_v1  ;;  %v6630_v1 = vld [vmem:[#allocation51_spill] sm:$0xff] }
 0x9fa   :  { %3903 = vmatprep.subr.bf16.mxu0 %v6622_v53 }
 0x9fd   :  { %3905 = vmatpush1.bf16.msra.mxu0 %v6623_v17 }
 0x9fe   :  { %3907 = vmatprep.subr.bf16.mxu0 %v6624_v60 }
 0xa01   :  { %3909 = vmatpush1.bf16.msra.mxu0 %v6625_v8 }
 0xa02   :  { %3911 = vmatprep.subr.bf16.mxu0 %v6626_v38 }
 0xa05   :  { %3913 = vmatpush1.bf16.msra.mxu0 %v6627_v39 }
 0xa06   :  { %3915 = vmatprep.subr.bf16.mxu0 %v6628_v30 }
 0xa09   :  { %3917 = vmatpush1.bf16.msra.mxu0 %v6629_v14  ;;  %v5793_v14 = vld [vmem:[%s6449_s2] ss:$0 sm:$0xff] }
 0xa0a   :  { %3966 = vmatprep.subr.bf16.mxu0 %v6595_v21 }
 0xaac   :  { %v897_v40 = vpop.f32.mrb[6].mxu1  ;;  %v968_v0 = vpop.f32.mrb[6].mxu0 }
 0xaad   :  { %v898_v53 = vadd.f32 %v897_v40, %v6630_v1  ;;  %v899_v28 = vpop.f32.mrb[7].mxu1  ;;  %v970_v17 = vpop.f32.mrb[7].mxu0  ;;  %v969_v1 = vadd.f32 %v968_v0, %v5665_v41 }
 0xaae   :  { %v900_v60 = vadd.f32 %v899_v28, %v5656_v13  ;;  %v971_v39 = vadd.f32 %v970_v17, %v5661_v18 }
 0xaaf   :  { %v3354_v4 = vmul.f32 -1.442695, %v898_v53 }
 0xab0   :  { %v3355_v8 = vmul.f32 -1.442695, %v900_v60  ;;  %v3356_v40 = vmul.f32 -1.442695, %v971_v39 }
 0xab1   :  { %4665 = vpow2.f32 %v3354_v4 }
 0xab2   :  { %4667 = vpow2.f32 %v3355_v8 }
 0xab6   :  { %v1074_v38 = vpop.f32.mrb[8].mxu1 }
 0xab7   :  { %v1075_v30 = vadd.f32 %v5793_v14, %v1074_v38  ;;  %v3522_v55 = vpop.f32.mrb[9].mxu1 }
 0xab9   :  { %4669 = vtanh.f32 %v1075_v30 }
 0xaba   :  { %4671 = vpow2.f32 %v3356_v40 }
 0xabb   :  { %v4666_v28 = vpop.eup %4665  ;;  %4673 = vtanh.f32 %v969_v1 }
 0xabc   :  { %v4668_v53 = vpop.eup %4667  ;;  %v976_v60 = vadd.f32 1.0, %v4666_v28 }
 0xabd   :  { %v982_v4 = vadd.f32 1.0, %v4668_v53  ;;  %v3361_v53 = vmul.f32 -1.442695, %v1075_v30 }
 0xabe   :  { %4675 = vrcp.f32 %v976_v60 }
 0xabf   :  { %4677 = vrcp.f32 %v982_v4 }
 0xac3   :  { %v4670_v17 = vpop.eup %4669 }
 0xac4   :  { %1087 = vrot.lane.b32.xlu0 %v4670_v17, %s4906_s17  ;;  %v4672_v8 = vpop.eup %4671 }
 0xac5   :  { %v4674_v18 = vpop.eup %4673  ;;  %v989_v39 = vadd.f32 1.0, %v4672_v8 }
 0xac7   :  { %4679 = vrcp.f32 %v989_v39 }
 0xac8   :  { %v4676_v13 = vpop.eup %4675 }
 0xac9   :  { %v4678_v38 = vpop.eup %4677  ;;  %v993_v55 = vmul.f32 %v4676_v13, %v4674_v18 }
 0xaca   :  { %v992_v0 = vmul.f32 %v4678_v38, %v5670_v47 }
 0xacc   :  { %v5799_v41 = vadd.f32 %v993_v55, %v992_v0 }
 0xace   :  { %4681 = vtanh.f32 %v5799_v41 }
 0xacf   :  { %4683 = vpow2.f32 %v3361_v53  ;;  %v6633_v53 = vld [vmem:[#allocation32_spill] sm:$0xff] }
 0xad1   :  { %v4680_v1 = vpop.eup %4679 }
 0xad8   :  { %v4682_v40 = vpop.eup %4681 }
 0xad9   :  { %v996_v28 = vmul.f32 %v4682_v40, %v4680_v1  ;;  %v4684_v60 = vpop.eup %4683 }
 0xada   :  { %v1081_v4 = vadd.f32 1.0, %v4684_v60  ;;  %v6634_v60 = vld [vmem:[#allocation34_spill] sm:$0xff] }
 0xadb   :  { %3357 = vst [vmem:[%s6454_s7 + $0x8] sm:$0xff] %v996_v28 }
 0xadc   :  { %4685 = vrcp.f32 %v1081_v4  ;;  %v6635_v4 = vld [vmem:[#allocation36_spill] sm:$0xff] }
 0xae6   :  { %v4686_v18 = vpop.eup %4685 }
 0xae7   :  { %v1085_v17 = vmul.f32 %v4686_v18, %v5681_v10  ;;  %v6631_v10 = vld [vmem:[#allocation28_spill] sm:$0xff] }
 0xb36   :  { %v1088_v13 = vpop.permute.xlu0 %1087 }
 0xb37   :  { %v1090_v47 = vmul.f32 %v4686_v18, %v1088_v13  ;;  %v6637_v13 = vld [vmem:[#allocation40_spill] sm:$0xff] }
 0xb39   :  { %1092 = vrot.lane.b32.xlu1 %v1090_v47, %s4905_s12  ;;  %v6638_v47 = vld [vmem:[#allocation42_spill] sm:$0xff] }
 0xbab   :  { %v1093_v8 = vpop.permute.xlu1 %1092 }
 0xbac   :  { %v5807_v38 = vadd.f32 %v1093_v8, %v1085_v17  ;;  %v6639_v17 = vld [vmem:[#allocation44_spill] sm:$0xff]  ;;  %v6640_v8 = vld [vmem:[#allocation46_spill] sm:$0xff] }
 0xbae   :  { %4687 = vtanh.f32 %v5807_v38 }
 0xbb8   :  { %v4688_v55 = vpop.eup %4687 }
 0xbb9   :  { %1098 = vrot.lane.b32.xlu0 %v4688_v55, %s4906_s17  ;;  %v6641_v55 = vld [vmem:[#allocation17_spill] sm:$0xff] }
 0xbbd   :  { %1106 = vrot.lane.b32.xlu0 %v5725_v22, %s4908_s3  ;;  %v6632_v22 = vld [vmem:[#allocation30_spill] sm:$0xff] }
 0xc2b   :  { %v1099_v30 = vpop.permute.xlu0 %1098 }
 0xc2c   :  { %v1101_v39 = vmul.f32 %v4686_v18, %v1099_v30  ;;  %v6636_v18 = vld [vmem:[#allocation38_spill] sm:$0xff] }
 0xc2e   :  { %1103 = vrot.lane.b32.xlu1 %v1101_v39, %s4905_s12 }
 0xc2f   :  { %v1107_v0 = vpop.permute.xlu0 %1106 }
 0xca0   :  { %v1104_v1 = vpop.permute.xlu1 %1103 }
 0xca1   :  { %v1109_v40 = vsel %vm30_vm0, %v1104_v1, %v1107_v0  ;;  %v6642_v0 = vld [vmem:[#allocation15_spill] sm:$0xff] }
 0xca2   :  { %3362 = vmatmul.mubr.msk.f32.vlgmr.msra.gmra.mrb[10].mxu1 %vm333_vm6, %v1109_v40 }
 0xca3   :  { %3921 = vmatpush1.bf16.msra.mxu1 %v5183_v52 }
 0xca4   :  { %3923 = vmatprep.subr.bf16.mxu1 %v5210_v3 }
 0xca7   :  { %3925 = vmatpush1.bf16.msra.mxu1 %v5222_v11 }
 0xca8   :  { %3927 = vmatprep.subr.bf16.mxu1 %v5248_v27 }
 0xcab   :  { %3929 = vmatpush1.bf16.msra.mxu1 %v5261_v34 }
 0xcac   :  { %3931 = vmatprep.subr.bf16.mxu1 %v5275_v44 }
 0xcaf   :  { %3933 = vmatpush1.bf16.msra.mxu1 %v5300_v61 }
 0xcb0   :  { %3935 = vmatprep.subr.bf16.mxu1 %v6604_v24 }
 0xcb3   :  { %3937 = vmatpush1.bf16.msra.mxu1 %v6605_v20 }
 0xcb4   :  { %3939 = vmatprep.subr.bf16.mxu1 %v6606_v46 }
 0xcb7   :  { %3941 = vmatpush1.bf16.msra.mxu1 %v6607_v25 }
 0xcb8   :  { %3943 = vmatprep.subr.bf16.mxu1 %v6631_v10 }
 0xcbb   :  { %3945 = vmatpush1.bf16.msra.mxu1 %v6632_v22 }
 0xcbc   :  { %3947 = vmatprep.subr.bf16.mxu1 %v6633_v53 }
 0xcbf   :  { %3949 = vmatpush1.bf16.msra.mxu1 %v6634_v60 }
 0xcc0   :  { %3951 = vmatprep.subr.bf16.mxu1 %v6635_v4 }
 0xcc3   :  { %3953 = vmatpush1.bf16.msra.mxu1 %v6636_v18 }
 0xcc4   :  { %3955 = vmatprep.subr.bf16.mxu1 %v6637_v13 }
 0xcc7   :  { %3957 = vmatpush1.bf16.msra.mxu1 %v6638_v47 }
 0xcc8   :  { %3959 = vmatprep.subr.bf16.mxu1 %v6639_v17 }
 0xccb   :  { %3961 = vmatpush1.bf16.msra.mxu1 %v6640_v8 }
 0xccc   :  { %3963 = vmatprep.subr.bf16.mxu1 %v6617_v31 }
 0xccf   :  { %3965 = vmatpush1.bf16.msra.mxu1 %v5584_v26 }
 0xcd0   :  { %3997 = vmatprep.subr.bf16.mxu1 %v6641_v55 }
 0xd75   :  { %v1179_v30 = vpop.f32.mrb[10].mxu1 }
 0xd76   :  { %v1180_v1 = vadd.f32 %v1179_v30, %v6642_v0  ;;  %v1181_v40 = vpop.f32.mrb[11].mxu1 }
 0xd77   :  { %v1182_v13 = vadd.f32 %v1181_v40, %v6619_v19  ;;  %v6645_v40 = vld [vmem:[#allocation18_spill] sm:$0xff] }
 0xd78   :  { %v3363_v4 = vmul.f32 -1.442695, %v1180_v1 }
 0xd79   :  { %v3364_v55 = vmul.f32 -1.442695, %v1182_v13 }
 0xd7a   :  { %4689 = vpow2.f32 %v3363_v4 }
 0xd7b   :  { %4691 = vtanh.f32 %v1182_v13 }
 0xd84   :  { %v4690_v18 = vpop.eup %4689 }
 0xd85   :  { %v1187_v47 = vadd.f32 1.0, %v4690_v18  ;;  %v4692_v17 = vpop.eup %4691 }
 0xd87   :  { %4693 = vrcp.f32 %v1187_v47 }
 0xd88   :  { %4695 = vpow2.f32 %v3364_v55  ;;  %v6644_v55 = vld [vmem:[#allocation14_spill] sm:$0xff] }
 0xd91   :  { %v4694_v8 = vpop.eup %4693 }
 0xd92   :  { %v1198_v60 = vmul.f32 %v4694_v8, %v4692_v17  ;;  %v4696_v26 = vpop.eup %4695  ;;  %v1197_v1 = vmul.f32 %v4694_v8, %v5720_v16  ;;  %v6643_v8 = vld [vmem:[#allocation31_spill] sm:$0xff] }
 0xd93   :  { %v1194_v30 = vadd.f32 1.0, %v4696_v26 }
 0xd94   :  { %1200 = vrot.lane.b32.xlu1 %v1198_v60, %s4906_s17 }
 0xd95   :  { %4697 = vrcp.f32 %v1194_v30  ;;  %v6646_v30 = vld [vmem:[#allocation33_spill] sm:$0xff] }
 0xd98   :  { %1211 = vrot.lane.b32.xlu1 %v996_v28, %s4906_s17 }
 0xd9f   :  { %v4698_v60 = vpop.eup %4697 }
 0xe06   :  { %v1201_v4 = vpop.permute.xlu1 %1200 }
 0xe07   :  { %v5845_v0 = vadd.f32 %v1201_v4, %v1197_v1  ;;  %v6647_v1 = vld [vmem:[#allocation35_spill] sm:$0xff]  ;;  %v6648_v4 = vld [vmem:[#allocation37_spill] sm:$0xff] }
 0xe09   :  { %4699 = vtanh.f32 %v5845_v0 }
 0xe0a   :  { %v1212_v18 = vpop.permute.xlu1 %1211 }
 0xe0b   :  { %3365 = vmatprep.mubr.msk.f32.mxu0 %vm33_vm5, %v1212_v18  ;;  %3366 = vmatprep.mubr.msk.f32.mxu1 %vm33_vm5, %v1212_v18 }
 0xe13   :  { %v4700_v47 = vpop.eup %4699 }
 0xe14   :  { %v5850_v28 = vmul.f32 %v4700_v47, %v4698_v60  ;;  %v6650_v60 = vld [vmem:[#allocation41_spill] sm:$0xff]  ;;  %v6651_v47 = vld [vmem:[#allocation43_spill] sm:$0xff] }
 0xe16   :  { %1207 = vrot.lane.b32.xlu0 %v5850_v28, %s4906_s17 }
 0xe1a   :  { %1387 = vrot.lane.b32.xlu0 %v1101_v39, %s4907_s4  ;;  %v3371_v39 = vld [vmem:[%s6448_s0 + $0x18] sm:$0xff] }
 0xe88   :  { %v1208_v26 = vpop.permute.xlu0 %1207 }
 0xe89   :  { %v1214_v16 = vsel %vm33_vm5, %v1208_v26, %v1212_v18  ;;  %v6649_v18 = vld [vmem:[#allocation39_spill] sm:$0xff]  ;;  %v6652_v26 = vld [vmem:[#allocation45_spill] sm:$0xff] }
 0xe8a   :  { %1282 = vmatmul.mubr.f32.vlgmr.msra.gmra.mrb[8].mxu0 %v1214_v16  ;;  %1353 = vmatmul.mubr.f32.vlgmr.msra.gmra.mrb[12].mxu1 %v1214_v16  ;;  %v6653_v16 = vld [vmem:[#allocation47_spill] sm:$0xff] }
 0xe8b   :  { %3968 = vmatpush3.bf16.msra.mxu0 %v4963_v5  ;;  %3533 = vmatprep.mubr.msk.f32.mxu0 %vm4903_vm1, %v6597_v15 }
 0xe8c   :  { %3969 = vmatprep.subr.bf16.mxu0 %v6595_v21  ;;  %3999 = vmatpush1.bf16.msra.mxu1 %v5169_v45  ;;  %v1388_v13 = vpop.permute.xlu0 %1387 }
 0xe8d   :  { %4001 = vmatprep.subr.bf16.mxu1 %v5196_v58  ;;  %v1390_v17 = vsel %vm215_vm3, %v3371_v39, %v1388_v13  ;;  %v6654_v39 = vld [vmem:[#allocation49_spill] sm:$0xff] }
 0xe8f   :  { %3971 = vmatpush3.bf16.msra.mxu0 %v4971_v7 }
 0xe90   :  { %3531 = vmatprep.subr.mxu0 %v6597_v15  ;;  %4003 = vmatpush1.bf16.msra.mxu1 %v5198_v59 }
 0xe91   :  { %4005 = vmatprep.subr.bf16.mxu1 %v5224_v12 }
 0xe93   :  { %3532 = vmatpush3.msk.msra.mxu0 %vm221_vm2, %v5748_v49 }
 0xe94   :  { %3534 = vmatmul.mubr.msk.f32.vlgmr.msra.gmra.mrb[10].mxu0 %vm217_vm4, %v1390_v17  ;;  %3973 = vmatprep.subr.bf16.mxu0 %v5018_v32 }
 0xe95   :  { %3975 = vmatpush1.bf16.msra.mxu0 %v5029_v36  ;;  %1563 = vmatprep.mubr.f32.mxu0 %v6597_v15 }
 0xe96   :  { %3977 = vmatprep.subr.bf16.mxu0 %v5031_v37  ;;  %4007 = vmatpush1.bf16.msra.mxu1 %v5246_v23 }
 0xe97   :  { %4009 = vmatprep.subr.bf16.mxu1 %v5263_v35 }
 0xe99   :  { %3979 = vmatpush1.bf16.msra.mxu0 %v5047_v42 }
 0xe9a   :  { %3981 = vmatprep.subr.bf16.mxu0 %v5050_v43  ;;  %4011 = vmatpush1.bf16.msra.mxu1 %v5290_v54 }
 0xe9b   :  { %4013 = vmatprep.subr.bf16.mxu1 %v5302_v2 }
 0xe9d   :  { %3983 = vmatpush1.bf16.msra.mxu0 %v5065_v48 }
 0xe9e   :  { %3985 = vmatprep.subr.bf16.mxu0 %v5068_v50  ;;  %4015 = vmatpush1.bf16.msra.mxu1 %v5332_v29 }
 0xe9f   :  { %4017 = vmatprep.subr.bf16.mxu1 %v5338_v33 }
 0xea1   :  { %3987 = vmatpush1.bf16.msra.mxu0 %v5084_v56 }
 0xea2   :  { %3989 = vmatprep.subr.bf16.mxu0 %v5087_v57  ;;  %4019 = vmatpush1.bf16.msra.mxu1 %v5368_v6 }
 0xea3   :  { %4021 = vmatprep.subr.bf16.mxu1 %v5374_v9 }
 0xea5   :  { %3991 = vmatpush1.bf16.msra.mxu0 %v5103_v62  ;;  %v6658_v62 = vld [vmem:[#allocation54_spill] sm:$0xff] }
 0xea6   :  { %3993 = vmatprep.subr.bf16.mxu0 %v5106_v63  ;;  %4023 = vmatpush1.bf16.msra.mxu1 %v5404_v51 }
 0xea7   :  { %4025 = vmatprep.subr.bf16.mxu1 %v6643_v8 }
 0xea9   :  { %3995 = vmatpush1.bf16.msra.mxu0 %v6644_v55  ;;  %v6656_v55 = vld [vmem:[#allocation52_spill] sm:$0xff] }
 0xeaa   :  { %4045 = vmatprep.subr.bf16.mxu0 %v6645_v40  ;;  %4027 = vmatpush1.bf16.msra.mxu1 %v6646_v30  ;;  %v6655_v30 = vld [vmem:[#allocation51_spill] sm:$0xff] }
 0xeab   :  { %4029 = vmatprep.subr.bf16.mxu1 %v6647_v1 }
 0xeae   :  { %4031 = vmatpush1.bf16.msra.mxu1 %v6648_v4 }
 0xeaf   :  { %4033 = vmatprep.subr.bf16.mxu1 %v6649_v18 }
 0xeb2   :  { %4035 = vmatpush1.bf16.msra.mxu1 %v6650_v60 }
 0xeb3   :  { %4037 = vmatprep.subr.bf16.mxu1 %v6651_v47  ;;  %v6657_v47 = vld [vmem:[#allocation53_spill] sm:$0xff] }
 0xeb6   :  { %4039 = vmatpush1.bf16.msra.mxu1 %v6652_v26 }
 0xeb7   :  { %4041 = vmatprep.subr.bf16.mxu1 %v6653_v16 }
 0xeba   :  { %4043 = vmatpush1.bf16.msra.mxu1 %v6654_v39 }
 0xebb   :  { %4092 = vmatprep.subr.bf16.mxu1 %v6595_v21 }
 0xf5d   :  { %v1283_v13 = vpop.f32.mrb[8].mxu0  ;;  %v1354_v17 = vpop.f32.mrb[12].mxu1 }
 0xf5e   :  { %v1284_v1 = vadd.f32 %v1283_v13, %v6655_v30  ;;  %v1285_v40 = vpop.f32.mrb[9].mxu0  ;;  %v1356_v4 = vpop.f32.mrb[13].mxu1  ;;  %v1355_v9 = vadd.f32 %v1354_v17, %v6658_v62 }
 0xf5f   :  { %v1286_v18 = vadd.f32 %v1285_v40, %v6656_v55  ;;  %v1357_v26 = vadd.f32 %v1356_v4, %v6657_v47 }
 0xf60   :  { %v3367_v8 = vmul.f32 -1.442695, %v1284_v1 }
 0xf61   :  { %v3368_v60 = vmul.f32 -1.442695, %v1286_v18  ;;  %v3369_v63 = vmul.f32 -1.442695, %v1357_v26 }
 0xf62   :  { %4701 = vpow2.f32 %v3367_v8 }
 0xf63   :  { %4703 = vpow2.f32 %v3368_v60 }
 0xf67   :  { %v1460_v51 = vpop.f32.mrb[10].mxu0 }
 0xf68   :  { %v1461_v16 = vadd.f32 %v5793_v14, %v1460_v51  ;;  %v3535_v39 = vpop.f32.mrb[11].mxu0 }
 0xf6a   :  { %4705 = vtanh.f32 %v1461_v16 }
 0xf6b   :  { %4707 = vpow2.f32 %v3369_v63 }
 0xf6c   :  { %v4702_v6 = vpop.eup %4701  ;;  %4709 = vtanh.f32 %v1355_v9 }
 0xf6d   :  { %v4704_v13 = vpop.eup %4703  ;;  %v1362_v30 = vadd.f32 1.0, %v4702_v6 }
 0xf6e   :  { %v1368_v40 = vadd.f32 1.0, %v4704_v13 }
 0xf6f   :  { %4711 = vrcp.f32 %v1362_v30  ;;  %v3374_v30 = vmul.f32 -1.442695, %v1461_v16 }
 0xf70   :  { %4713 = vrcp.f32 %v1368_v40 }
 0xf74   :  { %v4706_v8 = vpop.eup %4705 }
 0xf75   :  { %1473 = vrot.lane.b32.xlu1 %v4706_v8, %s4906_s17  ;;  %v4708_v1 = vpop.eup %4707 }
 0xf76   :  { %v4710_v4 = vpop.eup %4709  ;;  %v1375_v26 = vadd.f32 1.0, %v4708_v1 }
 0xf78   :  { %4715 = vrcp.f32 %v1375_v26 }
 0xf79   :  { %v4712_v18 = vpop.eup %4711 }
 0xf7a   :  { %v4714_v51 = vpop.eup %4713  ;;  %v1379_v60 = vmul.f32 %v4712_v18, %v4710_v4 }
 0xf7b   :  { %v1378_v39 = vmul.f32 %v4714_v51, %v5799_v41 }
 0xf7d   :  { %v5914_v17 = vadd.f32 %v1379_v60, %v1378_v39 }
 0xf7f   :  { %4717 = vtanh.f32 %v5914_v17 }
 0xf80   :  { %4719 = vpow2.f32 %v3374_v30  ;;  %v6661_v30 = vld [vmem:[#allocation38_spill] sm:$0xff] }
 0xf82   :  { %v4716_v63 = vpop.eup %4715 }
 0xf89   :  { %v4718_v6 = vpop.eup %4717 }
 0xf8a   :  { %v1382_v9 = vmul.f32 %v4718_v6, %v4716_v63  ;;  %v4720_v13 = vpop.eup %4719 }
 0xf8b   :  { %v1467_v40 = vadd.f32 1.0, %v4720_v13  ;;  %v6662_v13 = vld [vmem:[#allocation40_spill] sm:$0xff] }
 0xf8c   :  { %3370 = vst [vmem:[%s6454_s7 + $0x10] sm:$0xff] %v1382_v9 }
 0xf8d   :  { %4721 = vrcp.f32 %v1467_v40  ;;  %v6663_v40 = vld [vmem:[#allocation42_spill] sm:$0xff] }
 0xf97   :  { %v4722_v8 = vpop.eup %4721 }
 0xf98   :  { %v1471_v4 = vmul.f32 %v4722_v8, %v5807_v38  ;;  %v6659_v38 = vld [vmem:[#allocation34_spill] sm:$0xff] }
 0xfe7   :  { %v1474_v1 = vpop.permute.xlu1 %1473 }
 0xfe8   :  { %v1476_v41 = vmul.f32 %v4722_v8, %v1474_v1  ;;  %v6665_v1 = vld [vmem:[#allocation46_spill] sm:$0xff] }
 0xfea   :  { %1478 = vrot.lane.b32.xlu0 %v1476_v41, %s4905_s12  ;;  %v6666_v41 = vld [vmem:[#allocation50_spill] sm:$0xff] }
0x105c   :  { %v1479_v18 = vpop.permute.xlu0 %1478 }
0x105d   :  { %v5922_v51 = vadd.f32 %v1479_v18, %v1471_v4  ;;  %v6667_v4 = vld [vmem:[#allocation17_spill] sm:$0xff] }
0x105f   :  { %4723 = vtanh.f32 %v5922_v51 }
0x1069   :  { %v4724_v60 = vpop.eup %4723 }
0x106a   :  { %1484 = vrot.lane.b32.xlu1 %v4724_v60, %s4906_s17  ;;  %v6668_v60 = vld [vmem:[#allocation15_spill] sm:$0xff] }
0x106e   :  { %1492 = vrot.lane.b32.xlu1 %v5850_v28, %s4908_s3  ;;  %v6660_v28 = vld [vmem:[#allocation36_spill] sm:$0xff] }
0x10dc   :  { %v1485_v16 = vpop.permute.xlu1 %1484 }
0x10dd   :  { %v1487_v26 = vmul.f32 %v4722_v8, %v1485_v16  ;;  %v6664_v8 = vld [vmem:[#allocation44_spill] sm:$0xff] }
0x10df   :  { %1489 = vrot.lane.b32.xlu0 %v1487_v26, %s4905_s12 }
0x10e0   :  { %v1493_v39 = vpop.permute.xlu1 %1492 }
0x1151   :  { %v1490_v63 = vpop.permute.xlu0 %1489 }
0x1152   :  { %v1495_v6 = vsel %vm30_vm0, %v1490_v63, %v1493_v39 }
0x1153   :  { %3375 = vmatmul.mubr.msk.f32.vlgmr.msra.gmra.mrb[12].mxu0 %vm333_vm6, %v1495_v6 }
0x1154   :  { %4047 = vmatpush1.bf16.msra.mxu0 %v5183_v52 }
0x1155   :  { %4049 = vmatprep.subr.bf16.mxu0 %v5210_v3 }
0x1158   :  { %4051 = vmatpush1.bf16.msra.mxu0 %v5222_v11 }
0x1159   :  { %4053 = vmatprep.subr.bf16.mxu0 %v5248_v27 }
0x115c   :  { %4055 = vmatpush1.bf16.msra.mxu0 %v5261_v34 }
0x115d   :  { %4057 = vmatprep.subr.bf16.mxu0 %v5275_v44 }
0x1160   :  { %4059 = vmatpush1.bf16.msra.mxu0 %v5300_v61 }
0x1161   :  { %4061 = vmatprep.subr.bf16.mxu0 %v6604_v24 }
0x1164   :  { %4063 = vmatpush1.bf16.msra.mxu0 %v6605_v20 }
0x1165   :  { %4065 = vmatprep.subr.bf16.mxu0 %v6606_v46 }
0x1168   :  { %4067 = vmatpush1.bf16.msra.mxu0 %v6607_v25 }
0x1169   :  { %4069 = vmatprep.subr.bf16.mxu0 %v6631_v10 }
0x116c   :  { %4071 = vmatpush1.bf16.msra.mxu0 %v6632_v22 }
0x116d   :  { %4073 = vmatprep.subr.bf16.mxu0 %v6633_v53 }
0x1170   :  { %4075 = vmatpush1.bf16.msra.mxu0 %v6659_v38 }
0x1171   :  { %4077 = vmatprep.subr.bf16.mxu0 %v6660_v28 }
0x1174   :  { %4079 = vmatpush1.bf16.msra.mxu0 %v6661_v30 }
0x1175   :  { %4081 = vmatprep.subr.bf16.mxu0 %v6662_v13 }
0x1178   :  { %4083 = vmatpush1.bf16.msra.mxu0 %v6663_v40 }
0x1179   :  { %4085 = vmatprep.subr.bf16.mxu0 %v6664_v8 }
0x117c   :  { %4087 = vmatpush1.bf16.msra.mxu0 %v6665_v1 }
0x117d   :  { %4089 = vmatprep.subr.bf16.mxu0 %v6617_v31 }
0x1180   :  { %4091 = vmatpush1.bf16.msra.mxu0 %v6666_v41 }
0x1181   :  { %4123 = vmatprep.subr.bf16.mxu0 %v6667_v4 }
0x1226   :  { %v1565_v18 = vpop.f32.mrb[12].mxu0 }
0x1227   :  { %v1566_v16 = vadd.f32 %v1565_v18, %v6668_v60  ;;  %v1567_v39 = vpop.f32.mrb[13].mxu0 }
0x1228   :  { %v1568_v6 = vadd.f32 %v1567_v39, %v6619_v19  ;;  %v6671_v39 = vld [vmem:[#allocation12_spill] sm:$0xff] }
0x1229   :  { %v3376_v63 = vmul.f32 -1.442695, %v1566_v16 }
0x122a   :  { %v3377_v4 = vmul.f32 -1.442695, %v1568_v6 }
0x122b   :  { %4725 = vpow2.f32 %v3376_v63 }
0x122c   :  { %4727 = vtanh.f32 %v1568_v6  ;;  %v6672_v6 = vld [vmem:[#allocation13_spill] sm:$0xff] }
0x1235   :  { %v4726_v13 = vpop.eup %4725 }
0x1236   :  { %v1573_v40 = vadd.f32 1.0, %v4726_v13  ;;  %v4728_v8 = vpop.eup %4727 }
0x1238   :  { %4729 = vrcp.f32 %v1573_v40 }
0x1239   :  { %4731 = vpow2.f32 %v3377_v4  ;;  %v6670_v4 = vld [vmem:[#allocation27_spill] sm:$0xff] }
0x1242   :  { %v4730_v1 = vpop.eup %4729 }
0x1243   :  { %v1584_v30 = vmul.f32 %v4730_v1, %v4728_v8  ;;  %v4732_v41 = vpop.eup %4731  ;;  %v1583_v16 = vmul.f32 %v4730_v1, %v5845_v0 }
0x1244   :  { %v1580_v18 = vadd.f32 1.0, %v4732_v41 }
0x1245   :  { %1586 = vrot.lane.b32.xlu0 %v1584_v30, %s4906_s17 }
0x1246   :  { %4733 = vrcp.f32 %v1580_v18  ;;  %v6673_v18 = vld [vmem:[#allocation29_spill] sm:$0xff] }
0x1249   :  { %1597 = vrot.lane.b32.xlu0 %v1382_v9, %s4906_s17 }
0x1250   :  { %v4734_v30 = vpop.eup %4733 }
0x12b7   :  { %v1587_v63 = vpop.permute.xlu0 %1586 }
0x12b8   :  { %v5960_v60 = vadd.f32 %v1587_v63, %v1583_v16  ;;  %v6674_v16 = vld [vmem:[#allocation31_spill] sm:$0xff]  ;;  %v6675_v63 = vld [vmem:[#allocation14_spill] sm:$0xff] }
0x12ba   :  { %4735 = vtanh.f32 %v5960_v60 }
0x12bb   :  { %v1598_v13 = vpop.permute.xlu0 %1597 }
0x12bc   :  { %3378 = vmatprep.mubr.msk.f32.mxu1 %vm33_vm5, %v1598_v13  ;;  %3379 = vmatprep.mubr.msk.f32.mxu0 %vm33_vm5, %v1598_v13 }
0x12c4   :  { %v4736_v40 = vpop.eup %4735 }
0x12c5   :  { %v5965_v9 = vmul.f32 %v4736_v40, %v4734_v30  ;;  %v6677_v30 = vld [vmem:[#allocation33_spill] sm:$0xff]  ;;  %v6678_v40 = vld [vmem:[#allocation35_spill] sm:$0xff] }
0x12c7   :  { %1593 = vrot.lane.b32.xlu1 %v5965_v9, %s4906_s17 }
0x12cb   :  { %1773 = vrot.lane.b32.xlu1 %v1487_v26, %s4907_s4  ;;  %v3384_v26 = vld [vmem:[%s6448_s0 + $0x20] sm:$0xff] }
0x1339   :  { %v1594_v0 = vpop.permute.xlu1 %1593 }
0x133a   :  { %v1600_v8 = vsel %vm33_vm5, %v1594_v0, %v1598_v13  ;;  %v6676_v13 = vld [vmem:[#allocation18_spill] sm:$0xff]  ;;  %v6679_v0 = vld [vmem:[#allocation37_spill] sm:$0xff] }
0x133b   :  { %1668 = vmatmul.mubr.f32.vlgmr.msra.gmra.mrb[14].mxu1 %v1600_v8  ;;  %1739 = vmatmul.mubr.f32.vlgmr.msra.gmra.mrb[14].mxu0 %v1600_v8  ;;  %v6680_v8 = vld [vmem:[#allocation39_spill] sm:$0xff] }
0x133c   :  { %4094 = vmatpush3.bf16.msra.mxu1 %v4963_v5  ;;  %3546 = vmatprep.mubr.msk.f32.mxu1 %vm4903_vm1, %v6597_v15 }
0x133d   :  { %4095 = vmatprep.subr.bf16.mxu1 %v6595_v21  ;;  %4125 = vmatpush1.bf16.msra.mxu0 %v5169_v45  ;;  %v1774_v1 = vpop.permute.xlu1 %1773 }
0x133e   :  { %4127 = vmatprep.subr.bf16.mxu0 %v5196_v58  ;;  %v1776_v41 = vsel %vm215_vm3, %v3384_v26, %v1774_v1  ;;  %v6681_v26 = vld [vmem:[#allocation41_spill] sm:$0xff]  ;;  %v6682_v1 = vld [vmem:[#allocation43_spill] sm:$0xff] }
0x1340   :  { %4097 = vmatpush3.bf16.msra.mxu1 %v4971_v7 }
0x1341   :  { %3544 = vmatprep.subr.mxu1 %v6597_v15  ;;  %4129 = vmatpush1.bf16.msra.mxu0 %v5198_v59 }
0x1342   :  { %4131 = vmatprep.subr.bf16.mxu0 %v5224_v12 }
0x1344   :  { %3545 = vmatpush3.msk.msra.mxu1 %vm221_vm2, %v5748_v49  ;;  %v6669_v49 = vld [vmem:[#allocation25_spill] sm:$0xff] }
0x1345   :  { %3547 = vmatmul.mubr.msk.f32.vlgmr.msra.gmra.mrb[16].mxu1 %vm217_vm4, %v1776_v41  ;;  %4099 = vmatprep.subr.bf16.mxu1 %v5018_v32  ;;  %v6683_v41 = vld [vmem:[#allocation45_spill] sm:$0xff] }
0x1346   :  { %4101 = vmatpush1.bf16.msra.mxu1 %v5029_v36  ;;  %1949 = vmatprep.mubr.f32.mxu1 %v6597_v15 }
0x1347   :  { %4103 = vmatprep.subr.bf16.mxu1 %v5031_v37  ;;  %4133 = vmatpush1.bf16.msra.mxu0 %v5246_v23 }
0x1348   :  { %4135 = vmatprep.subr.bf16.mxu0 %v5263_v35 }
0x134a   :  { %4105 = vmatpush1.bf16.msra.mxu1 %v5047_v42 }
0x134b   :  { %4107 = vmatprep.subr.bf16.mxu1 %v5050_v43  ;;  %4137 = vmatpush1.bf16.msra.mxu0 %v5290_v54 }
0x134c   :  { %4139 = vmatprep.subr.bf16.mxu0 %v5302_v2 }
0x134e   :  { %4109 = vmatpush1.bf16.msra.mxu1 %v5065_v48 }
0x134f   :  { %4111 = vmatprep.subr.bf16.mxu1 %v5068_v50  ;;  %4141 = vmatpush1.bf16.msra.mxu0 %v5332_v29 }
0x1350   :  { %4143 = vmatprep.subr.bf16.mxu0 %v5338_v33 }
0x1352   :  { %4113 = vmatpush1.bf16.msra.mxu1 %v5084_v56 }
0x1353   :  { %4115 = vmatprep.subr.bf16.mxu1 %v5087_v57  ;;  %4145 = vmatpush1.bf16.msra.mxu0 %v6669_v49 }
0x1354   :  { %4147 = vmatprep.subr.bf16.mxu0 %v6670_v4 }
0x1356   :  { %4117 = vmatpush1.bf16.msra.mxu1 %v6671_v39 }
0x1357   :  { %4119 = vmatprep.subr.bf16.mxu1 %v6672_v6  ;;  %4149 = vmatpush1.bf16.msra.mxu0 %v6673_v18  ;;  %v6684_v18 = vld [vmem:[#allocation47_spill] sm:$0xff] }
0x1358   :  { %4151 = vmatprep.subr.bf16.mxu0 %v6674_v16  ;;  %v6685_v16 = vld [vmem:[#allocation49_spill] sm:$0xff] }
0x135a   :  { %4121 = vmatpush1.bf16.msra.mxu1 %v6675_v63  ;;  %v6686_v63 = vld [vmem:[#allocation51_spill] sm:$0xff] }
0x135b   :  { %4171 = vmatprep.subr.bf16.mxu1 %v6676_v13  ;;  %4153 = vmatpush1.bf16.msra.mxu0 %v6677_v30 }
0x135c   :  { %4155 = vmatprep.subr.bf16.mxu0 %v6678_v40 }
0x135f   :  { %4157 = vmatpush1.bf16.msra.mxu0 %v6679_v0 }
0x1360   :  { %4159 = vmatprep.subr.bf16.mxu0 %v6680_v8 }
0x1363   :  { %4161 = vmatpush1.bf16.msra.mxu0 %v6681_v26 }
0x1364   :  { %4163 = vmatprep.subr.bf16.mxu0 %v6682_v1 }
0x1367   :  { %4165 = vmatpush1.bf16.msra.mxu0 %v6683_v41 }
0x1368   :  { %4167 = vmatprep.subr.bf16.mxu0 %v6684_v18 }
0x136b   :  { %4169 = vmatpush1.bf16.msra.mxu0 %v6685_v16 }
0x136c   :  { %4218 = vmatprep.subr.bf16.mxu0 %v6595_v21 }
0x140e   :  { %v1669_v13 = vpop.f32.mrb[14].mxu1  ;;  %v1740_v30 = vpop.f32.mrb[14].mxu0 }
0x140f   :  { %v1670_v40 = vadd.f32 %v1669_v13, %v6686_v63  ;;  %v1671_v6 = vpop.f32.mrb[15].mxu1  ;;  %v1742_v0 = vpop.f32.mrb[15].mxu0  ;;  %v1741_v49 = vadd.f32 %v1740_v30, %v6658_v62 }
0x1410   :  { %v1672_v8 = vadd.f32 %v1671_v6, %v6656_v55  ;;  %v1743_v41 = vadd.f32 %v1742_v0, %v6657_v47 }
0x1411   :  { %v3380_v39 = vmul.f32 -1.442695, %v1670_v40 }
0x1412   :  { %v3381_v26 = vmul.f32 -1.442695, %v1672_v8  ;;  %v3382_v4 = vmul.f32 -1.442695, %v1743_v41 }
0x1413   :  { %4737 = vpow2.f32 %v3380_v39 }
0x1414   :  { %4739 = vpow2.f32 %v3381_v26 }
0x1418   :  { %v1846_v1 = vpop.f32.mrb[16].mxu1 }
0x1419   :  { %v1847_v18 = vadd.f32 %v5793_v14, %v1846_v1  ;;  %v3548_v16 = vpop.f32.mrb[17].mxu1 }
0x141b   :  { %4741 = vtanh.f32 %v1847_v18 }
0x141c   :  { %4743 = vpow2.f32 %v3382_v4 }
0x141d   :  { %v4738_v57 = vpop.eup %4737  ;;  %4745 = vtanh.f32 %v1741_v49 }
0x141e   :  { %v4740_v13 = vpop.eup %4739  ;;  %v1748_v63 = vadd.f32 1.0, %v4738_v57 }
0x141f   :  { %v1754_v6 = vadd.f32 1.0, %v4740_v13 }
0x1420   :  { %4747 = vrcp.f32 %v1748_v63  ;;  %v3387_v63 = vmul.f32 -1.442695, %v1847_v18 }
0x1421   :  { %4749 = vrcp.f32 %v1754_v6 }
0x1425   :  { %v4742_v39 = vpop.eup %4741 }
0x1426   :  { %1859 = vrot.lane.b32.xlu0 %v4742_v39, %s4906_s17  ;;  %v4744_v40 = vpop.eup %4743 }
0x1427   :  { %v4746_v0 = vpop.eup %4745  ;;  %v1761_v26 = vadd.f32 1.0, %v4744_v40 }
0x1429   :  { %4751 = vrcp.f32 %v1761_v26 }
0x142a   :  { %v4748_v8 = vpop.eup %4747 }
0x142b   :  { %v4750_v14 = vpop.eup %4749  ;;  %v1765_v16 = vmul.f32 %v4748_v8, %v4746_v0 }
0x142c   :  { %v1764_v30 = vmul.f32 %v4750_v14, %v5914_v17 }
0x142e   :  { %v6029_v1 = vadd.f32 %v1765_v16, %v1764_v30 }
0x1430   :  { %4753 = vtanh.f32 %v6029_v1 }
0x1431   :  { %4755 = vpow2.f32 %v3387_v63  ;;  %v6690_v63 = vld [vmem:[#allocation44_spill] sm:$0xff] }
0x1433   :  { %v4752_v57 = vpop.eup %4751 }
0x143a   :  { %v4754_v49 = vpop.eup %4753 }
0x143b   :  { %v1768_v4 = vmul.f32 %v4754_v49, %v4752_v57  ;;  %v4756_v41 = vpop.eup %4755  ;;  %v6689_v49 = vld [vmem:[#allocation42_spill] sm:$0xff] }
0x143c   :  { %v1853_v13 = vadd.f32 1.0, %v4756_v41  ;;  %v6691_v41 = vld [vmem:[#allocation46_spill] sm:$0xff] }
0x143d   :  { %3383 = vst [vmem:[%s6454_s7 + $0x18] sm:$0xff] %v1768_v4 }
0x143e   :  { %4757 = vrcp.f32 %v1853_v13  ;;  %v6692_v13 = vld [vmem:[#allocation50_spill] sm:$0xff] }
0x1448   :  { %v4758_v6 = vpop.eup %4757 }
0x1449   :  { %v1857_v40 = vmul.f32 %v4758_v6, %v5922_v51  ;;  %v6687_v51 = vld [vmem:[#allocation38_spill] sm:$0xff] }
0x1498   :  { %v1860_v39 = vpop.permute.xlu0 %1859 }
0x1499   :  { %v1862_v17 = vmul.f32 %v4758_v6, %v1860_v39 }
0x149b   :  { %1864 = vrot.lane.b32.xlu1 %v1862_v17, %s4905_s12  ;;  %v6694_v17 = vld [vmem:[#allocation15_spill] sm:$0xff] }
0x150d   :  { %v1865_v0 = vpop.permute.xlu1 %1864 }
0x150e   :  { %v6037_v8 = vadd.f32 %v1865_v0, %v1857_v40 }
0x1510   :  { %4759 = vtanh.f32 %v6037_v8 }
0x151a   :  { %v4760_v14 = vpop.eup %4759 }
0x151b   :  { %1870 = vrot.lane.b32.xlu0 %v4760_v14, %s4906_s17 }
0x151f   :  { %1878 = vrot.lane.b32.xlu0 %v5965_v9, %s4908_s3  ;;  %v6688_v9 = vld [vmem:[#allocation40_spill] sm:$0xff] }
0x158d   :  { %v1871_v18 = vpop.permute.xlu0 %1870 }
0x158e   :  { %v1873_v16 = vmul.f32 %v4758_v6, %v1871_v18  ;;  %v6693_v6 = vld [vmem:[#allocation17_spill] sm:$0xff] }
0x1590   :  { %1875 = vrot.lane.b32.xlu1 %v1873_v16, %s4905_s12 }
0x1591   :  { %v1879_v26 = vpop.permute.xlu0 %1878 }
0x1602   :  { %v1876_v30 = vpop.permute.xlu1 %1875 }
0x1603   :  { %v1881_v57 = vsel %vm30_vm0, %v1876_v30, %v1879_v26 }
0x1604   :  { %3388 = vmatmul.mubr.msk.f32.vlgmr.msra.gmra.mrb[18].mxu1 %vm333_vm6, %v1881_v57 }
0x1605   :  { %4173 = vmatpush1.bf16.msra.mxu1 %v5183_v52 }
0x1606   :  { %4175 = vmatprep.subr.bf16.mxu1 %v5210_v3 }
0x1609   :  { %4177 = vmatpush1.bf16.msra.mxu1 %v5222_v11 }
0x160a   :  { %4179 = vmatprep.subr.bf16.mxu1 %v5248_v27 }
0x160d   :  { %4181 = vmatpush1.bf16.msra.mxu1 %v5261_v34 }
0x160e   :  { %4183 = vmatprep.subr.bf16.mxu1 %v5275_v44 }
0x1611   :  { %4185 = vmatpush1.bf16.msra.mxu1 %v5300_v61 }
0x1612   :  { %4187 = vmatprep.subr.bf16.mxu1 %v6604_v24 }
0x1615   :  { %4189 = vmatpush1.bf16.msra.mxu1 %v6605_v20 }
0x1616   :  { %4191 = vmatprep.subr.bf16.mxu1 %v6606_v46 }
0x1619   :  { %4193 = vmatpush1.bf16.msra.mxu1 %v6607_v25 }
0x161a   :  { %4195 = vmatprep.subr.bf16.mxu1 %v6631_v10 }
0x161d   :  { %4197 = vmatpush1.bf16.msra.mxu1 %v6632_v22 }
0x161e   :  { %4199 = vmatprep.subr.bf16.mxu1 %v6633_v53 }
0x1621   :  { %4201 = vmatpush1.bf16.msra.mxu1 %v6659_v38 }
0x1622   :  { %4203 = vmatprep.subr.bf16.mxu1 %v6660_v28 }
0x1625   :  { %4205 = vmatpush1.bf16.msra.mxu1 %v6687_v51 }
0x1626   :  { %4207 = vmatprep.subr.bf16.mxu1 %v6688_v9 }
0x1629   :  { %4209 = vmatpush1.bf16.msra.mxu1 %v6689_v49 }
0x162a   :  { %4211 = vmatprep.subr.bf16.mxu1 %v6690_v63 }
0x162d   :  { %4213 = vmatpush1.bf16.msra.mxu1 %v6691_v41 }
0x162e   :  { %4215 = vmatprep.subr.bf16.mxu1 %v6617_v31 }
0x1631   :  { %4217 = vmatpush1.bf16.msra.mxu1 %v6692_v13 }
0x1632   :  { %4249 = vmatprep.subr.bf16.mxu1 %v6693_v6 }
0x16d7   :  { %v1951_v39 = vpop.f32.mrb[18].mxu1 }
0x16d8   :  { %v1952_v40 = vadd.f32 %v1951_v39, %v6694_v17  ;;  %v1953_v0 = vpop.f32.mrb[19].mxu1 }
0x16d9   :  { %v1954_v18 = vadd.f32 %v1953_v0, %v6619_v19 }
0x16da   :  { %v3389_v14 = vmul.f32 -1.442695, %v1952_v40 }
0x16db   :  { %v3390_v6 = vmul.f32 -1.442695, %v1954_v18 }
0x16dc   :  { %4761 = vpow2.f32 %v3389_v14 }
0x16dd   :  { %4763 = vtanh.f32 %v1954_v18  ;;  %v6103_v18 = vld [vmem:[%s6447_s1 + $0x20] sm:$0xf] }
0x16e6   :  { %v4762_v26 = vpop.eup %4761 }
0x16e7   :  { %v1959_v30 = vadd.f32 1.0, %v4762_v26  ;;  %v4764_v57 = vpop.eup %4763 }
0x16e9   :  { %4765 = vrcp.f32 %v1959_v30  ;;  %v6695_v30 = vld [vmem:[#allocation11_spill] sm:$0xff] }
0x16ea   :  { %4767 = vpow2.f32 %v3390_v6 }
0x16f3   :  { %v4766_v41 = vpop.eup %4765 }
0x16f4   :  { %v1970_v63 = vmul.f32 %v4766_v41, %v4764_v57  ;;  %v4768_v13 = vpop.eup %4767  ;;  %v1969_v40 = vmul.f32 %v4766_v41, %v5960_v60  ;;  %v6696_v57 = vld [vmem:[#allocation25_spill] sm:$0xff] }
0x16f5   :  { %v1966_v39 = vadd.f32 1.0, %v4768_v13 }
0x16f6   :  { %1972 = vrot.lane.b32.xlu1 %v1970_v63, %s4906_s17 }
0x16f7   :  { %4769 = vrcp.f32 %v1966_v39  ;;  %v6697_v39 = vld [vmem:[#allocation27_spill] sm:$0xff] }
0x16fa   :  { %1983 = vrot.lane.b32.xlu1 %v1768_v4, %s4906_s17 }
0x1701   :  { %v4770_v63 = vpop.eup %4769 }
0x1768   :  { %v1973_v14 = vpop.permute.xlu1 %1972 }
0x1769   :  { %v6075_v17 = vadd.f32 %v1973_v14, %v1969_v40  ;;  %v6698_v40 = vld [vmem:[#allocation12_spill] sm:$0xff]  ;;  %v6699_v14 = vld [vmem:[#allocation13_spill] sm:$0xff] }
0x176b   :  { %4771 = vtanh.f32 %v6075_v17 }
0x176c   :  { %v1984_v0 = vpop.permute.xlu1 %1983 }
0x176d   :  { %3391 = vmatprep.mubr.msk.f32.mxu0 %vm33_vm5, %v1984_v0  ;;  %3392 = vmatprep.mubr.msk.f32.mxu1 %vm33_vm5, %v1984_v0 }
0x1775   :  { %v4772_v26 = vpop.eup %4771 }
0x1776   :  { %v6080_v4 = vmul.f32 %v4772_v26, %v4770_v63  ;;  %v6701_v63 = vld [vmem:[#allocation31_spill] sm:$0xff]  ;;  %v6702_v26 = vld [vmem:[#allocation14_spill] sm:$0xff] }
0x1778   :  { %1979 = vrot.lane.b32.xlu0 %v6080_v4, %s4906_s17 }
0x177c   :  { %2159 = vrot.lane.b32.xlu0 %v1873_v16, %s4907_s4  ;;  %v3397_v16 = vld [vmem:[%s6448_s0 + $0x28] sm:$0xff] }
0x17ea   :  { %v1980_v60 = vpop.permute.xlu0 %1979 }
0x17eb   :  { %v1986_v41 = vsel %vm33_vm5, %v1980_v60, %v1984_v0  ;;  %v6700_v0 = vld [vmem:[#allocation29_spill] sm:$0xff]  ;;  %v6703_v60 = vld [vmem:[#allocation18_spill] sm:$0xff] }
0x17ec   :  { %2054 = vmatmul.mubr.f32.vlgmr.msra.gmra.mrb[16].mxu0 %v1986_v41  ;;  %2125 = vmatmul.mubr.f32.vlgmr.msra.gmra.mrb[20].mxu1 %v1986_v41  ;;  %v6704_v41 = vld [vmem:[#allocation33_spill] sm:$0xff] }
0x17ed   :  { %4220 = vmatpush3.bf16.msra.mxu0 %v4963_v5  ;;  %3559 = vmatprep.mubr.msk.f32.mxu0 %vm4903_vm1, %v6597_v15 }
0x17ee   :  { %4221 = vmatprep.subr.bf16.mxu0 %v6595_v21  ;;  %4251 = vmatpush1.bf16.msra.mxu1 %v5169_v45  ;;  %v2160_v13 = vpop.permute.xlu0 %2159 }
0x17ef   :  { %4253 = vmatprep.subr.bf16.mxu1 %v5196_v58  ;;  %v2162_v6 = vsel %vm215_vm3, %v3397_v16, %v2160_v13  ;;  %v6705_v16 = vld [vmem:[#allocation35_spill] sm:$0xff]  ;;  %v6706_v13 = vld [vmem:[#allocation37_spill] sm:$0xff] }
0x17f1   :  { %4223 = vmatpush3.bf16.msra.mxu0 %v4971_v7 }
0x17f2   :  { %3557 = vmatprep.subr.mxu0 %v6597_v15  ;;  %4255 = vmatpush1.bf16.msra.mxu1 %v5198_v59 }
0x17f3   :  { %4257 = vmatprep.subr.bf16.mxu1 %v5224_v12 }
0x17f5   :  { %3558 = vmatpush3.msk.msra.mxu0 %vm221_vm2, %v6103_v18 }
0x17f6   :  { %3560 = vmatmul.mubr.msk.f32.vlgmr.msra.gmra.mrb[18].mxu0 %vm217_vm4, %v2162_v6  ;;  %4225 = vmatprep.subr.bf16.mxu0 %v5018_v32  ;;  %v6707_v6 = vld [vmem:[#allocation39_spill] sm:$0xff] }
0x17f7   :  { %4227 = vmatpush1.bf16.msra.mxu0 %v5029_v36  ;;  %2335 = vmatprep.mubr.f32.mxu0 %v6597_v15 }
0x17f8   :  { %4229 = vmatprep.subr.bf16.mxu0 %v5031_v37  ;;  %4259 = vmatpush1.bf16.msra.mxu1 %v5246_v23 }
0x17f9   :  { %4261 = vmatprep.subr.bf16.mxu1 %v5263_v35 }
0x17fb   :  { %4231 = vmatpush1.bf16.msra.mxu0 %v5047_v42 }
0x17fc   :  { %4233 = vmatprep.subr.bf16.mxu0 %v5050_v43  ;;  %4263 = vmatpush1.bf16.msra.mxu1 %v5290_v54 }
0x17fd   :  { %4265 = vmatprep.subr.bf16.mxu1 %v5302_v2 }
0x17ff   :  { %4235 = vmatpush1.bf16.msra.mxu0 %v5065_v48 }
0x1800   :  { %4237 = vmatprep.subr.bf16.mxu0 %v5068_v50  ;;  %4267 = vmatpush1.bf16.msra.mxu1 %v5332_v29 }
0x1801   :  { %4269 = vmatprep.subr.bf16.mxu1 %v5338_v33 }
0x1803   :  { %4239 = vmatpush1.bf16.msra.mxu0 %v5084_v56 }
0x1804   :  { %4241 = vmatprep.subr.bf16.mxu0 %v6695_v30  ;;  %4271 = vmatpush1.bf16.msra.mxu1 %v6696_v57 }
0x1805   :  { %4273 = vmatprep.subr.bf16.mxu1 %v6697_v39  ;;  %v6708_v39 = vld [vmem:[#allocation41_spill] sm:$0xff] }
0x1807   :  { %4243 = vmatpush1.bf16.msra.mxu0 %v6698_v40  ;;  %v6709_v40 = vld [vmem:[#allocation43_spill] sm:$0xff] }
0x1808   :  { %4245 = vmatprep.subr.bf16.mxu0 %v6699_v14  ;;  %4275 = vmatpush1.bf16.msra.mxu1 %v6700_v0  ;;  %v6710_v14 = vld [vmem:[#allocation45_spill] sm:$0xff]  ;;  %v6711_v0 = vld [vmem:[#allocation47_spill] sm:$0xff] }
0x1809   :  { %4277 = vmatprep.subr.bf16.mxu1 %v6701_v63  ;;  %v6712_v63 = vld [vmem:[#allocation49_spill] sm:$0xff] }
0x180b   :  { %4247 = vmatpush1.bf16.msra.mxu0 %v6702_v26  ;;  %v6713_v26 = vld [vmem:[#allocation51_spill] sm:$0xff] }
0x180c   :  { %4297 = vmatprep.subr.bf16.mxu0 %v6703_v60  ;;  %4279 = vmatpush1.bf16.msra.mxu1 %v6704_v41 }
0x180d   :  { %4281 = vmatprep.subr.bf16.mxu1 %v6705_v16 }
0x1810   :  { %4283 = vmatpush1.bf16.msra.mxu1 %v6706_v13 }
0x1811   :  { %4285 = vmatprep.subr.bf16.mxu1 %v6707_v6 }
0x1814   :  { %4287 = vmatpush1.bf16.msra.mxu1 %v6708_v39 }
0x1815   :  { %4289 = vmatprep.subr.bf16.mxu1 %v6709_v40 }
0x1818   :  { %4291 = vmatpush1.bf16.msra.mxu1 %v6710_v14 }
0x1819   :  { %4293 = vmatprep.subr.bf16.mxu1 %v6711_v0 }
0x181c   :  { %4295 = vmatpush1.bf16.msra.mxu1 %v6712_v63  ;;  %v6148_v63 = vld [vmem:[%s6449_s2] ss:$0 sm:$0xff] }
0x181d   :  { %4344 = vmatprep.subr.bf16.mxu1 %v6595_v21 }
0x18bf   :  { %v2055_v60 = vpop.f32.mrb[16].mxu0  ;;  %v2126_v41 = vpop.f32.mrb[20].mxu1 }
0x18c0   :  { %v2056_v16 = vadd.f32 %v2055_v60, %v6713_v26  ;;  %v2057_v57 = vpop.f32.mrb[17].mxu0  ;;  %v2128_v13 = vpop.f32.mrb[21].mxu1  ;;  %v2127_v26 = vadd.f32 %v2126_v41, %v6658_v62 }
0x18c1   :  { %v2058_v6 = vadd.f32 %v2057_v57, %v6656_v55  ;;  %v2129_v14 = vadd.f32 %v2128_v13, %v6657_v47 }
0x18c2   :  { %v3393_v30 = vmul.f32 -1.442695, %v2056_v16 }
0x18c3   :  { %v3394_v39 = vmul.f32 -1.442695, %v2058_v6  ;;  %v3395_v60 = vmul.f32 -1.442695, %v2129_v14 }
0x18c4   :  { %4773 = vpow2.f32 %v3393_v30 }
0x18c5   :  { %4775 = vpow2.f32 %v3394_v39 }
0x18c9   :  { %v2232_v40 = vpop.f32.mrb[18].mxu0 }
0x18ca   :  { %v2233_v0 = vadd.f32 %v6148_v63, %v2232_v40  ;;  %v3561_v56 = vpop.f32.mrb[19].mxu0 }
0x18cc   :  { %4777 = vtanh.f32 %v2233_v0 }
0x18cd   :  { %4779 = vpow2.f32 %v3395_v60 }
0x18ce   :  { %v4774_v57 = vpop.eup %4773  ;;  %4781 = vtanh.f32 %v2127_v26 }
0x18cf   :  { %v4776_v16 = vpop.eup %4775  ;;  %v2134_v6 = vadd.f32 1.0, %v4774_v57 }
0x18d0   :  { %v2140_v30 = vadd.f32 1.0, %v4776_v16  ;;  %v3400_v16 = vmul.f32 -1.442695, %v2233_v0 }
0x18d1   :  { %4783 = vrcp.f32 %v2134_v6 }
0x18d2   :  { %4785 = vrcp.f32 %v2140_v30 }
0x18d6   :  { %v4778_v39 = vpop.eup %4777 }
0x18d7   :  { %2245 = vrot.lane.b32.xlu1 %v4778_v39, %s4906_s17  ;;  %v4780_v13 = vpop.eup %4779 }
0x18d8   :  { %v4782_v47 = vpop.eup %4781  ;;  %v2147_v14 = vadd.f32 1.0, %v4780_v13 }
0x18da   :  { %4787 = vrcp.f32 %v2147_v14 }
0x18db   :  { %v4784_v55 = vpop.eup %4783 }
0x18dc   :  { %v4786_v40 = vpop.eup %4785  ;;  %v2151_v56 = vmul.f32 %v4784_v55, %v4782_v47 }
0x18dd   :  { %v2150_v41 = vmul.f32 %v4786_v40, %v6029_v1 }
0x18df   :  { %v6154_v62 = vadd.f32 %v2151_v56, %v2150_v41 }
0x18e1   :  { %4789 = vtanh.f32 %v6154_v62 }
0x18e2   :  { %4791 = vpow2.f32 %v3400_v16  ;;  %v6716_v16 = vld [vmem:[#allocation50_spill] sm:$0xff] }
0x18e4   :  { %v4788_v26 = vpop.eup %4787 }
0x18eb   :  { %v4790_v60 = vpop.eup %4789 }
0x18ec   :  { %v2154_v57 = vmul.f32 %v4790_v60, %v4788_v26  ;;  %v4792_v6 = vpop.eup %4791 }
0x18ed   :  { %v2239_v30 = vadd.f32 1.0, %v4792_v6  ;;  %v6717_v6 = vld [vmem:[#allocation17_spill] sm:$0xff] }
0x18ee   :  { %3396 = vst [vmem:[%s6454_s7 + $0x20] sm:$0xff] %v2154_v57 }
0x18ef   :  { %4793 = vrcp.f32 %v2239_v30 }
0x18f9   :  { %v4794_v55 = vpop.eup %4793 }
0x18fa   :  { %v2243_v39 = vmul.f32 %v4794_v55, %v6037_v8  ;;  %v6714_v8 = vld [vmem:[#allocation44_spill] sm:$0xff] }
0x1949   :  { %v2246_v47 = vpop.permute.xlu1 %2245 }
0x194a   :  { %v2248_v1 = vmul.f32 %v4794_v55, %v2246_v47 }
0x194c   :  { %2250 = vrot.lane.b32.xlu0 %v2248_v1, %s4905_s12 }
0x19be   :  { %v2251_v13 = vpop.permute.xlu0 %2250 }
0x19bf   :  { %v6162_v40 = vadd.f32 %v2251_v13, %v2243_v39 }
0x19c1   :  { %4795 = vtanh.f32 %v6162_v40 }
0x19cb   :  { %v4796_v56 = vpop.eup %4795 }
0x19cc   :  { %2256 = vrot.lane.b32.xlu1 %v4796_v56, %s4906_s17 }
0x19d0   :  { %2264 = vrot.lane.b32.xlu1 %v6080_v4, %s4908_s3  ;;  %v6715_v4 = vld [vmem:[#allocation46_spill] sm:$0xff] }
0x1a3e   :  { %v2257_v0 = vpop.permute.xlu1 %2256 }
0x1a3f   :  { %v2259_v14 = vmul.f32 %v4794_v55, %v2257_v0  ;;  %v6718_v55 = vld [vmem:[#allocation15_spill] sm:$0xff] }
0x1a41   :  { %2261 = vrot.lane.b32.xlu0 %v2259_v14, %s4905_s12 }
0x1a42   :  { %v2265_v41 = vpop.permute.xlu1 %2264 }
0x1ab3   :  { %v2262_v26 = vpop.permute.xlu0 %2261 }
0x1ab4   :  { %v2267_v60 = vsel %vm30_vm0, %v2262_v26, %v2265_v41 }
0x1ab5   :  { %3401 = vmatmul.mubr.msk.f32.vlgmr.msra.gmra.mrb[20].mxu0 %vm333_vm6, %v2267_v60 }
0x1ab6   :  { %4299 = vmatpush1.bf16.msra.mxu0 %v5183_v52 }
0x1ab7   :  { %4301 = vmatprep.subr.bf16.mxu0 %v5210_v3 }
0x1aba   :  { %4303 = vmatpush1.bf16.msra.mxu0 %v5222_v11 }
0x1abb   :  { %4305 = vmatprep.subr.bf16.mxu0 %v5248_v27 }
0x1abe   :  { %4307 = vmatpush1.bf16.msra.mxu0 %v5261_v34 }
0x1abf   :  { %4309 = vmatprep.subr.bf16.mxu0 %v5275_v44 }
0x1ac2   :  { %4311 = vmatpush1.bf16.msra.mxu0 %v5300_v61 }
0x1ac3   :  { %4313 = vmatprep.subr.bf16.mxu0 %v6604_v24 }
0x1ac6   :  { %4315 = vmatpush1.bf16.msra.mxu0 %v6605_v20 }
0x1ac7   :  { %4317 = vmatprep.subr.bf16.mxu0 %v6606_v46 }
0x1aca   :  { %4319 = vmatpush1.bf16.msra.mxu0 %v6607_v25 }
0x1acb   :  { %4321 = vmatprep.subr.bf16.mxu0 %v6631_v10 }
0x1ace   :  { %4323 = vmatpush1.bf16.msra.mxu0 %v6632_v22 }
0x1acf   :  { %4325 = vmatprep.subr.bf16.mxu0 %v6633_v53 }
0x1ad2   :  { %4327 = vmatpush1.bf16.msra.mxu0 %v6659_v38 }
0x1ad3   :  { %4329 = vmatprep.subr.bf16.mxu0 %v6660_v28 }
0x1ad6   :  { %4331 = vmatpush1.bf16.msra.mxu0 %v6687_v51 }
0x1ad7   :  { %4333 = vmatprep.subr.bf16.mxu0 %v6688_v9 }
0x1ada   :  { %4335 = vmatpush1.bf16.msra.mxu0 %v6689_v49 }
0x1adb   :  { %4337 = vmatprep.subr.bf16.mxu0 %v6714_v8 }
0x1ade   :  { %4339 = vmatpush1.bf16.msra.mxu0 %v6715_v4 }
0x1adf   :  { %4341 = vmatprep.subr.bf16.mxu0 %v6617_v31 }
0x1ae2   :  { %4343 = vmatpush1.bf16.msra.mxu0 %v6716_v16 }
0x1ae3   :  { %4375 = vmatprep.subr.bf16.mxu0 %v6717_v6 }
0x1b88   :  { %v2337_v30 = vpop.f32.mrb[20].mxu0 }
0x1b89   :  { %v2338_v47 = vadd.f32 %v2337_v30, %v6718_v55  ;;  %v2339_v1 = vpop.f32.mrb[21].mxu0 }
0x1b8a   :  { %v2340_v13 = vadd.f32 %v2339_v1, %v6619_v19 }
0x1b8b   :  { %v3402_v39 = vmul.f32 -1.442695, %v2338_v47 }
0x1b8c   :  { %v3403_v6 = vmul.f32 -1.442695, %v2340_v13 }
0x1b8d   :  { %4797 = vpow2.f32 %v3402_v39 }
0x1b8e   :  { %4799 = vtanh.f32 %v2340_v13 }
0x1b97   :  { %v4798_v56 = vpop.eup %4797 }
0x1b98   :  { %v2345_v0 = vadd.f32 1.0, %v4798_v56  ;;  %v4800_v41 = vpop.eup %4799 }
0x1b9a   :  { %4801 = vrcp.f32 %v2345_v0 }
0x1b9b   :  { %4803 = vpow2.f32 %v3403_v6 }
0x1ba4   :  { %v4802_v26 = vpop.eup %4801 }
0x1ba5   :  { %v2356_v60 = vmul.f32 %v4802_v26, %v4800_v41  ;;  %v4804_v16 = vpop.eup %4803  ;;  %v2355_v47 = vmul.f32 %v4802_v26, %v6075_v17  ;;  %v6719_v41 = vld [vmem:[#allocation10_spill] sm:$0xff]  ;;  %v6720_v26 = vld [vmem:[#allocation11_spill] sm:$0xff] }
0x1ba6   :  { %v2352_v30 = vadd.f32 1.0, %v4804_v16 }
0x1ba7   :  { %2358 = vrot.lane.b32.xlu0 %v2356_v60, %s4906_s17  ;;  %v6721_v60 = vld [vmem:[#allocation25_spill] sm:$0xff] }
0x1ba8   :  { %4805 = vrcp.f32 %v2352_v30  ;;  %v6722_v30 = vld [vmem:[#allocation27_spill] sm:$0xff] }
0x1bab   :  { %2369 = vrot.lane.b32.xlu0 %v2154_v57, %s4906_s17 }
0x1bb2   :  { %v4806_v56 = vpop.eup %4805 }
0x1c19   :  { %v2359_v39 = vpop.permute.xlu0 %2358 }
0x1c1a   :  { %v6200_v55 = vadd.f32 %v2359_v39, %v2355_v47  ;;  %v6723_v47 = vld [vmem:[#allocation12_spill] sm:$0xff]  ;;  %v6724_v39 = vld [vmem:[#allocation13_spill] sm:$0xff] }
0x1c1c   :  { %4807 = vtanh.f32 %v6200_v55 }
0x1c1d   :  { %v2370_v1 = vpop.permute.xlu0 %2369 }
0x1c1e   :  { %3404 = vmatprep.mubr.msk.f32.mxu1 %vm33_vm5, %v2370_v1  ;;  %3405 = vmatprep.mubr.msk.f32.mxu0 %vm33_vm5, %v2370_v1 }
0x1c26   :  { %v4808_v0 = vpop.eup %4807 }
0x1c27   :  { %v6205_v57 = vmul.f32 %v4808_v0, %v4806_v56  ;;  %v6726_v56 = vld [vmem:[#allocation31_spill] sm:$0xff]  ;;  %v6727_v0 = vld [vmem:[#allocation14_spill] sm:$0xff] }
0x1c29   :  { %2365 = vrot.lane.b32.xlu1 %v6205_v57, %s4906_s17 }
0x1c2d   :  { %2545 = vrot.lane.b32.xlu1 %v2259_v14, %s4907_s4  ;;  %v3410_v14 = vld [vmem:[%s6448_s0 + $0x30] sm:$0xff] }
0x1c9b   :  { %v2366_v17 = vpop.permute.xlu1 %2365 }
0x1c9c   :  { %v2372_v16 = vsel %vm33_vm5, %v2366_v17, %v2370_v1  ;;  %v6725_v1 = vld [vmem:[#allocation29_spill] sm:$0xff]  ;;  %v6728_v17 = vld [vmem:[#allocation18_spill] sm:$0xff] }
0x1c9d   :  { %2440 = vmatmul.mubr.f32.vlgmr.msra.gmra.mrb[22].mxu1 %v2372_v16  ;;  %2511 = vmatmul.mubr.f32.vlgmr.msra.gmra.mrb[22].mxu0 %v2372_v16  ;;  %v6729_v16 = vld [vmem:[#allocation33_spill] sm:$0xff] }
0x1c9e   :  { %4346 = vmatpush3.bf16.msra.mxu1 %v4963_v5  ;;  %3572 = vmatprep.mubr.msk.f32.mxu1 %vm4903_vm1, %v6597_v15 }
0x1c9f   :  { %4347 = vmatprep.subr.bf16.mxu1 %v6595_v21  ;;  %4377 = vmatpush1.bf16.msra.mxu0 %v5169_v45  ;;  %v2546_v6 = vpop.permute.xlu1 %2545 }
0x1ca0   :  { %4379 = vmatprep.subr.bf16.mxu0 %v5196_v58  ;;  %v2548_v13 = vsel %vm215_vm3, %v3410_v14, %v2546_v6  ;;  %v6730_v14 = vld [vmem:[#allocation35_spill] sm:$0xff]  ;;  %v6731_v6 = vld [vmem:[#allocation37_spill] sm:$0xff] }
0x1ca2   :  { %4349 = vmatpush3.bf16.msra.mxu1 %v4971_v7 }
0x1ca3   :  { %3570 = vmatprep.subr.mxu1 %v6597_v15  ;;  %4381 = vmatpush1.bf16.msra.mxu0 %v5198_v59 }
0x1ca4   :  { %4383 = vmatprep.subr.bf16.mxu0 %v5224_v12 }
0x1ca6   :  { %3571 = vmatpush3.msk.msra.mxu1 %vm221_vm2, %v6103_v18 }
0x1ca7   :  { %3573 = vmatmul.mubr.msk.f32.vlgmr.msra.gmra.mrb[24].mxu1 %vm217_vm4, %v2548_v13  ;;  %4351 = vmatprep.subr.bf16.mxu1 %v5018_v32  ;;  %v6732_v13 = vld [vmem:[#allocation39_spill] sm:$0xff] }
0x1ca8   :  { %4353 = vmatpush1.bf16.msra.mxu1 %v5029_v36  ;;  %2721 = vmatprep.mubr.f32.mxu1 %v6597_v15 }
0x1ca9   :  { %4355 = vmatprep.subr.bf16.mxu1 %v5031_v37  ;;  %4385 = vmatpush1.bf16.msra.mxu0 %v5246_v23 }
0x1caa   :  { %4387 = vmatprep.subr.bf16.mxu0 %v5263_v35 }
0x1cac   :  { %4357 = vmatpush1.bf16.msra.mxu1 %v5047_v42 }
0x1cad   :  { %4359 = vmatprep.subr.bf16.mxu1 %v5050_v43  ;;  %4389 = vmatpush1.bf16.msra.mxu0 %v5290_v54 }
0x1cae   :  { %4391 = vmatprep.subr.bf16.mxu0 %v5302_v2 }
0x1cb0   :  { %4361 = vmatpush1.bf16.msra.mxu1 %v5065_v48 }
0x1cb1   :  { %4363 = vmatprep.subr.bf16.mxu1 %v5068_v50  ;;  %4393 = vmatpush1.bf16.msra.mxu0 %v5332_v29  ;;  %v6741_v50 = vld [vmem:[#allocation54_spill] sm:$0xff] }
0x1cb2   :  { %4395 = vmatprep.subr.bf16.mxu0 %v5338_v33 }
0x1cb4   :  { %4365 = vmatpush1.bf16.msra.mxu1 %v6719_v41 }
0x1cb5   :  { %4367 = vmatprep.subr.bf16.mxu1 %v6720_v26  ;;  %4397 = vmatpush1.bf16.msra.mxu0 %v6721_v60  ;;  %v6739_v26 = vld [vmem:[#allocation52_spill] sm:$0xff] }
0x1cb6   :  { %4399 = vmatprep.subr.bf16.mxu0 %v6722_v30  ;;  %v6733_v30 = vld [vmem:[#allocation41_spill] sm:$0xff] }
0x1cb8   :  { %4369 = vmatpush1.bf16.msra.mxu1 %v6723_v47  ;;  %v6734_v47 = vld [vmem:[#allocation43_spill] sm:$0xff] }
0x1cb9   :  { %4371 = vmatprep.subr.bf16.mxu1 %v6724_v39  ;;  %4401 = vmatpush1.bf16.msra.mxu0 %v6725_v1  ;;  %v6735_v39 = vld [vmem:[#allocation45_spill] sm:$0xff]  ;;  %v6736_v1 = vld [vmem:[#allocation47_spill] sm:$0xff] }
0x1cba   :  { %4403 = vmatprep.subr.bf16.mxu0 %v6726_v56  ;;  %v6737_v56 = vld [vmem:[#allocation49_spill] sm:$0xff] }
0x1cbc   :  { %4373 = vmatpush1.bf16.msra.mxu1 %v6727_v0  ;;  %v6738_v0 = vld [vmem:[#allocation51_spill] sm:$0xff] }
0x1cbd   :  { %4423 = vmatprep.subr.bf16.mxu1 %v6728_v17  ;;  %4405 = vmatpush1.bf16.msra.mxu0 %v6729_v16 }
0x1cbe   :  { %4407 = vmatprep.subr.bf16.mxu0 %v6730_v14 }
0x1cc1   :  { %4409 = vmatpush1.bf16.msra.mxu0 %v6731_v6 }
0x1cc2   :  { %4411 = vmatprep.subr.bf16.mxu0 %v6732_v13 }
0x1cc5   :  { %4413 = vmatpush1.bf16.msra.mxu0 %v6733_v30 }
0x1cc6   :  { %4415 = vmatprep.subr.bf16.mxu0 %v6734_v47  ;;  %v6740_v47 = vld [vmem:[#allocation53_spill] sm:$0xff] }
0x1cc9   :  { %4417 = vmatpush1.bf16.msra.mxu0 %v6735_v39 }
0x1cca   :  { %4419 = vmatprep.subr.bf16.mxu0 %v6736_v1 }
0x1ccd   :  { %4421 = vmatpush1.bf16.msra.mxu0 %v6737_v56 }
0x1cce   :  { %4470 = vmatprep.subr.bf16.mxu0 %v6595_v21 }
0x1d70   :  { %v2441_v17 = vpop.f32.mrb[22].mxu1  ;;  %v2512_v16 = vpop.f32.mrb[22].mxu0 }
0x1d71   :  { %v2442_v14 = vadd.f32 %v2441_v17, %v6738_v0  ;;  %v2443_v60 = vpop.f32.mrb[23].mxu1  ;;  %v2514_v6 = vpop.f32.mrb[23].mxu0  ;;  %v2513_v48 = vadd.f32 %v2512_v16, %v6741_v50 }
0x1d72   :  { %v2444_v13 = vadd.f32 %v2443_v60, %v6739_v26  ;;  %v2515_v39 = vadd.f32 %v2514_v6, %v6740_v47 }
0x1d73   :  { %v3406_v41 = vmul.f32 -1.442695, %v2442_v14 }
0x1d74   :  { %v3407_v30 = vmul.f32 -1.442695, %v2444_v13  ;;  %v3408_v29 = vmul.f32 -1.442695, %v2515_v39 }
0x1d75   :  { %4809 = vpow2.f32 %v3406_v41 }
0x1d76   :  { %4811 = vpow2.f32 %v3407_v30 }
0x1d7a   :  { %v2618_v33 = vpop.f32.mrb[24].mxu1 }
0x1d7b   :  { %v2619_v1 = vadd.f32 %v6148_v63, %v2618_v33  ;;  %v3574_v56 = vpop.f32.mrb[25].mxu1 }
0x1d7d   :  { %4813 = vtanh.f32 %v2619_v1 }
0x1d7e   :  { %4815 = vpow2.f32 %v3408_v29 }
0x1d7f   :  { %v4810_v2 = vpop.eup %4809  ;;  %4817 = vtanh.f32 %v2513_v48 }
0x1d80   :  { %v4812_v17 = vpop.eup %4811  ;;  %v2520_v0 = vadd.f32 1.0, %v4810_v2 }
0x1d81   :  { %v2526_v60 = vadd.f32 1.0, %v4812_v17 }
0x1d82   :  { %4819 = vrcp.f32 %v2520_v0  ;;  %v3413_v0 = vmul.f32 -1.442695, %v2619_v1 }
0x1d83   :  { %4821 = vrcp.f32 %v2526_v60 }
0x1d87   :  { %v4814_v41 = vpop.eup %4813 }
0x1d88   :  { %2631 = vrot.lane.b32.xlu0 %v4814_v41, %s4906_s17  ;;  %v4816_v30 = vpop.eup %4815 }
0x1d89   :  { %v4818_v14 = vpop.eup %4817  ;;  %v2533_v39 = vadd.f32 1.0, %v4816_v30 }
0x1d8b   :  { %4823 = vrcp.f32 %v2533_v39 }
0x1d8c   :  { %v4820_v6 = vpop.eup %4819 }
0x1d8d   :  { %v4822_v33 = vpop.eup %4821  ;;  %v2537_v56 = vmul.f32 %v4820_v6, %v4818_v14 }
0x1d8e   :  { %v2536_v16 = vmul.f32 %v4822_v33, %v6154_v62 }
0x1d90   :  { %v6269_v13 = vadd.f32 %v2537_v56, %v2536_v16 }
0x1d92   :  { %4825 = vtanh.f32 %v6269_v13 }
0x1d93   :  { %4827 = vpow2.f32 %v3413_v0 }
0x1d95   :  { %v4824_v48 = vpop.eup %4823 }
0x1d9c   :  { %v4826_v2 = vpop.eup %4825 }
0x1d9d   :  { %v2540_v29 = vmul.f32 %v4826_v2, %v4824_v48  ;;  %v4828_v17 = vpop.eup %4827 }
0x1d9e   :  { %v2625_v60 = vadd.f32 1.0, %v4828_v17  ;;  %v6744_v17 = vld [vmem:[#allocation15_spill] sm:$0xff] }
0x1d9f   :  { %3409 = vst [vmem:[%s6454_s7 + $0x28] sm:$0xff] %v2540_v29 }
0x1da0   :  { %4829 = vrcp.f32 %v2625_v60 }
0x1daa   :  { %v4830_v41 = vpop.eup %4829 }
0x1dab   :  { %v2629_v14 = vmul.f32 %v4830_v41, %v6162_v40  ;;  %v6742_v40 = vld [vmem:[#allocation50_spill] sm:$0xff] }
0x1dfa   :  { %v2632_v30 = vpop.permute.xlu0 %2631 }
0x1dfb   :  { %v2634_v62 = vmul.f32 %v4830_v41, %v2632_v30 }
0x1dfd   :  { %2636 = vrot.lane.b32.xlu1 %v2634_v62, %s4905_s12 }
0x1e6f   :  { %v2637_v6 = vpop.permute.xlu1 %2636 }
0x1e70   :  { %v6277_v33 = vadd.f32 %v2637_v6, %v2629_v14 }
0x1e72   :  { %4831 = vtanh.f32 %v6277_v33 }
0x1e7c   :  { %v4832_v56 = vpop.eup %4831 }
0x1e7d   :  { %2642 = vrot.lane.b32.xlu0 %v4832_v56, %s4906_s17 }
0x1e81   :  { %2650 = vrot.lane.b32.xlu0 %v6205_v57, %s4908_s3  ;;  %v6743_v57 = vld [vmem:[#allocation17_spill] sm:$0xff] }
0x1eef   :  { %v2643_v1 = vpop.permute.xlu0 %2642 }
0x1ef0   :  { %v2645_v39 = vmul.f32 %v4830_v41, %v2643_v1 }
0x1ef2   :  { %2647 = vrot.lane.b32.xlu1 %v2645_v39, %s4905_s12 }
0x1ef3   :  { %v2651_v16 = vpop.permute.xlu0 %2650 }
0x1f64   :  { %v2648_v48 = vpop.permute.xlu1 %2647 }
0x1f65   :  { %v2653_v2 = vsel %vm30_vm0, %v2648_v48, %v2651_v16 }
0x1f66   :  { %3414 = vmatmul.mubr.msk.f32.vlgmr.msra.gmra.mrb[26].mxu1 %vm333_vm6, %v2653_v2 }
0x1f67   :  { %4425 = vmatpush1.bf16.msra.mxu1 %v5183_v52 }
0x1f68   :  { %4427 = vmatprep.subr.bf16.mxu1 %v5210_v3 }
0x1f6b   :  { %4429 = vmatpush1.bf16.msra.mxu1 %v5222_v11 }
0x1f6c   :  { %4431 = vmatprep.subr.bf16.mxu1 %v5248_v27 }
0x1f6f   :  { %4433 = vmatpush1.bf16.msra.mxu1 %v5261_v34 }
0x1f70   :  { %4435 = vmatprep.subr.bf16.mxu1 %v5275_v44 }
0x1f73   :  { %4437 = vmatpush1.bf16.msra.mxu1 %v5300_v61 }
0x1f74   :  { %4439 = vmatprep.subr.bf16.mxu1 %v6604_v24 }
0x1f77   :  { %4441 = vmatpush1.bf16.msra.mxu1 %v6605_v20 }
0x1f78   :  { %4443 = vmatprep.subr.bf16.mxu1 %v6606_v46 }
0x1f7b   :  { %4445 = vmatpush1.bf16.msra.mxu1 %v6607_v25 }
0x1f7c   :  { %4447 = vmatprep.subr.bf16.mxu1 %v6631_v10 }
0x1f7f   :  { %4449 = vmatpush1.bf16.msra.mxu1 %v6632_v22 }
0x1f80   :  { %4451 = vmatprep.subr.bf16.mxu1 %v6633_v53 }
0x1f83   :  { %4453 = vmatpush1.bf16.msra.mxu1 %v6659_v38 }
0x1f84   :  { %4455 = vmatprep.subr.bf16.mxu1 %v6660_v28 }
0x1f87   :  { %4457 = vmatpush1.bf16.msra.mxu1 %v6687_v51 }
0x1f88   :  { %4459 = vmatprep.subr.bf16.mxu1 %v6688_v9 }
0x1f8b   :  { %4461 = vmatpush1.bf16.msra.mxu1 %v6689_v49 }
0x1f8c   :  { %4463 = vmatprep.subr.bf16.mxu1 %v6714_v8 }
0x1f8f   :  { %4465 = vmatpush1.bf16.msra.mxu1 %v6715_v4 }
0x1f90   :  { %4467 = vmatprep.subr.bf16.mxu1 %v6617_v31 }
0x1f93   :  { %4469 = vmatpush1.bf16.msra.mxu1 %v6742_v40 }
0x1f94   :  { %4501 = vmatprep.subr.bf16.mxu1 %v6743_v57 }
0x2039   :  { %v2723_v0 = vpop.f32.mrb[26].mxu1 }
0x203a   :  { %v2724_v60 = vadd.f32 %v2723_v0, %v6744_v17  ;;  %v2725_v41 = vpop.f32.mrb[27].mxu1 }
0x203b   :  { %v2726_v62 = vadd.f32 %v2725_v41, %v6619_v19 }
0x203c   :  { %v3415_v30 = vmul.f32 -1.442695, %v2724_v60 }
0x203d   :  { %v3416_v48 = vmul.f32 -1.442695, %v2726_v62 }
0x203e   :  { %4833 = vpow2.f32 %v3415_v30 }
0x203f   :  { %4835 = vtanh.f32 %v2726_v62 }
0x2048   :  { %v4834_v14 = vpop.eup %4833 }
0x2049   :  { %v2731_v6 = vadd.f32 1.0, %v4834_v14  ;;  %v4836_v56 = vpop.eup %4835 }
0x204b   :  { %4837 = vrcp.f32 %v2731_v6 }
0x204c   :  { %4839 = vpow2.f32 %v3416_v48  ;;  %v6763_v48 = vld [vmem:[#allocation39_spill] sm:$0xff] }
0x2055   :  { %v4838_v1 = vpop.eup %4837 }
0x2056   :  { %v2742_v16 = vmul.f32 %v4838_v1, %v4836_v56  ;;  %v4840_v2 = vpop.eup %4839  ;;  %v2741_v0 = vmul.f32 %v4838_v1, %v6200_v55  ;;  %v6761_v1 = vld [vmem:[#allocation35_spill] sm:$0xff] }
0x2057   :  { %v2738_v57 = vadd.f32 1.0, %v4840_v2  ;;  %v6764_v2 = vld [vmem:[#allocation41_spill] sm:$0xff] }
0x2058   :  { %2744 = vrot.lane.b32.xlu1 %v2742_v16, %s4906_s17  ;;  %v6762_v16 = vld [vmem:[#allocation37_spill] sm:$0xff] }
0x2059   :  { %4841 = vrcp.f32 %v2738_v57  ;;  %v6765_v57 = vld [vmem:[#allocation43_spill] sm:$0xff] }
0x205c   :  { %2755 = vrot.lane.b32.xlu1 %v2540_v29, %s4906_s17 }
0x2063   :  { %v4842_v14 = vpop.eup %4841 }
0x20ca   :  { %v2745_v60 = vpop.permute.xlu1 %2744 }
0x20cb   :  { %v6315_v30 = vadd.f32 %v2745_v60, %v2741_v0  ;;  %v6766_v0 = vld [vmem:[#allocation45_spill] sm:$0xff]  ;;  %v6767_v60 = vld [vmem:[#allocation47_spill] sm:$0xff] }
0x20cd   :  { %4843 = vtanh.f32 %v6315_v30 }
0x20ce   :  { %v2756_v41 = vpop.permute.xlu1 %2755 }
0x20cf   :  { %3417 = vmatprep.mubr.msk.f32.mxu0 %vm33_vm5, %v2756_v41  ;;  %3418 = vmatprep.mubr.msk.f32.mxu1 %vm33_vm5, %v2756_v41 }
0x20d7   :  { %v4844_v6 = vpop.eup %4843 }
0x20d8   :  { %v6320_v29 = vmul.f32 %v4844_v6, %v4842_v14 }
0x20da   :  { %2751 = vrot.lane.b32.xlu0 %v6320_v29, %s4906_s17 }
0x20de   :  { %2931 = vrot.lane.b32.xlu0 %v2645_v39, %s4907_s4  ;;  %v3423_v39 = vld [vmem:[%s6448_s0 + $0x38] sm:$0xff] }
0x214c   :  { %v2752_v55 = vpop.permute.xlu0 %2751 }
0x214d   :  { %v2758_v62 = vsel %vm33_vm5, %v2752_v55, %v2756_v41  ;;  %v6768_v41 = vld [vmem:[#allocation49_spill] sm:$0xff]  ;;  %v6769_v55 = vld [vmem:[#allocation51_spill] sm:$0xff] }
0x214e   :  { %2826 = vmatmul.mubr.f32.vlgmr.msra.gmra.mrb[24].mxu0 %v2758_v62  ;;  %2897 = vmatmul.mubr.f32.vlgmr.msra.gmra.mrb[28].mxu1 %v2758_v62 }
0x214f   :  { %4472 = vmatpush3.bf16.msra.mxu0 %v4963_v5  ;;  %3585 = vmatprep.mubr.msk.f32.mxu0 %vm4903_vm1, %v6597_v15 }
0x2150   :  { %4473 = vmatprep.subr.bf16.mxu0 %v6595_v21  ;;  %4503 = vmatpush1.bf16.msra.mxu1 %v5169_v45  ;;  %v2932_v56 = vpop.permute.xlu0 %2931  ;;  %v6746_v45 = vld [vmem:[#allocation8_spill] sm:$0xff]  ;;  %v6758_v21 = vld [vmem:[#allocation14_spill] sm:$0xff] }
0x2151   :  { %4505 = vmatprep.subr.bf16.mxu1 %v5196_v58  ;;  %v2934_v5 = vsel %vm215_vm3, %v3423_v39, %v2932_v56  ;;  %v6749_v58 = vld [vmem:[#allocation23_spill] sm:$0xff] }
0x2153   :  { %4475 = vmatpush3.bf16.msra.mxu0 %v4971_v7  ;;  %v6745_v7 = vld [vmem:[#allocation19_spill] sm:$0xff] }
0x2154   :  { %3583 = vmatprep.subr.mxu0 %v6597_v15  ;;  %4507 = vmatpush1.bf16.msra.mxu1 %v5198_v59  ;;  %v6751_v59 = vld [vmem:[#allocation11_spill] sm:$0xff] }
0x2155   :  { %4509 = vmatprep.subr.bf16.mxu1 %v5224_v12  ;;  %v6752_v12 = vld [vmem:[#allocation25_spill] sm:$0xff] }
0x2157   :  { %3584 = vmatpush3.msk.msra.mxu0 %vm221_vm2, %v6103_v18  ;;  %v6760_v18 = vld [vmem:[#allocation33_spill] sm:$0xff] }
0x2158   :  { %3586 = vmatmul.mubr.msk.f32.vlgmr.msra.gmra.mrb[26].mxu0 %vm217_vm4, %v2934_v5  ;;  %4477 = vmatprep.subr.bf16.mxu0 %v5018_v32  ;;  %v6747_v32 = vld [vmem:[#allocation9_spill] sm:$0xff] }
0x2159   :  { %4479 = vmatpush1.bf16.msra.mxu0 %v5029_v36  ;;  %3107 = vmatprep.mubr.f32.mxu0 %v6597_v15  ;;  %v6748_v36 = vld [vmem:[#allocation21_spill] sm:$0xff]  ;;  %v6759_v15 = vld [vmem:[#allocation18_spill] sm:$0xff] }
0x215a   :  { %4481 = vmatprep.subr.bf16.mxu0 %v5031_v37  ;;  %4511 = vmatpush1.bf16.msra.mxu1 %v5246_v23  ;;  %v6750_v37 = vld [vmem:[#allocation10_spill] sm:$0xff]  ;;  %v6755_v23 = vld [vmem:[#allocation13_spill] sm:$0xff] }
0x215b   :  { %4513 = vmatprep.subr.bf16.mxu1 %v5263_v35  ;;  %v6756_v35 = vld [vmem:[#allocation29_spill] sm:$0xff] }
0x215d   :  { %4483 = vmatpush1.bf16.msra.mxu0 %v5047_v42  ;;  %v6753_v42 = vld [vmem:[#allocation27_spill] sm:$0xff] }
0x215e   :  { %4485 = vmatprep.subr.bf16.mxu0 %v5050_v43  ;;  %4515 = vmatpush1.bf16.msra.mxu1 %v5290_v54  ;;  %v6754_v43 = vld [vmem:[#allocation12_spill] sm:$0xff]  ;;  %v6757_v54 = vld [vmem:[#allocation31_spill] sm:$0xff] }
0x215f   :  { %4517 = vmatprep.subr.bf16.mxu1 %v6745_v7 }
0x2161   :  { %4487 = vmatpush1.bf16.msra.mxu0 %v6746_v45 }
0x2162   :  { %4489 = vmatprep.subr.bf16.mxu0 %v6747_v32  ;;  %4519 = vmatpush1.bf16.msra.mxu1 %v6748_v36 }
0x2163   :  { %4521 = vmatprep.subr.bf16.mxu1 %v6749_v58 }
0x2165   :  { %4491 = vmatpush1.bf16.msra.mxu0 %v6750_v37 }
0x2166   :  { %4493 = vmatprep.subr.bf16.mxu0 %v6751_v59  ;;  %4523 = vmatpush1.bf16.msra.mxu1 %v6752_v12 }
0x2167   :  { %4525 = vmatprep.subr.bf16.mxu1 %v6753_v42 }
0x2169   :  { %4495 = vmatpush1.bf16.msra.mxu0 %v6754_v43 }
0x216a   :  { %4497 = vmatprep.subr.bf16.mxu0 %v6755_v23  ;;  %4527 = vmatpush1.bf16.msra.mxu1 %v6756_v35 }
0x216b   :  { %4529 = vmatprep.subr.bf16.mxu1 %v6757_v54 }
0x216d   :  { %4499 = vmatpush1.bf16.msra.mxu0 %v6758_v21 }
0x216e   :  { %4549 = vmatprep.subr.bf16.mxu0 %v6759_v15  ;;  %4531 = vmatpush1.bf16.msra.mxu1 %v6760_v18 }
0x216f   :  { %4533 = vmatprep.subr.bf16.mxu1 %v6761_v1 }
0x2172   :  { %4535 = vmatpush1.bf16.msra.mxu1 %v6762_v16 }
0x2173   :  { %4537 = vmatprep.subr.bf16.mxu1 %v6763_v48 }
0x2176   :  { %4539 = vmatpush1.bf16.msra.mxu1 %v6764_v2 }
0x2177   :  { %4541 = vmatprep.subr.bf16.mxu1 %v6765_v57 }
0x217a   :  { %4543 = vmatpush1.bf16.msra.mxu1 %v6766_v0 }
0x217b   :  { %4545 = vmatprep.subr.bf16.mxu1 %v6767_v60 }
0x217e   :  { %4547 = vmatpush1.bf16.msra.mxu1 %v6768_v41 }
0x2221   :  { %v2827_v14 = vpop.f32.mrb[24].mxu0  ;;  %v2898_v6 = vpop.f32.mrb[28].mxu1 }
0x2222   :  { %v2828_v62 = vadd.f32 %v2827_v14, %v6769_v55  ;;  %v2829_v39 = vpop.f32.mrb[25].mxu0  ;;  %v2900_v56 = vpop.f32.mrb[29].mxu1  ;;  %v2899_v12 = vadd.f32 %v2898_v6, %v6741_v50 }
0x2223   :  { %v2830_v5 = vadd.f32 %v2829_v39, %v6739_v26  ;;  %v2901_v32 = vadd.f32 %v2900_v56, %v6740_v47 }
0x2224   :  { %v3419_v7 = vmul.f32 -1.442695, %v2828_v62 }
0x2225   :  { %v3420_v45 = vmul.f32 -1.442695, %v2830_v5  ;;  %v3421_v59 = vmul.f32 -1.442695, %v2901_v32 }
0x2226   :  { %4845 = vpow2.f32 %v3419_v7 }
0x2227   :  { %4847 = vpow2.f32 %v3420_v45 }
0x222b   :  { %v3004_v36 = vpop.f32.mrb[26].mxu0 }
0x222c   :  { %v3005_v58 = vadd.f32 %v6148_v63, %v3004_v36  ;;  %v3587_v37 = vpop.f32.mrb[27].mxu0 }
0x222e   :  { %4849 = vtanh.f32 %v3005_v58  ;;  %v3426_v41 = vmul.f32 -1.442695, %v3005_v58 }
0x222f   :  { %4851 = vpow2.f32 %v3421_v59 }
0x2230   :  { %v4846_v42 = vpop.eup %4845  ;;  %4853 = vtanh.f32 %v2899_v12 }
0x2231   :  { %v4848_v43 = vpop.eup %4847  ;;  %v2906_v23 = vadd.f32 1.0, %v4846_v42 }
0x2232   :  { %v2912_v35 = vadd.f32 1.0, %v4848_v43 }
0x2233   :  { %4855 = vrcp.f32 %v2906_v23 }
0x2234   :  { %4857 = vrcp.f32 %v2912_v35 }
0x2238   :  { %v4850_v54 = vpop.eup %4849 }
0x2239   :  { %3017 = vrot.lane.b32.xlu1 %v4850_v54, %s4906_s17  ;;  %v4852_v21 = vpop.eup %4851 }
0x223a   :  { %v4854_v15 = vpop.eup %4853  ;;  %v2919_v16 = vadd.f32 1.0, %v4852_v21 }
0x223c   :  { %4859 = vrcp.f32 %v2919_v16 }
0x223d   :  { %v4856_v18 = vpop.eup %4855 }
0x223e   :  { %v4858_v63 = vpop.eup %4857  ;;  %v2923_v1 = vmul.f32 %v4856_v18, %v4854_v15 }
0x223f   :  { %v2922_v48 = vmul.f32 %v4858_v63, %v6269_v13 }
0x2241   :  { %v6383_v2 = vadd.f32 %v2923_v1, %v2922_v48 }
0x2243   :  { %4861 = vtanh.f32 %v6383_v2 }
0x2244   :  { %4863 = vpow2.f32 %v3426_v41 }
0x2246   :  { %v4860_v57 = vpop.eup %4859 }
0x224d   :  { %v4862_v0 = vpop.eup %4861 }
0x224e   :  { %v2926_v60 = vmul.f32 %v4862_v0, %v4860_v57  ;;  %v4864_v14 = vpop.eup %4863 }
0x224f   :  { %v3011_v6 = vadd.f32 1.0, %v4864_v14 }
0x2250   :  { %3422 = vst [vmem:[%s6454_s7 + $0x30] sm:$0xff] %v2926_v60 }
0x2251   :  { %4865 = vrcp.f32 %v3011_v6 }
0x225b   :  { %v4866_v62 = vpop.eup %4865 }
0x225c   :  { %v3015_v56 = vmul.f32 %v4866_v62, %v6277_v33 }
0x22ab   :  { %v3018_v39 = vpop.permute.xlu1 %3017 }
0x22ac   :  { %v3020_v13 = vmul.f32 %v4866_v62, %v3018_v39 }
0x22ae   :  { %3022 = vrot.lane.b32.xlu0 %v3020_v13, %s4905_s12 }
0x2320   :  { %v3023_v5 = vpop.permute.xlu0 %3022 }
0x2321   :  { %v6391_v7 = vadd.f32 %v3023_v5, %v3015_v56 }
0x2323   :  { %4867 = vtanh.f32 %v6391_v7 }
0x232d   :  { %v4868_v45 = vpop.eup %4867 }
0x232e   :  { %3028 = vrot.lane.b32.xlu1 %v4868_v45, %s4906_s17 }
0x2332   :  { %3036 = vrot.lane.b32.xlu1 %v6320_v29, %s4908_s3 }
0x23a0   :  { %v3029_v32 = vpop.permute.xlu1 %3028 }
0x23a1   :  { %v3031_v36 = vmul.f32 %v4866_v62, %v3029_v32 }
0x23a3   :  { %3033 = vrot.lane.b32.xlu0 %v3031_v36, %s4905_s12 }
0x23a4   :  { %v3037_v58 = vpop.permute.xlu1 %3036 }
0x2415   :  { %v3034_v37 = vpop.permute.xlu0 %3033 }
0x2416   :  { %v3039_v59 = vsel %vm30_vm0, %v3034_v37, %v3037_v58  ;;  %3315 = vst.msk [vmem:[#allocation2] sm:$0xff] %vm30_vm0, %v3034_v37 }
0x2417   :  { %3427 = vmatmul.mubr.msk.f32.vlgmr.msra.gmra.mrb[28].mxu0 %vm333_vm6, %v3039_v59 }
0x2418   :  { %4551 = vmatpush1.bf16.msra.mxu0 %v5183_v52 }
0x2419   :  { %4553 = vmatprep.subr.bf16.mxu0 %v5210_v3 }
0x241c   :  { %4555 = vmatpush1.bf16.msra.mxu0 %v5222_v11 }
0x241d   :  { %4557 = vmatprep.subr.bf16.mxu0 %v5248_v27 }
0x2420   :  { %4559 = vmatpush1.bf16.msra.mxu0 %v5261_v34 }
0x2421   :  { %4561 = vmatprep.subr.bf16.mxu0 %v5275_v44 }
0x2424   :  { %4563 = vmatpush1.bf16.msra.mxu0 %v5300_v61 }
0x2425   :  { %4565 = vmatprep.subr.bf16.mxu0 %v6604_v24 }
0x2428   :  { %4567 = vmatpush1.bf16.msra.mxu0 %v6605_v20 }
0x2429   :  { %4569 = vmatprep.subr.bf16.mxu0 %v6606_v46 }
0x242c   :  { %4571 = vmatpush1.bf16.msra.mxu0 %v6607_v25 }
0x242d   :  { %4573 = vmatprep.subr.bf16.mxu0 %v6631_v10 }
0x2430   :  { %4575 = vmatpush1.bf16.msra.mxu0 %v6632_v22 }
0x2431   :  { %4577 = vmatprep.subr.bf16.mxu0 %v6633_v53 }
0x2434   :  { %4579 = vmatpush1.bf16.msra.mxu0 %v6659_v38 }
0x2435   :  { %4581 = vmatprep.subr.bf16.mxu0 %v6660_v28 }
0x2438   :  { %4583 = vmatpush1.bf16.msra.mxu0 %v6687_v51 }
0x2439   :  { %4585 = vmatprep.subr.bf16.mxu0 %v6688_v9 }
0x243c   :  { %4587 = vmatpush1.bf16.msra.mxu0 %v6689_v49 }
0x243d   :  { %4589 = vmatprep.subr.bf16.mxu0 %v6714_v8 }
0x2440   :  { %4591 = vmatpush1.bf16.msra.mxu0 %v6715_v4 }
0x2441   :  { %4593 = vmatprep.subr.bf16.mxu0 %v6617_v31 }
0x2444   :  { %4595 = vmatpush1.bf16.msra.mxu0 %v6742_v40 }
0x24ea   :  { %v3109_v52 = vpop.f32.mrb[28].mxu0 }
0x24eb   :  { %v3110_v3 = vadd.f32 %v3109_v52, %v6744_v17  ;;  %v3111_v11 = vpop.f32.mrb[29].mxu0 }
0x24ec   :  { %v3112_v34 = vadd.f32 %v3111_v11, %v6619_v19 }
0x24ed   :  { %v3428_v27 = vmul.f32 -1.442695, %v3110_v3 }
0x24ee   :  { %v3429_v25 = vmul.f32 -1.442695, %v3112_v34 }
0x24ef   :  { %4869 = vpow2.f32 %v3428_v27 }
0x24f0   :  { %4871 = vtanh.f32 %v3112_v34 }
0x24f9   :  { %v4870_v44 = vpop.eup %4869 }
0x24fa   :  { %v3117_v61 = vadd.f32 1.0, %v4870_v44  ;;  %v4872_v24 = vpop.eup %4871 }
0x24fc   :  { %4873 = vrcp.f32 %v3117_v61 }
0x24fd   :  { %4875 = vpow2.f32 %v3429_v25 }
0x2506   :  { %v4874_v20 = vpop.eup %4873 }
0x2507   :  { %v3128_v46 = vmul.f32 %v4874_v20, %v4872_v24  ;;  %v4876_v31 = vpop.eup %4875  ;;  %v3127_v22 = vmul.f32 %v4874_v20, %v6315_v30 }
0x2508   :  { %v3124_v10 = vadd.f32 1.0, %v4876_v31 }
0x2509   :  { %3130 = vrot.lane.b32.xlu0 %v3128_v46, %s4906_s17 }
0x250a   :  { %4877 = vrcp.f32 %v3124_v10 }
0x250d   :  { %3141 = vrot.lane.b32.xlu0 %v2926_v60, %s4906_s17 }
0x2514   :  { %v4878_v28 = vpop.eup %4877 }
0x257b   :  { %v3131_v53 = vpop.permute.xlu0 %3130 }
0x257c   :  { %v3133_v38 = vadd.f32 %v3131_v53, %v3127_v22 }
0x257e   :  { %4879 = vtanh.f32 %v3133_v38  ;;  %3323 = vrot.lane.b32.xlu0 %v3133_v38, %s4906_s17 }
0x257f   :  { %v3142_v19 = vpop.permute.xlu0 %3141 }
0x2580   :  { %3430 = vmatprep.mubr.msk.f32.mxu1 %vm33_vm5, %v3142_v19  ;;  %3431 = vmatprep.mubr.msk.f32.mxu0 %vm33_vm5, %v3142_v19 }
0x2588   :  { %v4880_v51 = vpop.eup %4879 }
0x2589   :  { %v3135_v9 = vmul.f32 %v4880_v51, %v4878_v28 }
0x258b   :  { %3137 = vrot.lane.b32.xlu1 %v3135_v9, %s4906_s17 }
0x258f   :  { %3317 = vrot.lane.b32.xlu1 %v6391_v7, %s4908_s3 }
0x25f0   :  { %v3324_v49 = vpop.permute.xlu0 %3323 }
0x25f1   :  { %3326 = vst.msk [vmem:[#allocation5] sm:$0xff] %vm33_vm5, %v3324_v49 }
0x25fd   :  { %v3138_v8 = vpop.permute.xlu1 %3137 }
0x25fe   :  { %v3144_v4 = vsel %vm33_vm5, %v3138_v8, %v3142_v19  ;;  %3321 = vst.msk [vmem:[#allocation4] sm:$0xff] %vm33_vm5, %v3138_v8 }
0x25ff   :  { %3212 = vmatmul.mubr.f32.vlgmr.msra.gmra.mrb[30].mxu1 %v3144_v4  ;;  %3283 = vmatmul.mubr.f32.vlgmr.msra.gmra.mrb[30].mxu0 %v3144_v4 }
0x2601   :  { %v3318_v33 = vpop.permute.xlu1 %3317 }
0x2602   :  { %3320 = vst.msk [vmem:[#allocation3] sm:$0xff] %vm30_vm0, %v3318_v33 }
0x26d2   :  { %v3213_v40 = vpop.f32.mrb[30].mxu1  ;;  %v3284_v17 = vpop.f32.mrb[30].mxu0 }
0x26d3   :  { %v3214_v30 = vadd.f32 %v3213_v40, %v6769_v55  ;;  %v3215_v29 = vpop.f32.mrb[31].mxu1  ;;  %v3286_v12 = vpop.f32.mrb[31].mxu0  ;;  %v3285_v21 = vadd.f32 %v3284_v17, %v6741_v50 }
0x26d4   :  { %v3216_v42 = vadd.f32 %v3215_v29, %v6739_v26  ;;  %v3287_v35 = vadd.f32 %v3286_v12, %v6740_v47 }
0x26d5   :  { %v3432_v43 = vmul.f32 -1.442695, %v3214_v30 }
0x26d6   :  { %v3433_v23 = vmul.f32 -1.442695, %v3216_v42  ;;  %v3434_v54 = vmul.f32 -1.442695, %v3287_v35 }
0x26d7   :  { %4881 = vpow2.f32 %v3432_v43 }
0x26d8   :  { %4883 = vpow2.f32 %v3433_v23 }
0x26d9   :  { %4885 = vpow2.f32 %v3434_v54 }
0x26da   :  { %4887 = vtanh.f32 %v3285_v21 }
0x26e1   :  { %v4882_v15 = vpop.eup %4881 }
0x26e2   :  { %v4884_v18 = vpop.eup %4883  ;;  %v3292_v63 = vadd.f32 1.0, %v4882_v15 }
0x26e3   :  { %v3298_v1 = vadd.f32 1.0, %v4884_v18  ;;  %v4886_v55 = vpop.eup %4885 }
0x26e4   :  { %4889 = vrcp.f32 %v3292_v63  ;;  %v4888_v16 = vpop.eup %4887  ;;  %v3305_v0 = vadd.f32 1.0, %v4886_v55 }
0x26e5   :  { %4891 = vrcp.f32 %v3298_v1 }
0x26e6   :  { %4893 = vrcp.f32 %v3305_v0 }
0x26ee   :  { %v4890_v26 = vpop.eup %4889 }
0x26ef   :  { %v4892_v48 = vpop.eup %4891  ;;  %v3309_v57 = vmul.f32 %v4890_v26, %v4888_v16 }
0x26f0   :  { %v3308_v60 = vmul.f32 %v4892_v48, %v6383_v2  ;;  %v4894_v50 = vpop.eup %4893 }
0x26f2   :  { %v3310_v47 = vadd.f32 %v3309_v57, %v3308_v60 }
0x26f4   :  { %4895 = vtanh.f32 %v3310_v47 }
0x26fe   :  { %v4896_v41 = vpop.eup %4895 }
0x26ff   :  { %v3312_v14 = vmul.f32 %v4896_v41, %v4894_v50 }
0x2701   :  { %3435 = vst [vmem:[%s6454_s7 + $0x38] sm:$0xff] %v3312_v14 }

</bundles_post_ra>
